<compile_context>
chip_gen: v7x
topology: tpu7x:2x2x1
jax: 0.10.0
libtpu: 0.0.40
codegen_flags: <defaults>
</compile_context>

<pallas_src>
import jax
import jax.numpy as jnp
from jax import lax
from jax.experimental import pallas as pl
from jax.experimental.pallas import tpu as pltpu


def _round_up(x, m):
    return (x + m - 1) // m * m


def _lstm_seq_kernel(x_ref, c0_ref, h0_ref, w_ref, b_ref,   # inputs
                     hseq_ref, cfin_ref,                     # outputs
                     c_sc, xh_sc):                           # scratch
    """Runs TB LSTM steps per grid point; grid = (batch_groups, time_blocks)."""
    TB = x_ref.shape[0]
    I = x_ref.shape[-1]          # padded input width (multiple of 128)
    H = c0_ref.shape[-1]
    t_blk = pl.program_id(1)

    # New batch group (time axis restarts at 0): load its initial state.
    @pl.when(t_blk == 0)
    def _init():
        c_sc[...] = c0_ref[...].astype(jnp.float32)
        xh_sc[:, I:] = h0_ref[...].astype(jnp.bfloat16)

    bias = b_ref[...].astype(jnp.float32)

    def sigmoid(z):
        # One EUP push (tanh) per gate instead of exp + reciprocal; exact.
        return 0.5 * jnp.tanh(0.5 * z) + 0.5

    def step(s, carry):
        # Stage x_t next to the carried h -> single K = I_pad + H bf16 contraction.
        xh_sc[:, :I] = x_ref[s].astype(jnp.bfloat16)
        gates = jnp.dot(xh_sc[...], w_ref[...],
                        preferred_element_type=jnp.float32) + bias
        # reshape([-1, 4, H]) + unbind(1) == contiguous H-wide chunks on the last dim.
        ig = gates[:, 0 * H:1 * H]
        jg = gates[:, 1 * H:2 * H]
        fg = gates[:, 2 * H:3 * H]
        og = gates[:, 3 * H:4 * H]
        c_new = sigmoid(fg) * c_sc[...] + sigmoid(ig) * jnp.tanh(jg)
        h_new = sigmoid(og) * c_new   # activation=None -> NO tanh on the cell state.
        # Carry state for the next step (h only ever feeds the bf16 matmul).
        c_sc[...] = c_new
        xh_sc[:, I:] = h_new.astype(jnp.bfloat16)
        hseq_ref[s] = h_new.astype(hseq_ref.dtype)
        return carry

    lax.fori_loop(0, TB, step, 0, unroll=True)

    # Final cell state: one write per batch group, on its last time block only.
    @pl.when(t_blk == pl.num_programs(1) - 1)
    def _finalize():
        cfin_ref[...] = c_sc[...].astype(cfin_ref.dtype)


def _vmem_limit_bytes():
    """Generation-aware scoped-VMEM cap (~80% of physical per-core VMEM)."""
    cap = 64 * 1024 * 1024          # conservative fallback (v7x per-TC size)
    try:
        cap = int(pltpu.get_tpu_info().vmem_capacity_bytes)
    except Exception:
        pass
    return int(cap * 4 // 5)


def lstm_seq_forward(x_seq, state, w, b, *, time_block=8, batch_block=None,
                     out_dtype=None):
    """Run the LSTMCell recurrence over a whole sequence in one pallas_call.

    Args:
      x_seq: [T, B, input_size]
      state: (c0, h0), each [B, output_size]
      w:     [input_size + output_size, 4 * output_size]  (= gates.weight.T)
      b:     [1, 4 * output_size] (or [4 * output_size])
      time_block:  requested steps per grid point (clamped to a divisor of T).
      batch_block: rows per batch group ("parallel" grid axis); None = one group.
      out_dtype:   dtype of h_seq / final c (default: state dtype; bf16 halves
                   the O(T*B*H) HBM writeback if tolerable downstream).
    Returns:
      (h_seq [T, B, H], (c_final [B, H], h_final [B, H]))
    """
    c0, h0 = state
    T, B, I = x_seq.shape
    _, H = c0.shape
    out_dtype = c0.dtype if out_dtype is None else out_dtype

    # Time blocking: largest divisor of T not exceeding the request.
    tb = max(d for d in range(1, min(time_block, T) + 1) if T % d == 0)
    n_tblk = T // tb

    # Lane/sublane alignment: pad I to 128 lanes (unmasked [x|h] staging stores and
    # aligned MXU K), pad B to 16 sublanes (bf16 packing).
    I_pad = _round_up(I, 128)
    B_pad = _round_up(B, 16)
    bb = B_pad if batch_block is None else _round_up(min(batch_block, B_pad), 16)
    B_pad = _round_up(B_pad, bb)
    n_bblk = B_pad // bb
    K = I_pad + H

    # bf16 matmul operands (halves HBM traffic, native MXU dtype); zero-pad so the
    # padded rows/cols contribute nothing to the real outputs.
    x_p = jnp.zeros((T, B_pad, I_pad), jnp.bfloat16)
    x_p = x_p.at[:, :B, :I].set(x_seq.astype(jnp.bfloat16))
    c0_p = jnp.zeros((B_pad, H), jnp.float32).at[:B].set(c0.astype(jnp.float32))
    h0_p = jnp.zeros((B_pad, H), jnp.float32).at[:B].set(h0.astype(jnp.float32))
    w_p = jnp.zeros((K, 4 * H), jnp.bfloat16)
    w_p = w_p.at[:I].set(w[:I].astype(jnp.bfloat16))        # Wx rows
    w_p = w_p.at[I_pad:].set(w[I:].astype(jnp.bfloat16))    # Wh rows (after zero pad)
    b_p = b.astype(jnp.float32).reshape(1, 4 * H)

    h_seq_p, c_fin_p = pl.pallas_call(
        _lstm_seq_kernel,
        out_shape=(
            jax.ShapeDtypeStruct((T, B_pad, H), out_dtype),   # h for every step
            jax.ShapeDtypeStruct((B_pad, H), out_dtype),      # final cell state
        ),
        grid_spec=pltpu.PrefetchScalarGridSpec(
            num_scalar_prefetch=0,
            grid=(n_bblk, n_tblk),
            in_specs=[
                pl.BlockSpec((tb, bb, I_pad), lambda g, t: (t, g, 0)),  # x chunk
                pl.BlockSpec((bb, H), lambda g, t: (g, 0)),             # c0 (per group)
                pl.BlockSpec((bb, H), lambda g, t: (g, 0)),             # h0 (per group)
                pl.BlockSpec((K, 4 * H), lambda g, t: (0, 0)),          # W (resident)
                pl.BlockSpec((1, 4 * H), lambda g, t: (0, 0)),          # b (resident)
            ],
            out_specs=(
                pl.BlockSpec((tb, bb, H), lambda g, t: (t, g, 0)),      # h_seq chunk
                pl.BlockSpec((bb, H), lambda g, t: (g, 0)),             # c_final
            ),
            scratch_shapes=[
                pltpu.VMEM((bb, H), jnp.float32),        # carried c state (f32)
                pltpu.VMEM((bb, K), jnp.bfloat16),       # staged [x | h] matmul input
            ],
        ),
        compiler_params=pltpu.CompilerParams(
            # batch groups are independent (shard across v7x's 2 TCs); time is the
            # sequential recurrence.
            dimension_semantics=("parallel", "arbitrary"),
            vmem_limit_bytes=_vmem_limit_bytes(),
        ),
    )(x_p, c0_p, h0_p, w_p, b_p)

    h_seq = h_seq_p[:, :B]
    c_fin = c_fin_p[:B]
    return h_seq, (c_fin, h_seq[-1])


def lstm_cell_forward(x, state, w, b):
    """Module-equivalent single step: returns (new_h, (new_c, new_h))."""
    h_seq, (c_fin, _) = lstm_seq_forward(x[None], state, w, b, time_block=1)
    new_h = h_seq[0]
    return new_h, (c_fin, new_h)


def make_lstm_params(key, input_size, output_size, dtype=jnp.float32):
    """Deterministic init matching reset_parameters('uniform'): U(-0.04, 0.04).

    PyTorch Affine weight is [4*out, in+out]; we store it transposed, i.e.
    W = weight.T with shape [in+out, 4*out], so gates = cat([x, h], 1) @ W + b.
    """
    k_w, k_b = jax.random.split(key)
    w = jax.random.uniform(k_w, (input_size + output_size, 4 * output_size),
                           dtype=dtype, minval=-0.04, maxval=0.04)
    b = jax.random.uniform(k_b, (1, 4 * output_size),
                           dtype=dtype, minval=-0.04, maxval=0.04)
    return w, b


if __name__ == "__main__":
    # Small demo shapes; deliberately exercise I-padding (96 -> 128), B-padding
    # (24 -> 32), two batch groups and two time blocks.
    T, B, INPUT_SIZE, OUTPUT_SIZE = 16, 24, 96, 128
    dtype = jnp.float32

    key = jax.random.PRNGKey(0)
    k_x, k_c, k_h, k_p = jax.random.split(key, 4)

    x_seq = jax.random.normal(k_x, (T, B, INPUT_SIZE), dtype=dtype)
    c0 = jax.random.normal(k_c, (B, OUTPUT_SIZE), dtype=dtype)
    h0 = jax.random.normal(k_h, (B, OUTPUT_SIZE), dtype=dtype)
    w, b = make_lstm_params(k_p, INPUT_SIZE, OUTPUT_SIZE, dtype)

    # --- fused, time-blocked sequence kernel ---
    h_seq, (c_fin, h_fin) = lstm_seq_forward(x_seq, (c0, h0), w, b,
                                             time_block=8, batch_block=16)
    jax.block_until_ready((h_seq, c_fin, h_fin))

    # --- pure-JAX reference (same math as the PyTorch module; matmul inputs
    #     rounded to bf16 to mirror the kernel's intentional precision choice) ---
    w32 = w.astype(jnp.bfloat16).astype(jnp.float32)
    x32 = x_seq.astype(jnp.bfloat16).astype(jnp.float32)
    c_ref, h_ref = c0, h0
    hs_ref, cs_ref = [], []
    for t in range(T):
        h_in = h_ref.astype(jnp.bfloat16).astype(jnp.float32)
        gates = jnp.concatenate([x32[t], h_in], axis=1) @ w32 + b
        comb = gates.reshape(-1, 4, OUTPUT_SIZE)
        i_r, j_r, f_r, o_r = comb[:, 0], comb[:, 1], comb[:, 2], comb[:, 3]
        i_r, f_r, o_r = jax.nn.sigmoid(i_r), jax.nn.sigmoid(f_r), jax.nn.sigmoid(o_r)
        c_ref = f_r * c_ref + i_r * jnp.tanh(j_r)
        h_ref = o_r * c_ref          # activation is None
        hs_ref.append(h_ref)
        cs_ref.append(c_ref)
    hs_ref = jnp.stack(hs_ref)

    assert h_seq.shape == (T, B, OUTPUT_SIZE)
    assert c_fin.shape == (B, OUTPUT_SIZE)
    assert jnp.allclose(h_seq, hs_ref, atol=2e-2, rtol=2e-2)
    assert jnp.allclose(c_fin, cs_ref[-1], atol=2e-2, rtol=2e-2)
    assert jnp.allclose(h_fin, hs_ref[-1], atol=2e-2, rtol=2e-2)

    # --- single-step (module interface) check ---
    nh, (nc, nh2) = lstm_cell_forward(x_seq[0], (c0, h0), w, b)
    jax.block_until_ready((nh, nc, nh2))
    assert jnp.allclose(nh, hs_ref[0], atol=2e-2, rtol=2e-2)
    assert jnp.allclose(nc, cs_ref[0], atol=2e-2, rtol=2e-2)
    assert jnp.allclose(nh2, hs_ref[0], atol=2e-2, rtol=2e-2)

    # TODO(synk): normalization=True (LayerNorm over [4, output_size]) branch is not
    # implemented in the kernel; module default (no layer norm) is what is fused here.
    print("KERNEL_OK")
</pallas_src>

<mosaic_0001>
module attributes {stable_mosaic.version = 11 : i64} {
  func.func @_lstm_seq_kernel(%arg0: i32, %arg1: i32, %arg2: memref<8x16x128xbf16, #tpu.memory_space<vmem>>, %arg3: memref<16x128xf32, #tpu.memory_space<vmem>>, %arg4: memref<16x128xf32, #tpu.memory_space<vmem>>, %arg5: memref<256x512xbf16, #tpu.memory_space<vmem>>, %arg6: memref<1x512xf32, #tpu.memory_space<vmem>>, %arg7: memref<8x16x128xf32, #tpu.memory_space<vmem>>, %arg8: memref<16x128xf32, #tpu.memory_space<vmem>>, %arg9: memref<16x128xf32, #tpu.memory_space<vmem>>, %arg10: memref<16x256xbf16, #tpu.memory_space<vmem>>) attributes {dimension_semantics = [#tpu.dimension_semantics<parallel>, #tpu.dimension_semantics<arbitrary>], iteration_bounds = array<i64: 2, 2>, scalar_prefetch = 0 : i64, scratch_operands = 2 : i64, tpu.core_type = #tpu.core_type<tc>, window_params = [{transform_indices = @transform_0, window_bounds = array<i64: 8, 16, 128>}, {transform_indices = @transform_1, window_bounds = array<i64: 16, 128>}, {transform_indices = @transform_2, window_bounds = array<i64: 16, 128>}, {pipeline_mode = #tpu.pipeline_mode<synchronous>, transform_indices = @transform_3, window_bounds = array<i64: 256, 512>}, {pipeline_mode = #tpu.pipeline_mode<synchronous>, transform_indices = @transform_4, window_bounds = array<i64: 1, 512>}, {transform_indices = @transform_5, window_bounds = array<i64: 8, 16, 128>}, {transform_indices = @transform_6, window_bounds = array<i64: 16, 128>}]} {
    %c0_i32 = arith.constant 0 : i32
    %0 = arith.cmpi eq, %arg1, %c0_i32 : i32
    %1 = arith.extui %0 : i1 to i32
    %c0_i32_0 = arith.constant 0 : i32
    %2 = arith.cmpi ne, %1, %c0_i32_0 : i32
    scf.if %2 {
      %c0_211 = arith.constant 0 : index
      %c0_212 = arith.constant 0 : index
      %383 = vector.load %arg3[%c0_211, %c0_212] : memref<16x128xf32, #tpu.memory_space<vmem>>, vector<16x128xf32>
      %c0_213 = arith.constant 0 : index
      %c0_214 = arith.constant 0 : index
      %384 = vector.load %arg9[%c0_213, %c0_214] : memref<16x128xf32, #tpu.memory_space<vmem>>, vector<16x128xf32>
      tpu.vector_store %arg9[%c0_213, %c0_214], %383 {strides = array<i32>} : memref<16x128xf32, #tpu.memory_space<vmem>>, vector<16x128xf32>,
      %c0_215 = arith.constant 0 : index
      %c0_216 = arith.constant 0 : index
      %385 = vector.load %arg4[%c0_215, %c0_216] : memref<16x128xf32, #tpu.memory_space<vmem>>, vector<16x128xf32>
      %386 = arith.truncf %385 : vector<16x128xf32> to vector<16x128xbf16>
      %c0_217 = arith.constant 0 : index
      %c128_218 = arith.constant 128 : index
      %387 = vector.load %arg10[%c0_217, %c128_218] : memref<16x256xbf16, #tpu.memory_space<vmem>>, vector<16x128xbf16>
      tpu.vector_store %arg10[%c0_217, %c128_218], %386 {strides = array<i32>} : memref<16x256xbf16, #tpu.memory_space<vmem>>, vector<16x128xbf16>,
    } else {
    }
    %c0 = arith.constant 0 : index
    %c0_1 = arith.constant 0 : index
    %3 = vector.load %arg6[%c0, %c0_1] : memref<1x512xf32, #tpu.memory_space<vmem>>, vector<1x512xf32>
    %c0_i32_2 = arith.constant 0 : i32
    %4 = arith.index_cast %c0_i32_2 : i32 to index
    %c0_3 = arith.constant 0 : index
    %c0_4 = arith.constant 0 : index
    %5 = vector.load %arg2[%4, %c0_3, %c0_4] : memref<8x16x128xbf16, #tpu.memory_space<vmem>>, vector<1x16x128xbf16>
    %6 = vector.shape_cast %5 : vector<1x16x128xbf16> to vector<16x128xbf16>
    %c0_5 = arith.constant 0 : index
    %c0_6 = arith.constant 0 : index
    %7 = vector.load %arg10[%c0_5, %c0_6] : memref<16x256xbf16, #tpu.memory_space<vmem>>, vector<16x128xbf16>
    tpu.vector_store %arg10[%c0_5, %c0_6], %6 {strides = array<i32>} : memref<16x256xbf16, #tpu.memory_space<vmem>>, vector<16x128xbf16>,
    %c0_7 = arith.constant 0 : index
    %c0_8 = arith.constant 0 : index
    %8 = vector.load %arg10[%c0_7, %c0_8] : memref<16x256xbf16, #tpu.memory_space<vmem>>, vector<16x256xbf16>
    %c0_9 = arith.constant 0 : index
    %c0_10 = arith.constant 0 : index
    %9 = vector.load %arg5[%c0_9, %c0_10] : memref<256x512xbf16, #tpu.memory_space<vmem>>, vector<256x512xbf16>
    %cst = arith.constant dense<0.000000e+00> : vector<16x512xf32>
    %10 = tpu.matmul %8, %9, %cst {dimension_numbers = #tpu.dot_dimension_numbers<[1], [0], [0], [1], [0, 0, 1, 1], [], []>} : vector<16x256xbf16>, vector<256x512xbf16>, vector<16x512xf32> -> vector<16x512xf32>
    %11 = vector.broadcast %3 : vector<1x512xf32> to vector<16x512xf32>
    %12 = arith.addf %10, %11 : vector<16x512xf32>
    %13 = vector.extract_strided_slice %12 {offsets = [0, 0], sizes = [16, 128], strides = [1, 1]} : vector<16x512xf32> to vector<16x128xf32>
    %14 = vector.extract_strided_slice %12 {offsets = [0, 128], sizes = [16, 128], strides = [1, 1]} : vector<16x512xf32> to vector<16x128xf32>
    %15 = vector.extract_strided_slice %12 {offsets = [0, 256], sizes = [16, 128], strides = [1, 1]} : vector<16x512xf32> to vector<16x128xf32>
    %16 = vector.extract_strided_slice %12 {offsets = [0, 384], sizes = [16, 128], strides = [1, 1]} : vector<16x512xf32> to vector<16x128xf32>
    %cst_11 = arith.constant 5.000000e-01 : f32
    %17 = vector.broadcast %cst_11 : f32 to vector<16x128xf32>
    %18 = arith.mulf %17, %15 : vector<16x128xf32>
    %19 = math.tanh %18 : vector<16x128xf32>
    %cst_12 = arith.constant 5.000000e-01 : f32
    %20 = vector.broadcast %cst_12 : f32 to vector<16x128xf32>
    %21 = arith.mulf %20, %19 : vector<16x128xf32>
    %cst_13 = arith.constant 5.000000e-01 : f32
    %22 = vector.broadcast %cst_13 : f32 to vector<16x128xf32>
    %23 = arith.addf %21, %22 : vector<16x128xf32>
    %c0_14 = arith.constant 0 : index
    %c0_15 = arith.constant 0 : index
    %24 = vector.load %arg9[%c0_14, %c0_15] : memref<16x128xf32, #tpu.memory_space<vmem>>, vector<16x128xf32>
    %25 = arith.mulf %23, %24 : vector<16x128xf32>
    %cst_16 = arith.constant 5.000000e-01 : f32
    %26 = vector.broadcast %cst_16 : f32 to vector<16x128xf32>
    %27 = arith.mulf %26, %13 : vector<16x128xf32>
    %28 = math.tanh %27 : vector<16x128xf32>
    %cst_17 = arith.constant 5.000000e-01 : f32
    %29 = vector.broadcast %cst_17 : f32 to vector<16x128xf32>
    %30 = arith.mulf %29, %28 : vector<16x128xf32>
    %cst_18 = arith.constant 5.000000e-01 : f32
    %31 = vector.broadcast %cst_18 : f32 to vector<16x128xf32>
    %32 = arith.addf %30, %31 : vector<16x128xf32>
    %33 = math.tanh %14 : vector<16x128xf32>
    %34 = arith.mulf %32, %33 : vector<16x128xf32>
    %35 = arith.addf %25, %34 : vector<16x128xf32>
    %cst_19 = arith.constant 5.000000e-01 : f32
    %36 = vector.broadcast %cst_19 : f32 to vector<16x128xf32>
    %37 = arith.mulf %36, %16 : vector<16x128xf32>
    %38 = math.tanh %37 : vector<16x128xf32>
    %cst_20 = arith.constant 5.000000e-01 : f32
    %39 = vector.broadcast %cst_20 : f32 to vector<16x128xf32>
    %40 = arith.mulf %39, %38 : vector<16x128xf32>
    %cst_21 = arith.constant 5.000000e-01 : f32
    %41 = vector.broadcast %cst_21 : f32 to vector<16x128xf32>
    %42 = arith.addf %40, %41 : vector<16x128xf32>
    %43 = arith.mulf %42, %35 : vector<16x128xf32>
    %c0_22 = arith.constant 0 : index
    %c0_23 = arith.constant 0 : index
    %44 = vector.load %arg9[%c0_22, %c0_23] : memref<16x128xf32, #tpu.memory_space<vmem>>, vector<16x128xf32>
    tpu.vector_store %arg9[%c0_22, %c0_23], %35 {strides = array<i32>} : memref<16x128xf32, #tpu.memory_space<vmem>>, vector<16x128xf32>,
    %45 = arith.truncf %43 : vector<16x128xf32> to vector<16x128xbf16>
    %c0_24 = arith.constant 0 : index
    %c128 = arith.constant 128 : index
    %46 = vector.load %arg10[%c0_24, %c128] : memref<16x256xbf16, #tpu.memory_space<vmem>>, vector<16x128xbf16>
    tpu.vector_store %arg10[%c0_24, %c128], %45 {strides = array<i32>} : memref<16x256xbf16, #tpu.memory_space<vmem>>, vector<16x128xbf16>,
    %47 = arith.index_cast %c0_i32_2 : i32 to index
    %c0_25 = arith.constant 0 : index
    %c0_26 = arith.constant 0 : index
    %48 = vector.load %arg7[%47, %c0_25, %c0_26] : memref<8x16x128xf32, #tpu.memory_space<vmem>>, vector<1x16x128xf32>
    %49 = vector.shape_cast %48 : vector<1x16x128xf32> to vector<16x128xf32>
    %50 = vector.shape_cast %43 : vector<16x128xf32> to vector<1x16x128xf32>
    tpu.vector_store %arg7[%47, %c0_25, %c0_26], %50 {strides = array<i32>} : memref<8x16x128xf32, #tpu.memory_space<vmem>>, vector<1x16x128xf32>,
    %c1_i32 = arith.constant 1 : i32
    %51 = arith.index_cast %c1_i32 : i32 to index
    %c0_27 = arith.constant 0 : index
    %c0_28 = arith.constant 0 : index
    %52 = vector.load %arg2[%51, %c0_27, %c0_28] : memref<8x16x128xbf16, #tpu.memory_space<vmem>>, vector<1x16x128xbf16>
    %53 = vector.shape_cast %52 : vector<1x16x128xbf16> to vector<16x128xbf16>
    %c0_29 = arith.constant 0 : index
    %c0_30 = arith.constant 0 : index
    %54 = vector.load %arg10[%c0_29, %c0_30] : memref<16x256xbf16, #tpu.memory_space<vmem>>, vector<16x128xbf16>
    tpu.vector_store %arg10[%c0_29, %c0_30], %53 {strides = array<i32>} : memref<16x256xbf16, #tpu.memory_space<vmem>>, vector<16x128xbf16>,
    %c0_31 = arith.constant 0 : index
    %c0_32 = arith.constant 0 : index
    %55 = vector.load %arg10[%c0_31, %c0_32] : memref<16x256xbf16, #tpu.memory_space<vmem>>, vector<16x256xbf16>
    %c0_33 = arith.constant 0 : index
    %c0_34 = arith.constant 0 : index
    %56 = vector.load %arg5[%c0_33, %c0_34] : memref<256x512xbf16, #tpu.memory_space<vmem>>, vector<256x512xbf16>
    %cst_35 = arith.constant dense<0.000000e+00> : vector<16x512xf32>
    %57 = tpu.matmul %55, %56, %cst_35 {dimension_numbers = #tpu.dot_dimension_numbers<[1], [0], [0], [1], [0, 0, 1, 1], [], []>} : vector<16x256xbf16>, vector<256x512xbf16>, vector<16x512xf32> -> vector<16x512xf32>
    %58 = vector.broadcast %3 : vector<1x512xf32> to vector<16x512xf32>
    %59 = arith.addf %57, %58 : vector<16x512xf32>
    %60 = vector.extract_strided_slice %59 {offsets = [0, 0], sizes = [16, 128], strides = [1, 1]} : vector<16x512xf32> to vector<16x128xf32>
    %61 = vector.extract_strided_slice %59 {offsets = [0, 128], sizes = [16, 128], strides = [1, 1]} : vector<16x512xf32> to vector<16x128xf32>
    %62 = vector.extract_strided_slice %59 {offsets = [0, 256], sizes = [16, 128], strides = [1, 1]} : vector<16x512xf32> to vector<16x128xf32>
    %63 = vector.extract_strided_slice %59 {offsets = [0, 384], sizes = [16, 128], strides = [1, 1]} : vector<16x512xf32> to vector<16x128xf32>
    %cst_36 = arith.constant 5.000000e-01 : f32
    %64 = vector.broadcast %cst_36 : f32 to vector<16x128xf32>
    %65 = arith.mulf %64, %62 : vector<16x128xf32>
    %66 = math.tanh %65 : vector<16x128xf32>
    %cst_37 = arith.constant 5.000000e-01 : f32
    %67 = vector.broadcast %cst_37 : f32 to vector<16x128xf32>
    %68 = arith.mulf %67, %66 : vector<16x128xf32>
    %cst_38 = arith.constant 5.000000e-01 : f32
    %69 = vector.broadcast %cst_38 : f32 to vector<16x128xf32>
    %70 = arith.addf %68, %69 : vector<16x128xf32>
    %c0_39 = arith.constant 0 : index
    %c0_40 = arith.constant 0 : index
    %71 = vector.load %arg9[%c0_39, %c0_40] : memref<16x128xf32, #tpu.memory_space<vmem>>, vector<16x128xf32>
    %72 = arith.mulf %70, %71 : vector<16x128xf32>
    %cst_41 = arith.constant 5.000000e-01 : f32
    %73 = vector.broadcast %cst_41 : f32 to vector<16x128xf32>
    %74 = arith.mulf %73, %60 : vector<16x128xf32>
    %75 = math.tanh %74 : vector<16x128xf32>
    %cst_42 = arith.constant 5.000000e-01 : f32
    %76 = vector.broadcast %cst_42 : f32 to vector<16x128xf32>
    %77 = arith.mulf %76, %75 : vector<16x128xf32>
    %cst_43 = arith.constant 5.000000e-01 : f32
    %78 = vector.broadcast %cst_43 : f32 to vector<16x128xf32>
    %79 = arith.addf %77, %78 : vector<16x128xf32>
    %80 = math.tanh %61 : vector<16x128xf32>
    %81 = arith.mulf %79, %80 : vector<16x128xf32>
    %82 = arith.addf %72, %81 : vector<16x128xf32>
    %cst_44 = arith.constant 5.000000e-01 : f32
    %83 = vector.broadcast %cst_44 : f32 to vector<16x128xf32>
    %84 = arith.mulf %83, %63 : vector<16x128xf32>
    %85 = math.tanh %84 : vector<16x128xf32>
    %cst_45 = arith.constant 5.000000e-01 : f32
    %86 = vector.broadcast %cst_45 : f32 to vector<16x128xf32>
    %87 = arith.mulf %86, %85 : vector<16x128xf32>
    %cst_46 = arith.constant 5.000000e-01 : f32
    %88 = vector.broadcast %cst_46 : f32 to vector<16x128xf32>
    %89 = arith.addf %87, %88 : vector<16x128xf32>
    %90 = arith.mulf %89, %82 : vector<16x128xf32>
    %c0_47 = arith.constant 0 : index
    %c0_48 = arith.constant 0 : index
    %91 = vector.load %arg9[%c0_47, %c0_48] : memref<16x128xf32, #tpu.memory_space<vmem>>, vector<16x128xf32>
    tpu.vector_store %arg9[%c0_47, %c0_48], %82 {strides = array<i32>} : memref<16x128xf32, #tpu.memory_space<vmem>>, vector<16x128xf32>,
    %92 = arith.truncf %90 : vector<16x128xf32> to vector<16x128xbf16>
    %c0_49 = arith.constant 0 : index
    %c128_50 = arith.constant 128 : index
    %93 = vector.load %arg10[%c0_49, %c128_50] : memref<16x256xbf16, #tpu.memory_space<vmem>>, vector<16x128xbf16>
    tpu.vector_store %arg10[%c0_49, %c128_50], %92 {strides = array<i32>} : memref<16x256xbf16, #tpu.memory_space<vmem>>, vector<16x128xbf16>,
    %94 = arith.index_cast %c1_i32 : i32 to index
    %c0_51 = arith.constant 0 : index
    %c0_52 = arith.constant 0 : index
    %95 = vector.load %arg7[%94, %c0_51, %c0_52] : memref<8x16x128xf32, #tpu.memory_space<vmem>>, vector<1x16x128xf32>
    %96 = vector.shape_cast %95 : vector<1x16x128xf32> to vector<16x128xf32>
    %97 = vector.shape_cast %90 : vector<16x128xf32> to vector<1x16x128xf32>
    tpu.vector_store %arg7[%94, %c0_51, %c0_52], %97 {strides = array<i32>} : memref<8x16x128xf32, #tpu.memory_space<vmem>>, vector<1x16x128xf32>,
    %c2_i32 = arith.constant 2 : i32
    %98 = arith.index_cast %c2_i32 : i32 to index
    %c0_53 = arith.constant 0 : index
    %c0_54 = arith.constant 0 : index
    %99 = vector.load %arg2[%98, %c0_53, %c0_54] : memref<8x16x128xbf16, #tpu.memory_space<vmem>>, vector<1x16x128xbf16>
    %100 = vector.shape_cast %99 : vector<1x16x128xbf16> to vector<16x128xbf16>
    %c0_55 = arith.constant 0 : index
    %c0_56 = arith.constant 0 : index
    %101 = vector.load %arg10[%c0_55, %c0_56] : memref<16x256xbf16, #tpu.memory_space<vmem>>, vector<16x128xbf16>
    tpu.vector_store %arg10[%c0_55, %c0_56], %100 {strides = array<i32>} : memref<16x256xbf16, #tpu.memory_space<vmem>>, vector<16x128xbf16>,
    %c0_57 = arith.constant 0 : index
    %c0_58 = arith.constant 0 : index
    %102 = vector.load %arg10[%c0_57, %c0_58] : memref<16x256xbf16, #tpu.memory_space<vmem>>, vector<16x256xbf16>
    %c0_59 = arith.constant 0 : index
    %c0_60 = arith.constant 0 : index
    %103 = vector.load %arg5[%c0_59, %c0_60] : memref<256x512xbf16, #tpu.memory_space<vmem>>, vector<256x512xbf16>
    %cst_61 = arith.constant dense<0.000000e+00> : vector<16x512xf32>
    %104 = tpu.matmul %102, %103, %cst_61 {dimension_numbers = #tpu.dot_dimension_numbers<[1], [0], [0], [1], [0, 0, 1, 1], [], []>} : vector<16x256xbf16>, vector<256x512xbf16>, vector<16x512xf32> -> vector<16x512xf32>
    %105 = vector.broadcast %3 : vector<1x512xf32> to vector<16x512xf32>
    %106 = arith.addf %104, %105 : vector<16x512xf32>
    %107 = vector.extract_strided_slice %106 {offsets = [0, 0], sizes = [16, 128], strides = [1, 1]} : vector<16x512xf32> to vector<16x128xf32>
    %108 = vector.extract_strided_slice %106 {offsets = [0, 128], sizes = [16, 128], strides = [1, 1]} : vector<16x512xf32> to vector<16x128xf32>
    %109 = vector.extract_strided_slice %106 {offsets = [0, 256], sizes = [16, 128], strides = [1, 1]} : vector<16x512xf32> to vector<16x128xf32>
    %110 = vector.extract_strided_slice %106 {offsets = [0, 384], sizes = [16, 128], strides = [1, 1]} : vector<16x512xf32> to vector<16x128xf32>
    %cst_62 = arith.constant 5.000000e-01 : f32
    %111 = vector.broadcast %cst_62 : f32 to vector<16x128xf32>
    %112 = arith.mulf %111, %109 : vector<16x128xf32>
    %113 = math.tanh %112 : vector<16x128xf32>
    %cst_63 = arith.constant 5.000000e-01 : f32
    %114 = vector.broadcast %cst_63 : f32 to vector<16x128xf32>
    %115 = arith.mulf %114, %113 : vector<16x128xf32>
    %cst_64 = arith.constant 5.000000e-01 : f32
    %116 = vector.broadcast %cst_64 : f32 to vector<16x128xf32>
    %117 = arith.addf %115, %116 : vector<16x128xf32>
    %c0_65 = arith.constant 0 : index
    %c0_66 = arith.constant 0 : index
    %118 = vector.load %arg9[%c0_65, %c0_66] : memref<16x128xf32, #tpu.memory_space<vmem>>, vector<16x128xf32>
    %119 = arith.mulf %117, %118 : vector<16x128xf32>
    %cst_67 = arith.constant 5.000000e-01 : f32
    %120 = vector.broadcast %cst_67 : f32 to vector<16x128xf32>
    %121 = arith.mulf %120, %107 : vector<16x128xf32>
    %122 = math.tanh %121 : vector<16x128xf32>
    %cst_68 = arith.constant 5.000000e-01 : f32
    %123 = vector.broadcast %cst_68 : f32 to vector<16x128xf32>
    %124 = arith.mulf %123, %122 : vector<16x128xf32>
    %cst_69 = arith.constant 5.000000e-01 : f32
    %125 = vector.broadcast %cst_69 : f32 to vector<16x128xf32>
    %126 = arith.addf %124, %125 : vector<16x128xf32>
    %127 = math.tanh %108 : vector<16x128xf32>
    %128 = arith.mulf %126, %127 : vector<16x128xf32>
    %129 = arith.addf %119, %128 : vector<16x128xf32>
    %cst_70 = arith.constant 5.000000e-01 : f32
    %130 = vector.broadcast %cst_70 : f32 to vector<16x128xf32>
    %131 = arith.mulf %130, %110 : vector<16x128xf32>
    %132 = math.tanh %131 : vector<16x128xf32>
    %cst_71 = arith.constant 5.000000e-01 : f32
    %133 = vector.broadcast %cst_71 : f32 to vector<16x128xf32>
    %134 = arith.mulf %133, %132 : vector<16x128xf32>
    %cst_72 = arith.constant 5.000000e-01 : f32
    %135 = vector.broadcast %cst_72 : f32 to vector<16x128xf32>
    %136 = arith.addf %134, %135 : vector<16x128xf32>
    %137 = arith.mulf %136, %129 : vector<16x128xf32>
    %c0_73 = arith.constant 0 : index
    %c0_74 = arith.constant 0 : index
    %138 = vector.load %arg9[%c0_73, %c0_74] : memref<16x128xf32, #tpu.memory_space<vmem>>, vector<16x128xf32>
    tpu.vector_store %arg9[%c0_73, %c0_74], %129 {strides = array<i32>} : memref<16x128xf32, #tpu.memory_space<vmem>>, vector<16x128xf32>,
    %139 = arith.truncf %137 : vector<16x128xf32> to vector<16x128xbf16>
    %c0_75 = arith.constant 0 : index
    %c128_76 = arith.constant 128 : index
    %140 = vector.load %arg10[%c0_75, %c128_76] : memref<16x256xbf16, #tpu.memory_space<vmem>>, vector<16x128xbf16>
    tpu.vector_store %arg10[%c0_75, %c128_76], %139 {strides = array<i32>} : memref<16x256xbf16, #tpu.memory_space<vmem>>, vector<16x128xbf16>,
    %141 = arith.index_cast %c2_i32 : i32 to index
    %c0_77 = arith.constant 0 : index
    %c0_78 = arith.constant 0 : index
    %142 = vector.load %arg7[%141, %c0_77, %c0_78] : memref<8x16x128xf32, #tpu.memory_space<vmem>>, vector<1x16x128xf32>
    %143 = vector.shape_cast %142 : vector<1x16x128xf32> to vector<16x128xf32>
    %144 = vector.shape_cast %137 : vector<16x128xf32> to vector<1x16x128xf32>
    tpu.vector_store %arg7[%141, %c0_77, %c0_78], %144 {strides = array<i32>} : memref<8x16x128xf32, #tpu.memory_space<vmem>>, vector<1x16x128xf32>,
    %c3_i32 = arith.constant 3 : i32
    %145 = arith.index_cast %c3_i32 : i32 to index
    %c0_79 = arith.constant 0 : index
    %c0_80 = arith.constant 0 : index
    %146 = vector.load %arg2[%145, %c0_79, %c0_80] : memref<8x16x128xbf16, #tpu.memory_space<vmem>>, vector<1x16x128xbf16>
    %147 = vector.shape_cast %146 : vector<1x16x128xbf16> to vector<16x128xbf16>
    %c0_81 = arith.constant 0 : index
    %c0_82 = arith.constant 0 : index
    %148 = vector.load %arg10[%c0_81, %c0_82] : memref<16x256xbf16, #tpu.memory_space<vmem>>, vector<16x128xbf16>
    tpu.vector_store %arg10[%c0_81, %c0_82], %147 {strides = array<i32>} : memref<16x256xbf16, #tpu.memory_space<vmem>>, vector<16x128xbf16>,
    %c0_83 = arith.constant 0 : index
    %c0_84 = arith.constant 0 : index
    %149 = vector.load %arg10[%c0_83, %c0_84] : memref<16x256xbf16, #tpu.memory_space<vmem>>, vector<16x256xbf16>
    %c0_85 = arith.constant 0 : index
    %c0_86 = arith.constant 0 : index
    %150 = vector.load %arg5[%c0_85, %c0_86] : memref<256x512xbf16, #tpu.memory_space<vmem>>, vector<256x512xbf16>
    %cst_87 = arith.constant dense<0.000000e+00> : vector<16x512xf32>
    %151 = tpu.matmul %149, %150, %cst_87 {dimension_numbers = #tpu.dot_dimension_numbers<[1], [0], [0], [1], [0, 0, 1, 1], [], []>} : vector<16x256xbf16>, vector<256x512xbf16>, vector<16x512xf32> -> vector<16x512xf32>
    %152 = vector.broadcast %3 : vector<1x512xf32> to vector<16x512xf32>
    %153 = arith.addf %151, %152 : vector<16x512xf32>
    %154 = vector.extract_strided_slice %153 {offsets = [0, 0], sizes = [16, 128], strides = [1, 1]} : vector<16x512xf32> to vector<16x128xf32>
    %155 = vector.extract_strided_slice %153 {offsets = [0, 128], sizes = [16, 128], strides = [1, 1]} : vector<16x512xf32> to vector<16x128xf32>
    %156 = vector.extract_strided_slice %153 {offsets = [0, 256], sizes = [16, 128], strides = [1, 1]} : vector<16x512xf32> to vector<16x128xf32>
    %157 = vector.extract_strided_slice %153 {offsets = [0, 384], sizes = [16, 128], strides = [1, 1]} : vector<16x512xf32> to vector<16x128xf32>
    %cst_88 = arith.constant 5.000000e-01 : f32
    %158 = vector.broadcast %cst_88 : f32 to vector<16x128xf32>
    %159 = arith.mulf %158, %156 : vector<16x128xf32>
    %160 = math.tanh %159 : vector<16x128xf32>
    %cst_89 = arith.constant 5.000000e-01 : f32
    %161 = vector.broadcast %cst_89 : f32 to vector<16x128xf32>
    %162 = arith.mulf %161, %160 : vector<16x128xf32>
    %cst_90 = arith.constant 5.000000e-01 : f32
    %163 = vector.broadcast %cst_90 : f32 to vector<16x128xf32>
    %164 = arith.addf %162, %163 : vector<16x128xf32>
    %c0_91 = arith.constant 0 : index
    %c0_92 = arith.constant 0 : index
    %165 = vector.load %arg9[%c0_91, %c0_92] : memref<16x128xf32, #tpu.memory_space<vmem>>, vector<16x128xf32>
    %166 = arith.mulf %164, %165 : vector<16x128xf32>
    %cst_93 = arith.constant 5.000000e-01 : f32
    %167 = vector.broadcast %cst_93 : f32 to vector<16x128xf32>
    %168 = arith.mulf %167, %154 : vector<16x128xf32>
    %169 = math.tanh %168 : vector<16x128xf32>
    %cst_94 = arith.constant 5.000000e-01 : f32
    %170 = vector.broadcast %cst_94 : f32 to vector<16x128xf32>
    %171 = arith.mulf %170, %169 : vector<16x128xf32>
    %cst_95 = arith.constant 5.000000e-01 : f32
    %172 = vector.broadcast %cst_95 : f32 to vector<16x128xf32>
    %173 = arith.addf %171, %172 : vector<16x128xf32>
    %174 = math.tanh %155 : vector<16x128xf32>
    %175 = arith.mulf %173, %174 : vector<16x128xf32>
    %176 = arith.addf %166, %175 : vector<16x128xf32>
    %cst_96 = arith.constant 5.000000e-01 : f32
    %177 = vector.broadcast %cst_96 : f32 to vector<16x128xf32>
    %178 = arith.mulf %177, %157 : vector<16x128xf32>
    %179 = math.tanh %178 : vector<16x128xf32>
    %cst_97 = arith.constant 5.000000e-01 : f32
    %180 = vector.broadcast %cst_97 : f32 to vector<16x128xf32>
    %181 = arith.mulf %180, %179 : vector<16x128xf32>
    %cst_98 = arith.constant 5.000000e-01 : f32
    %182 = vector.broadcast %cst_98 : f32 to vector<16x128xf32>
    %183 = arith.addf %181, %182 : vector<16x128xf32>
    %184 = arith.mulf %183, %176 : vector<16x128xf32>
    %c0_99 = arith.constant 0 : index
    %c0_100 = arith.constant 0 : index
    %185 = vector.load %arg9[%c0_99, %c0_100] : memref<16x128xf32, #tpu.memory_space<vmem>>, vector<16x128xf32>
    tpu.vector_store %arg9[%c0_99, %c0_100], %176 {strides = array<i32>} : memref<16x128xf32, #tpu.memory_space<vmem>>, vector<16x128xf32>,
    %186 = arith.truncf %184 : vector<16x128xf32> to vector<16x128xbf16>
    %c0_101 = arith.constant 0 : index
    %c128_102 = arith.constant 128 : index
    %187 = vector.load %arg10[%c0_101, %c128_102] : memref<16x256xbf16, #tpu.memory_space<vmem>>, vector<16x128xbf16>
    tpu.vector_store %arg10[%c0_101, %c128_102], %186 {strides = array<i32>} : memref<16x256xbf16, #tpu.memory_space<vmem>>, vector<16x128xbf16>,
    %188 = arith.index_cast %c3_i32 : i32 to index
    %c0_103 = arith.constant 0 : index
    %c0_104 = arith.constant 0 : index
    %189 = vector.load %arg7[%188, %c0_103, %c0_104] : memref<8x16x128xf32, #tpu.memory_space<vmem>>, vector<1x16x128xf32>
    %190 = vector.shape_cast %189 : vector<1x16x128xf32> to vector<16x128xf32>
    %191 = vector.shape_cast %184 : vector<16x128xf32> to vector<1x16x128xf32>
    tpu.vector_store %arg7[%188, %c0_103, %c0_104], %191 {strides = array<i32>} : memref<8x16x128xf32, #tpu.memory_space<vmem>>, vector<1x16x128xf32>,
    %c4_i32 = arith.constant 4 : i32
    %192 = arith.index_cast %c4_i32 : i32 to index
    %c0_105 = arith.constant 0 : index
    %c0_106 = arith.constant 0 : index
    %193 = vector.load %arg2[%192, %c0_105, %c0_106] : memref<8x16x128xbf16, #tpu.memory_space<vmem>>, vector<1x16x128xbf16>
    %194 = vector.shape_cast %193 : vector<1x16x128xbf16> to vector<16x128xbf16>
    %c0_107 = arith.constant 0 : index
    %c0_108 = arith.constant 0 : index
    %195 = vector.load %arg10[%c0_107, %c0_108] : memref<16x256xbf16, #tpu.memory_space<vmem>>, vector<16x128xbf16>
    tpu.vector_store %arg10[%c0_107, %c0_108], %194 {strides = array<i32>} : memref<16x256xbf16, #tpu.memory_space<vmem>>, vector<16x128xbf16>,
    %c0_109 = arith.constant 0 : index
    %c0_110 = arith.constant 0 : index
    %196 = vector.load %arg10[%c0_109, %c0_110] : memref<16x256xbf16, #tpu.memory_space<vmem>>, vector<16x256xbf16>
    %c0_111 = arith.constant 0 : index
    %c0_112 = arith.constant 0 : index
    %197 = vector.load %arg5[%c0_111, %c0_112] : memref<256x512xbf16, #tpu.memory_space<vmem>>, vector<256x512xbf16>
    %cst_113 = arith.constant dense<0.000000e+00> : vector<16x512xf32>
    %198 = tpu.matmul %196, %197, %cst_113 {dimension_numbers = #tpu.dot_dimension_numbers<[1], [0], [0], [1], [0, 0, 1, 1], [], []>} : vector<16x256xbf16>, vector<256x512xbf16>, vector<16x512xf32> -> vector<16x512xf32>
    %199 = vector.broadcast %3 : vector<1x512xf32> to vector<16x512xf32>
    %200 = arith.addf %198, %199 : vector<16x512xf32>
    %201 = vector.extract_strided_slice %200 {offsets = [0, 0], sizes = [16, 128], strides = [1, 1]} : vector<16x512xf32> to vector<16x128xf32>
    %202 = vector.extract_strided_slice %200 {offsets = [0, 128], sizes = [16, 128], strides = [1, 1]} : vector<16x512xf32> to vector<16x128xf32>
    %203 = vector.extract_strided_slice %200 {offsets = [0, 256], sizes = [16, 128], strides = [1, 1]} : vector<16x512xf32> to vector<16x128xf32>
    %204 = vector.extract_strided_slice %200 {offsets = [0, 384], sizes = [16, 128], strides = [1, 1]} : vector<16x512xf32> to vector<16x128xf32>
    %cst_114 = arith.constant 5.000000e-01 : f32
    %205 = vector.broadcast %cst_114 : f32 to vector<16x128xf32>
    %206 = arith.mulf %205, %203 : vector<16x128xf32>
    %207 = math.tanh %206 : vector<16x128xf32>
    %cst_115 = arith.constant 5.000000e-01 : f32
    %208 = vector.broadcast %cst_115 : f32 to vector<16x128xf32>
    %209 = arith.mulf %208, %207 : vector<16x128xf32>
    %cst_116 = arith.constant 5.000000e-01 : f32
    %210 = vector.broadcast %cst_116 : f32 to vector<16x128xf32>
    %211 = arith.addf %209, %210 : vector<16x128xf32>
    %c0_117 = arith.constant 0 : index
    %c0_118 = arith.constant 0 : index
    %212 = vector.load %arg9[%c0_117, %c0_118] : memref<16x128xf32, #tpu.memory_space<vmem>>, vector<16x128xf32>
    %213 = arith.mulf %211, %212 : vector<16x128xf32>
    %cst_119 = arith.constant 5.000000e-01 : f32
    %214 = vector.broadcast %cst_119 : f32 to vector<16x128xf32>
    %215 = arith.mulf %214, %201 : vector<16x128xf32>
    %216 = math.tanh %215 : vector<16x128xf32>
    %cst_120 = arith.constant 5.000000e-01 : f32
    %217 = vector.broadcast %cst_120 : f32 to vector<16x128xf32>
    %218 = arith.mulf %217, %216 : vector<16x128xf32>
    %cst_121 = arith.constant 5.000000e-01 : f32
    %219 = vector.broadcast %cst_121 : f32 to vector<16x128xf32>
    %220 = arith.addf %218, %219 : vector<16x128xf32>
    %221 = math.tanh %202 : vector<16x128xf32>
    %222 = arith.mulf %220, %221 : vector<16x128xf32>
    %223 = arith.addf %213, %222 : vector<16x128xf32>
    %cst_122 = arith.constant 5.000000e-01 : f32
    %224 = vector.broadcast %cst_122 : f32 to vector<16x128xf32>
    %225 = arith.mulf %224, %204 : vector<16x128xf32>
    %226 = math.tanh %225 : vector<16x128xf32>
    %cst_123 = arith.constant 5.000000e-01 : f32
    %227 = vector.broadcast %cst_123 : f32 to vector<16x128xf32>
    %228 = arith.mulf %227, %226 : vector<16x128xf32>
    %cst_124 = arith.constant 5.000000e-01 : f32
    %229 = vector.broadcast %cst_124 : f32 to vector<16x128xf32>
    %230 = arith.addf %228, %229 : vector<16x128xf32>
    %231 = arith.mulf %230, %223 : vector<16x128xf32>
    %c0_125 = arith.constant 0 : index
    %c0_126 = arith.constant 0 : index
    %232 = vector.load %arg9[%c0_125, %c0_126] : memref<16x128xf32, #tpu.memory_space<vmem>>, vector<16x128xf32>
    tpu.vector_store %arg9[%c0_125, %c0_126], %223 {strides = array<i32>} : memref<16x128xf32, #tpu.memory_space<vmem>>, vector<16x128xf32>,
    %233 = arith.truncf %231 : vector<16x128xf32> to vector<16x128xbf16>
    %c0_127 = arith.constant 0 : index
    %c128_128 = arith.constant 128 : index
    %234 = vector.load %arg10[%c0_127, %c128_128] : memref<16x256xbf16, #tpu.memory_space<vmem>>, vector<16x128xbf16>
    tpu.vector_store %arg10[%c0_127, %c128_128], %233 {strides = array<i32>} : memref<16x256xbf16, #tpu.memory_space<vmem>>, vector<16x128xbf16>,
    %235 = arith.index_cast %c4_i32 : i32 to index
    %c0_129 = arith.constant 0 : index
    %c0_130 = arith.constant 0 : index
    %236 = vector.load %arg7[%235, %c0_129, %c0_130] : memref<8x16x128xf32, #tpu.memory_space<vmem>>, vector<1x16x128xf32>
    %237 = vector.shape_cast %236 : vector<1x16x128xf32> to vector<16x128xf32>
    %238 = vector.shape_cast %231 : vector<16x128xf32> to vector<1x16x128xf32>
    tpu.vector_store %arg7[%235, %c0_129, %c0_130], %238 {strides = array<i32>} : memref<8x16x128xf32, #tpu.memory_space<vmem>>, vector<1x16x128xf32>,
    %c5_i32 = arith.constant 5 : i32
    %239 = arith.index_cast %c5_i32 : i32 to index
    %c0_131 = arith.constant 0 : index
    %c0_132 = arith.constant 0 : index
    %240 = vector.load %arg2[%239, %c0_131, %c0_132] : memref<8x16x128xbf16, #tpu.memory_space<vmem>>, vector<1x16x128xbf16>
    %241 = vector.shape_cast %240 : vector<1x16x128xbf16> to vector<16x128xbf16>
    %c0_133 = arith.constant 0 : index
    %c0_134 = arith.constant 0 : index
    %242 = vector.load %arg10[%c0_133, %c0_134] : memref<16x256xbf16, #tpu.memory_space<vmem>>, vector<16x128xbf16>
    tpu.vector_store %arg10[%c0_133, %c0_134], %241 {strides = array<i32>} : memref<16x256xbf16, #tpu.memory_space<vmem>>, vector<16x128xbf16>,
    %c0_135 = arith.constant 0 : index
    %c0_136 = arith.constant 0 : index
    %243 = vector.load %arg10[%c0_135, %c0_136] : memref<16x256xbf16, #tpu.memory_space<vmem>>, vector<16x256xbf16>
    %c0_137 = arith.constant 0 : index
    %c0_138 = arith.constant 0 : index
    %244 = vector.load %arg5[%c0_137, %c0_138] : memref<256x512xbf16, #tpu.memory_space<vmem>>, vector<256x512xbf16>
    %cst_139 = arith.constant dense<0.000000e+00> : vector<16x512xf32>
    %245 = tpu.matmul %243, %244, %cst_139 {dimension_numbers = #tpu.dot_dimension_numbers<[1], [0], [0], [1], [0, 0, 1, 1], [], []>} : vector<16x256xbf16>, vector<256x512xbf16>, vector<16x512xf32> -> vector<16x512xf32>
    %246 = vector.broadcast %3 : vector<1x512xf32> to vector<16x512xf32>
    %247 = arith.addf %245, %246 : vector<16x512xf32>
    %248 = vector.extract_strided_slice %247 {offsets = [0, 0], sizes = [16, 128], strides = [1, 1]} : vector<16x512xf32> to vector<16x128xf32>
    %249 = vector.extract_strided_slice %247 {offsets = [0, 128], sizes = [16, 128], strides = [1, 1]} : vector<16x512xf32> to vector<16x128xf32>
    %250 = vector.extract_strided_slice %247 {offsets = [0, 256], sizes = [16, 128], strides = [1, 1]} : vector<16x512xf32> to vector<16x128xf32>
    %251 = vector.extract_strided_slice %247 {offsets = [0, 384], sizes = [16, 128], strides = [1, 1]} : vector<16x512xf32> to vector<16x128xf32>
    %cst_140 = arith.constant 5.000000e-01 : f32
    %252 = vector.broadcast %cst_140 : f32 to vector<16x128xf32>
    %253 = arith.mulf %252, %250 : vector<16x128xf32>
    %254 = math.tanh %253 : vector<16x128xf32>
    %cst_141 = arith.constant 5.000000e-01 : f32
    %255 = vector.broadcast %cst_141 : f32 to vector<16x128xf32>
    %256 = arith.mulf %255, %254 : vector<16x128xf32>
    %cst_142 = arith.constant 5.000000e-01 : f32
    %257 = vector.broadcast %cst_142 : f32 to vector<16x128xf32>
    %258 = arith.addf %256, %257 : vector<16x128xf32>
    %c0_143 = arith.constant 0 : index
    %c0_144 = arith.constant 0 : index
    %259 = vector.load %arg9[%c0_143, %c0_144] : memref<16x128xf32, #tpu.memory_space<vmem>>, vector<16x128xf32>
    %260 = arith.mulf %258, %259 : vector<16x128xf32>
    %cst_145 = arith.constant 5.000000e-01 : f32
    %261 = vector.broadcast %cst_145 : f32 to vector<16x128xf32>
    %262 = arith.mulf %261, %248 : vector<16x128xf32>
    %263 = math.tanh %262 : vector<16x128xf32>
    %cst_146 = arith.constant 5.000000e-01 : f32
    %264 = vector.broadcast %cst_146 : f32 to vector<16x128xf32>
    %265 = arith.mulf %264, %263 : vector<16x128xf32>
    %cst_147 = arith.constant 5.000000e-01 : f32
    %266 = vector.broadcast %cst_147 : f32 to vector<16x128xf32>
    %267 = arith.addf %265, %266 : vector<16x128xf32>
    %268 = math.tanh %249 : vector<16x128xf32>
    %269 = arith.mulf %267, %268 : vector<16x128xf32>
    %270 = arith.addf %260, %269 : vector<16x128xf32>
    %cst_148 = arith.constant 5.000000e-01 : f32
    %271 = vector.broadcast %cst_148 : f32 to vector<16x128xf32>
    %272 = arith.mulf %271, %251 : vector<16x128xf32>
    %273 = math.tanh %272 : vector<16x128xf32>
    %cst_149 = arith.constant 5.000000e-01 : f32
    %274 = vector.broadcast %cst_149 : f32 to vector<16x128xf32>
    %275 = arith.mulf %274, %273 : vector<16x128xf32>
    %cst_150 = arith.constant 5.000000e-01 : f32
    %276 = vector.broadcast %cst_150 : f32 to vector<16x128xf32>
    %277 = arith.addf %275, %276 : vector<16x128xf32>
    %278 = arith.mulf %277, %270 : vector<16x128xf32>
    %c0_151 = arith.constant 0 : index
    %c0_152 = arith.constant 0 : index
    %279 = vector.load %arg9[%c0_151, %c0_152] : memref<16x128xf32, #tpu.memory_space<vmem>>, vector<16x128xf32>
    tpu.vector_store %arg9[%c0_151, %c0_152], %270 {strides = array<i32>} : memref<16x128xf32, #tpu.memory_space<vmem>>, vector<16x128xf32>,
    %280 = arith.truncf %278 : vector<16x128xf32> to vector<16x128xbf16>
    %c0_153 = arith.constant 0 : index
    %c128_154 = arith.constant 128 : index
    %281 = vector.load %arg10[%c0_153, %c128_154] : memref<16x256xbf16, #tpu.memory_space<vmem>>, vector<16x128xbf16>
    tpu.vector_store %arg10[%c0_153, %c128_154], %280 {strides = array<i32>} : memref<16x256xbf16, #tpu.memory_space<vmem>>, vector<16x128xbf16>,
    %282 = arith.index_cast %c5_i32 : i32 to index
    %c0_155 = arith.constant 0 : index
    %c0_156 = arith.constant 0 : index
    %283 = vector.load %arg7[%282, %c0_155, %c0_156] : memref<8x16x128xf32, #tpu.memory_space<vmem>>, vector<1x16x128xf32>
    %284 = vector.shape_cast %283 : vector<1x16x128xf32> to vector<16x128xf32>
    %285 = vector.shape_cast %278 : vector<16x128xf32> to vector<1x16x128xf32>
    tpu.vector_store %arg7[%282, %c0_155, %c0_156], %285 {strides = array<i32>} : memref<8x16x128xf32, #tpu.memory_space<vmem>>, vector<1x16x128xf32>,
    %c6_i32 = arith.constant 6 : i32
    %286 = arith.index_cast %c6_i32 : i32 to index
    %c0_157 = arith.constant 0 : index
    %c0_158 = arith.constant 0 : index
    %287 = vector.load %arg2[%286, %c0_157, %c0_158] : memref<8x16x128xbf16, #tpu.memory_space<vmem>>, vector<1x16x128xbf16>
    %288 = vector.shape_cast %287 : vector<1x16x128xbf16> to vector<16x128xbf16>
    %c0_159 = arith.constant 0 : index
    %c0_160 = arith.constant 0 : index
    %289 = vector.load %arg10[%c0_159, %c0_160] : memref<16x256xbf16, #tpu.memory_space<vmem>>, vector<16x128xbf16>
    tpu.vector_store %arg10[%c0_159, %c0_160], %288 {strides = array<i32>} : memref<16x256xbf16, #tpu.memory_space<vmem>>, vector<16x128xbf16>,
    %c0_161 = arith.constant 0 : index
    %c0_162 = arith.constant 0 : index
    %290 = vector.load %arg10[%c0_161, %c0_162] : memref<16x256xbf16, #tpu.memory_space<vmem>>, vector<16x256xbf16>
    %c0_163 = arith.constant 0 : index
    %c0_164 = arith.constant 0 : index
    %291 = vector.load %arg5[%c0_163, %c0_164] : memref<256x512xbf16, #tpu.memory_space<vmem>>, vector<256x512xbf16>
    %cst_165 = arith.constant dense<0.000000e+00> : vector<16x512xf32>
    %292 = tpu.matmul %290, %291, %cst_165 {dimension_numbers = #tpu.dot_dimension_numbers<[1], [0], [0], [1], [0, 0, 1, 1], [], []>} : vector<16x256xbf16>, vector<256x512xbf16>, vector<16x512xf32> -> vector<16x512xf32>
    %293 = vector.broadcast %3 : vector<1x512xf32> to vector<16x512xf32>
    %294 = arith.addf %292, %293 : vector<16x512xf32>
    %295 = vector.extract_strided_slice %294 {offsets = [0, 0], sizes = [16, 128], strides = [1, 1]} : vector<16x512xf32> to vector<16x128xf32>
    %296 = vector.extract_strided_slice %294 {offsets = [0, 128], sizes = [16, 128], strides = [1, 1]} : vector<16x512xf32> to vector<16x128xf32>
    %297 = vector.extract_strided_slice %294 {offsets = [0, 256], sizes = [16, 128], strides = [1, 1]} : vector<16x512xf32> to vector<16x128xf32>
    %298 = vector.extract_strided_slice %294 {offsets = [0, 384], sizes = [16, 128], strides = [1, 1]} : vector<16x512xf32> to vector<16x128xf32>
    %cst_166 = arith.constant 5.000000e-01 : f32
    %299 = vector.broadcast %cst_166 : f32 to vector<16x128xf32>
    %300 = arith.mulf %299, %297 : vector<16x128xf32>
    %301 = math.tanh %300 : vector<16x128xf32>
    %cst_167 = arith.constant 5.000000e-01 : f32
    %302 = vector.broadcast %cst_167 : f32 to vector<16x128xf32>
    %303 = arith.mulf %302, %301 : vector<16x128xf32>
    %cst_168 = arith.constant 5.000000e-01 : f32
    %304 = vector.broadcast %cst_168 : f32 to vector<16x128xf32>
    %305 = arith.addf %303, %304 : vector<16x128xf32>
    %c0_169 = arith.constant 0 : index
    %c0_170 = arith.constant 0 : index
    %306 = vector.load %arg9[%c0_169, %c0_170] : memref<16x128xf32, #tpu.memory_space<vmem>>, vector<16x128xf32>
    %307 = arith.mulf %305, %306 : vector<16x128xf32>
    %cst_171 = arith.constant 5.000000e-01 : f32
    %308 = vector.broadcast %cst_171 : f32 to vector<16x128xf32>
    %309 = arith.mulf %308, %295 : vector<16x128xf32>
    %310 = math.tanh %309 : vector<16x128xf32>
    %cst_172 = arith.constant 5.000000e-01 : f32
    %311 = vector.broadcast %cst_172 : f32 to vector<16x128xf32>
    %312 = arith.mulf %311, %310 : vector<16x128xf32>
    %cst_173 = arith.constant 5.000000e-01 : f32
    %313 = vector.broadcast %cst_173 : f32 to vector<16x128xf32>
    %314 = arith.addf %312, %313 : vector<16x128xf32>
    %315 = math.tanh %296 : vector<16x128xf32>
    %316 = arith.mulf %314, %315 : vector<16x128xf32>
    %317 = arith.addf %307, %316 : vector<16x128xf32>
    %cst_174 = arith.constant 5.000000e-01 : f32
    %318 = vector.broadcast %cst_174 : f32 to vector<16x128xf32>
    %319 = arith.mulf %318, %298 : vector<16x128xf32>
    %320 = math.tanh %319 : vector<16x128xf32>
    %cst_175 = arith.constant 5.000000e-01 : f32
    %321 = vector.broadcast %cst_175 : f32 to vector<16x128xf32>
    %322 = arith.mulf %321, %320 : vector<16x128xf32>
    %cst_176 = arith.constant 5.000000e-01 : f32
    %323 = vector.broadcast %cst_176 : f32 to vector<16x128xf32>
    %324 = arith.addf %322, %323 : vector<16x128xf32>
    %325 = arith.mulf %324, %317 : vector<16x128xf32>
    %c0_177 = arith.constant 0 : index
    %c0_178 = arith.constant 0 : index
    %326 = vector.load %arg9[%c0_177, %c0_178] : memref<16x128xf32, #tpu.memory_space<vmem>>, vector<16x128xf32>
    tpu.vector_store %arg9[%c0_177, %c0_178], %317 {strides = array<i32>} : memref<16x128xf32, #tpu.memory_space<vmem>>, vector<16x128xf32>,
    %327 = arith.truncf %325 : vector<16x128xf32> to vector<16x128xbf16>
    %c0_179 = arith.constant 0 : index
    %c128_180 = arith.constant 128 : index
    %328 = vector.load %arg10[%c0_179, %c128_180] : memref<16x256xbf16, #tpu.memory_space<vmem>>, vector<16x128xbf16>
    tpu.vector_store %arg10[%c0_179, %c128_180], %327 {strides = array<i32>} : memref<16x256xbf16, #tpu.memory_space<vmem>>, vector<16x128xbf16>,
    %329 = arith.index_cast %c6_i32 : i32 to index
    %c0_181 = arith.constant 0 : index
    %c0_182 = arith.constant 0 : index
    %330 = vector.load %arg7[%329, %c0_181, %c0_182] : memref<8x16x128xf32, #tpu.memory_space<vmem>>, vector<1x16x128xf32>
    %331 = vector.shape_cast %330 : vector<1x16x128xf32> to vector<16x128xf32>
    %332 = vector.shape_cast %325 : vector<16x128xf32> to vector<1x16x128xf32>
    tpu.vector_store %arg7[%329, %c0_181, %c0_182], %332 {strides = array<i32>} : memref<8x16x128xf32, #tpu.memory_space<vmem>>, vector<1x16x128xf32>,
    %c7_i32 = arith.constant 7 : i32
    %333 = arith.index_cast %c7_i32 : i32 to index
    %c0_183 = arith.constant 0 : index
    %c0_184 = arith.constant 0 : index
    %334 = vector.load %arg2[%333, %c0_183, %c0_184] : memref<8x16x128xbf16, #tpu.memory_space<vmem>>, vector<1x16x128xbf16>
    %335 = vector.shape_cast %334 : vector<1x16x128xbf16> to vector<16x128xbf16>
    %c0_185 = arith.constant 0 : index
    %c0_186 = arith.constant 0 : index
    %336 = vector.load %arg10[%c0_185, %c0_186] : memref<16x256xbf16, #tpu.memory_space<vmem>>, vector<16x128xbf16>
    tpu.vector_store %arg10[%c0_185, %c0_186], %335 {strides = array<i32>} : memref<16x256xbf16, #tpu.memory_space<vmem>>, vector<16x128xbf16>,
    %c0_187 = arith.constant 0 : index
    %c0_188 = arith.constant 0 : index
    %337 = vector.load %arg10[%c0_187, %c0_188] : memref<16x256xbf16, #tpu.memory_space<vmem>>, vector<16x256xbf16>
    %c0_189 = arith.constant 0 : index
    %c0_190 = arith.constant 0 : index
    %338 = vector.load %arg5[%c0_189, %c0_190] : memref<256x512xbf16, #tpu.memory_space<vmem>>, vector<256x512xbf16>
    %cst_191 = arith.constant dense<0.000000e+00> : vector<16x512xf32>
    %339 = tpu.matmul %337, %338, %cst_191 {dimension_numbers = #tpu.dot_dimension_numbers<[1], [0], [0], [1], [0, 0, 1, 1], [], []>} : vector<16x256xbf16>, vector<256x512xbf16>, vector<16x512xf32> -> vector<16x512xf32>
    %340 = vector.broadcast %3 : vector<1x512xf32> to vector<16x512xf32>
    %341 = arith.addf %339, %340 : vector<16x512xf32>
    %342 = vector.extract_strided_slice %341 {offsets = [0, 0], sizes = [16, 128], strides = [1, 1]} : vector<16x512xf32> to vector<16x128xf32>
    %343 = vector.extract_strided_slice %341 {offsets = [0, 128], sizes = [16, 128], strides = [1, 1]} : vector<16x512xf32> to vector<16x128xf32>
    %344 = vector.extract_strided_slice %341 {offsets = [0, 256], sizes = [16, 128], strides = [1, 1]} : vector<16x512xf32> to vector<16x128xf32>
    %345 = vector.extract_strided_slice %341 {offsets = [0, 384], sizes = [16, 128], strides = [1, 1]} : vector<16x512xf32> to vector<16x128xf32>
    %cst_192 = arith.constant 5.000000e-01 : f32
    %346 = vector.broadcast %cst_192 : f32 to vector<16x128xf32>
    %347 = arith.mulf %346, %344 : vector<16x128xf32>
    %348 = math.tanh %347 : vector<16x128xf32>
    %cst_193 = arith.constant 5.000000e-01 : f32
    %349 = vector.broadcast %cst_193 : f32 to vector<16x128xf32>
    %350 = arith.mulf %349, %348 : vector<16x128xf32>
    %cst_194 = arith.constant 5.000000e-01 : f32
    %351 = vector.broadcast %cst_194 : f32 to vector<16x128xf32>
    %352 = arith.addf %350, %351 : vector<16x128xf32>
    %c0_195 = arith.constant 0 : index
    %c0_196 = arith.constant 0 : index
    %353 = vector.load %arg9[%c0_195, %c0_196] : memref<16x128xf32, #tpu.memory_space<vmem>>, vector<16x128xf32>
    %354 = arith.mulf %352, %353 : vector<16x128xf32>
    %cst_197 = arith.constant 5.000000e-01 : f32
    %355 = vector.broadcast %cst_197 : f32 to vector<16x128xf32>
    %356 = arith.mulf %355, %342 : vector<16x128xf32>
    %357 = math.tanh %356 : vector<16x128xf32>
    %cst_198 = arith.constant 5.000000e-01 : f32
    %358 = vector.broadcast %cst_198 : f32 to vector<16x128xf32>
    %359 = arith.mulf %358, %357 : vector<16x128xf32>
    %cst_199 = arith.constant 5.000000e-01 : f32
    %360 = vector.broadcast %cst_199 : f32 to vector<16x128xf32>
    %361 = arith.addf %359, %360 : vector<16x128xf32>
    %362 = math.tanh %343 : vector<16x128xf32>
    %363 = arith.mulf %361, %362 : vector<16x128xf32>
    %364 = arith.addf %354, %363 : vector<16x128xf32>
    %cst_200 = arith.constant 5.000000e-01 : f32
    %365 = vector.broadcast %cst_200 : f32 to vector<16x128xf32>
    %366 = arith.mulf %365, %345 : vector<16x128xf32>
    %367 = math.tanh %366 : vector<16x128xf32>
    %cst_201 = arith.constant 5.000000e-01 : f32
    %368 = vector.broadcast %cst_201 : f32 to vector<16x128xf32>
    %369 = arith.mulf %368, %367 : vector<16x128xf32>
    %cst_202 = arith.constant 5.000000e-01 : f32
    %370 = vector.broadcast %cst_202 : f32 to vector<16x128xf32>
    %371 = arith.addf %369, %370 : vector<16x128xf32>
    %372 = arith.mulf %371, %364 : vector<16x128xf32>
    %c0_203 = arith.constant 0 : index
    %c0_204 = arith.constant 0 : index
    %373 = vector.load %arg9[%c0_203, %c0_204] : memref<16x128xf32, #tpu.memory_space<vmem>>, vector<16x128xf32>
    tpu.vector_store %arg9[%c0_203, %c0_204], %364 {strides = array<i32>} : memref<16x128xf32, #tpu.memory_space<vmem>>, vector<16x128xf32>,
    %374 = arith.truncf %372 : vector<16x128xf32> to vector<16x128xbf16>
    %c0_205 = arith.constant 0 : index
    %c128_206 = arith.constant 128 : index
    %375 = vector.load %arg10[%c0_205, %c128_206] : memref<16x256xbf16, #tpu.memory_space<vmem>>, vector<16x128xbf16>
    tpu.vector_store %arg10[%c0_205, %c128_206], %374 {strides = array<i32>} : memref<16x256xbf16, #tpu.memory_space<vmem>>, vector<16x128xbf16>,
    %376 = arith.index_cast %c7_i32 : i32 to index
    %c0_207 = arith.constant 0 : index
    %c0_208 = arith.constant 0 : index
    %377 = vector.load %arg7[%376, %c0_207, %c0_208] : memref<8x16x128xf32, #tpu.memory_space<vmem>>, vector<1x16x128xf32>
    %378 = vector.shape_cast %377 : vector<1x16x128xf32> to vector<16x128xf32>
    %379 = vector.shape_cast %372 : vector<16x128xf32> to vector<1x16x128xf32>
    tpu.vector_store %arg7[%376, %c0_207, %c0_208], %379 {strides = array<i32>} : memref<8x16x128xf32, #tpu.memory_space<vmem>>, vector<1x16x128xf32>,
    %c8_i32 = arith.constant 8 : i32
    %c1_i32_209 = arith.constant 1 : i32
    %380 = arith.cmpi eq, %arg1, %c1_i32_209 : i32
    %381 = arith.extui %380 : i1 to i32
    %c0_i32_210 = arith.constant 0 : i32
    %382 = arith.cmpi ne, %381, %c0_i32_210 : i32
    scf.if %382 {
      %c0_211 = arith.constant 0 : index
      %c0_212 = arith.constant 0 : index
      %383 = vector.load %arg9[%c0_211, %c0_212] : memref<16x128xf32, #tpu.memory_space<vmem>>, vector<16x128xf32>
      %c0_213 = arith.constant 0 : index
      %c0_214 = arith.constant 0 : index
      %384 = vector.load %arg8[%c0_213, %c0_214] : memref<16x128xf32, #tpu.memory_space<vmem>>, vector<16x128xf32>
      tpu.vector_store %arg8[%c0_213, %c0_214], %383 {strides = array<i32>} : memref<16x128xf32, #tpu.memory_space<vmem>>, vector<16x128xf32>,
    } else {
    }
    return
  }
  func.func @transform_0(%arg0: i32, %arg1: i32) -> (i32, i32, i32) {
    %c0_i32 = arith.constant 0 : i32
    %c0_i32_0 = arith.constant 0 : i32
    return %arg1, %arg0, %c0_i32 : i32, i32, i32
  }
  func.func @transform_1(%arg0: i32, %arg1: i32) -> (i32, i32) {
    %c0_i32 = arith.constant 0 : i32
    %c0_i32_0 = arith.constant 0 : i32
    return %arg0, %c0_i32 : i32, i32
  }
  func.func @transform_2(%arg0: i32, %arg1: i32) -> (i32, i32) {
    %c0_i32 = arith.constant 0 : i32
    %c0_i32_0 = arith.constant 0 : i32
    return %arg0, %c0_i32 : i32, i32
  }
  func.func @transform_3(%arg0: i32, %arg1: i32) -> (i32, i32) {
    %c0_i32 = arith.constant 0 : i32
    %c0_i32_0 = arith.constant 0 : i32
    %c0_i32_1 = arith.constant 0 : i32
    return %c0_i32, %c0_i32_0 : i32, i32
  }
  func.func @transform_4(%arg0: i32, %arg1: i32) -> (i32, i32) {
    %c0_i32 = arith.constant 0 : i32
    %c0_i32_0 = arith.constant 0 : i32
    %c0_i32_1 = arith.constant 0 : i32
    return %c0_i32, %c0_i32_0 : i32, i32
  }
  func.func @transform_5(%arg0: i32, %arg1: i32) -> (i32, i32, i32) {
    %c0_i32 = arith.constant 0 : i32
    %c0_i32_0 = arith.constant 0 : i32
    return %arg1, %arg0, %c0_i32 : i32, i32, i32
  }
  func.func @transform_6(%arg0: i32, %arg1: i32) -> (i32, i32) {
    %c0_i32 = arith.constant 0 : i32
    %c0_i32_0 = arith.constant 0 : i32
    return %arg0, %c0_i32 : i32, i32
  }
}

</mosaic_0001>

<bundles_post_ra>
// kernel: tpu_custom_call.1
= control target key start
LH: loop header
LB: loop body
LE: loop exit
PB: predicated region body
PF: predicated region fallthrough
CT: control target
= control target key end

     0   :  { %s7951_s0 = inlined_call_operand.hbm [shape: bf16[16,32,128], index: 0, kind: input, shape index: {}]   ;;  %s7952_s1 = inlined_call_operand.hbm [shape: f32[32,128], index: 1, kind: input, shape index: {}]   ;;  %s7953_s2 = inlined_call_operand.hbm [shape: f32[32,128], index: 2, kind: input, shape index: {}]   ;;  %s7954_s3 = inlined_call_operand.hbm [shape: bf16[256,512], index: 3, kind: input, shape index: {}]   ;;  %s7955_s4 = inlined_call_operand.vmem [shape: f32[1,512], index: 4, kind: input, shape index: {}]   ;;  %s7956_s5 = inlined_call_operand.hbm [shape: f32[16,32,128], index: 5, kind: output, shape index: {0}]   ;;  %s7957_s6 = inlined_call_operand.hbm [shape: f32[32,128], index: 6, kind: output, shape index: {1}]  }
   0x1   :  { %7994 = sst [smem:[#allocation44_spill]] %s7954_s3 }
   0x2   :  { %7995 = sst [smem:[#allocation45_spill]] %s7956_s5 }
   0x3   :  { %7996 = sst [smem:[#allocation46_spill]] %s7957_s6 }
   0x4   :  { %12 = vsyncpa [#allocation5], 0 }
   0x5   :  { %14 = vsyncpa [#allocation5 + $0x1], 0 }
   0x6   :  { %15 = vsyncpa [#allocation8], 0 }
   0x7   :  { %17 = vsyncpa [#allocation8 + $0x1], 0 }
   0x8   :  { %18 = vsyncpa [#allocation11], 0 }
   0x9   :  { %19 = vsyncpa [#allocation6], 0 }
   0xa   :  { %21 = vsyncpa [#allocation6 + $0x1], 0 }
   0xb   :  { %22 = vsyncpa [#allocation14], 0 }
   0xc   :  { %24 = vsyncpa [#allocation14 + $0x1], 0  ;;  %s6459_s21 = smov 0   ;;  %s6461_s22 = smov 0  }
   0xd   :  { %s6463_s23 = smov 0   ;;  %s6465_s24 = smov 0  }
   0xe   :  { %s6467_s25 = smov 0   ;;  %s6469_s26 = smov 0  }
   0xf   :  { %s6471_s27 = smov 0   ;;  %s6473_s28 = smov 0  }
  0x10   :  { %s6475_s29 = smov 0   ;;  %s6477_s30 = smov 0  }
  0x11   :  { %s6479_s7 = smov 0  }
  0x12 LB: > { %7997 = sst [smem:[#allocation25_spill]] %s6359_s21  ;;  %s6515_s8 = sadd.s32 4294967295, %s6399_s7   ;;  %s6399_s7 = sphi %s6479_s7, %s30_s7   ;;  %s6395_s30 = sphi %s6477_s30, %s8081_s30   ;;  %s6391_s29 = sphi %s6475_s29, %s8073_s29   ;;  %s6387_s28 = sphi %s6473_s28, %s8080_s28   ;;  %s6383_s27 = sphi %s6471_s27, %s8072_s27   ;;  %s6379_s26 = sphi %s6469_s26, %s8071_s26   ;;  %s6375_s25 = sphi %s6467_s25, %s8079_s25   ;;  %s6371_s24 = sphi %s6465_s24, %s8078_s24   ;;  %s6367_s23 = sphi %s6463_s23, %s8077_s23   ;;  %s6363_s22 = sphi %s6461_s22, %s8076_s22   ;;  %s6359_s21 = sphi %s6459_s21, %s8075_s21  }
  0x13   : > { %7998 = sst [smem:[#allocation26_spill]] %s6371_s24  ;;  %s4907_s9 = sadd.s32 4294967294, %s6399_s7  }
  0x14   : > { %7999 = sst [smem:[#allocation27_spill]] %s6379_s26  ;;  %s39_s10 = sadd.s32 1, %s6391_s29 }
  0x15   : > { %8000 = sst [smem:[#allocation28_spill]] %s6387_s28  ;;  %s42_s11 = sadd.s32 1, %s6395_s30 }
  0x16   : > { %8001 = sst [smem:[#allocation29_spill]] %s6391_s29  ;;  %p40_p0 = scmp.ge.s32.totalorder %s39_s10, 2 }
  0x17   : > { %s51_s12 = sadd.s32 1, %s6379_s26  ;;  %p58_p1 = scmp.ne.s32.totalorder %s6379_s26, %s6375_s25 }
  0x18   : > { %p59_p2 = scmp.eq.s32.totalorder %s6399_s7, 0  ;;  %s8083_s10 = smov (%p40_p0, %s39_s10), 0 }
  0x19   : > { %8002 = sst [smem:[#allocation30_spill]] %s8083_s10  ;;  %s8085_s11 = smov (!%p40_p0, %s42_s11), %s6395_s30 }
  0x1a   : > { %s46_s13 = ssub.s32 %s6391_s29, %s8083_s10  ;;  %p6534_p3 = por %p59_p2, %p58_p1 }
  0x1b   : > { %p44_p4 = scmp.ge.s32.totalorder %s8085_s11, 2  ;;  %p7960_p5 = scmp.ne.s32.totalorder %s6375_s25, %s6371_s24 }
  0x1c   : > { %s8003_s14 = scalar_select %p6534_p3, 1, 0 }
  0x1d   : > { %p7962_p6 = scmp.eq.s32.totalorder %s6515_s8, 0  ;;  %s77_s15 = sadd.s32 1, %s6367_s23 }
  0x1e   : > { %s8087_s11 = smov (%p44_p4, %s8085_s11), 0  ;;  %p84_p8 = scmp.ne.s32.totalorder %s6367_s23, %s6363_s22 }
  0x1f   : > { %8004 = sst [smem:[#allocation31_spill]] %s8087_s11  ;;  %p6549_p7 = por %p7962_p6, %p7960_p5 }
  0x20   : > { %s47_s17 = ssub.s32 %s6395_s30, %s8087_s11  ;;  %p90_p9 = scmp.ne.s32.totalorder %s6363_s22, %s6359_s21 }
  0x21   : > { %s8005_s16 = scalar_select %p6549_p7, 1, 0 }
  0x22   : > { %s48_s18 = sor.u32 %s47_s17, %s46_s13  ;;  %p75_p10 = scmp.eq.s32.totalorder %s47_s17, 0 }
  0x23   : > { %p49_p11 = scmp.eq.s32.totalorder %s48_s18, 0  ;;  %p6564_p12 = por %p84_p8, %p59_p2 }
  0x24   : > { %s6569_s20 = scalar_select %p75_p10, %s6367_s23, %s77_s15  }
  0x25   : > { %s8006_s19 = scalar_select %p6564_p12, 1, 0 }
  0x26   : > { %8007 = sst [smem:[#allocation32_spill]] %s6569_s20  ;;  %p6579_p13 = por %p90_p9, %p7962_p6 }
  0x27   : > { %s6572_s10 = scalar_select %p49_p11, %s6379_s26, %s51_s12  }
  0x28   : > { %s8009_s11 = scalar_select %p6579_p13, 1, 0 }
  0x29   : > { %8008 = sst [smem:[#allocation33_spill]] %s6572_s10  ;;  %p184_p0 = scmp.eq.s32.totalorder %s6515_s8, 3 }
  0x2a   : > { %p190_p4 = scmp.eq.s32.totalorder %s4907_s9, 3  ;;  %p4908_p5 = scmp.ge.s32.totalorder %s6399_s7, 1 }
  0x2b   : > { %p6588_p7 = por %p184_p0, %p58_p1  ;;  %p6595_p2 = por %p184_p0, %p84_p8 }
  0x2c   : > { %p8014_p10 = scmp.ne.s32.totalorder %s6375_s25, %s6371_s24  ;;  %p6609_p6 = por %p190_p4, %p90_p9 }
  0x2d   : > { %s8010_s13 = scalar_select %p6588_p7, 1, 0 }
  0x2e   : > { %s8012_s15 = scalar_select %p6595_p2, 1, 0 }
  0x2f   : > { %8011 = sst [smem:[#allocation34_spill]] %s8010_s13  ;;  %p6602_p11 = por %p190_p4, %p8014_p10 }
  0x30   : > { %8013 = sst [smem:[#allocation35_spill]] %s8012_s15  ;;  %p223_p13 = scmp.lt.s32.totalorder %s6399_s7, 5 }
  0x31   : > { %s8015_s12 = scalar_select %p6602_p11, 1, 0 }
  0x32   : > { %s8017_s17 = scalar_select %p6609_p6, 1, 0 }
  0x33   : > { %8016 = sst [smem:[#allocation36_spill]] %s8015_s12  ;;  %p6614_p1 = pnand %p4908_p5, %p223_p13 }
  0x34   : > { %8018 = sst [smem:[#allocation37_spill]] %s8017_s17  ;;  %s6401_s18 = smov [#allocation10]  }
  0x35   : > { %s8019_s9 = scalar_select %p6614_p1, 1, 0 }
  0x36   : > { %s235_s10 = sshll.u32 %s6401_s18, 4  ;;  %p5523_p8 = pneg %p6614_p1  ;;  %s236_s10 = int_to_ptr.vmem [resolvable:$true] %s235_s10 }
  0x37   : > { %p8020_p0 = scmp.eq.s32.totalorder %s6515_s8, 0  ;;  %s8022_s3 = sld [smem:[#allocation44_spill]] }
  0x39   : > { %p6622_p10 = pnand %p5523_p8, %p8020_p0 }
  0x3b   : > { %p6183_p9 = pneg %p6622_p10 }
  0x3d   : > { %s6181_s17 = scalar_lea.hbm %s8022_s3, 8192 }
  0x3e   : > { %p6182_p5 = scmp.ne.s32.totalorder %s8022_s3, %s6181_s17  ;;  %p6188_p8 = scmp.lt.u32.totalorder %s6181_s17, %s8022_s3 }
  0x40   : > { %p6184_p13 = pnand %p6183_p9, %p6182_p5 }
  0x42   : > { %p6185_p4 = pneg %p6184_p13 }
  0x44   : > { %p6190_p0 = pnand %p6188_p8, %p6185_p4 }
  0x46   : > { %6193 = shalt.err (!%p6190_p0)
}
  0x47   : > { %s6194_s5 = scalar_lea.vmem %s236_s10, 8192  ;;  %p6202_p7 = scmp.lt.s32.totalorder %s236_s10, %s236_s10 }
  0x48   : > { %p6195_p6 = scmp.ne.s32.totalorder %s236_s10, %s6194_s5  ;;  %p6203_p1 = scmp.lt.s32.totalorder %s6194_s5, %s6194_s5 }
  0x4a   : > { %p6197_p11 = pnand %p6195_p6, %p6183_p9  ;;  %p6204_p12 = por %p6203_p1, %p6202_p7 }
  0x4c   : > { %p6198_p2 = pneg %p6197_p11 }
  0x4e   : > { %p6205_p3 = pnand %p6204_p12, %p6198_p2 }
  0x50   : > { %6208 = shalt.err (!%p6205_p3)
}
  0x51   : > { %s6402_s6 = smov 256   ;;  %s6403_s21 = smov 16  }
  0x52   : > { %5526 = dma.hbm_to_vmem [thread:$0]  (!%p6622_p10), %s8022_s3, 8192, %s236_s10, [#allocation11], %s6402_s6, %s6402_s6, %s6403_s21  }
  0x53   : > { %p4910_p5 = scmp.ge.s32.totalorder %s6399_s7, 4 }
  0x55   : > { %248 = sbr.rel (%p4910_p5) target bundleno = 157 (0x9d), region = 24 }
  0x5c   : > { %s252_s5 = sand.u32 1, %s6379_s26   ;;  %s4913_s15 = sshll.u32 %s6395_s30, 1 }
  0x5d   : > { %s4911_s17 = sshll.u32 %s252_s5, 6  ;;  %s5491_s18 = sshll.u32 %s6391_s29, 5 }
  0x5e   : > { %s263_s20 = sadd.s32 %s5491_s18, %s4913_s15  ;;  %s256_s13 = scalar_lea.vmem [#allocation4], %s4911_s17 }
  0x5f   : > { %s278_s24 = sshll.u32 %s256_s13, 4  ;;  %s4915_s10 = sshll.u32 %s263_s20, 6  ;;  %s279_s24 = int_to_ptr.vmem [resolvable:$true] %s278_s24 }
  0x60   : > { %p8023_p3 = scmp.ne.s32.totalorder %s8003_s14, 0  ;;  %s6404_s21 = smov 256  }
  0x61   : > { %s6405_s3 = smov 128   ;;  %s6406_s26 = smov 2  }
  0x62   : > { %s5498_s6 = scalar_select %p8023_p3, [#allocation0], [#allocation19] }
  0x63   : > { %5499 = sst [smem:[#allocation16]] (%p8023_p3), %s6404_s21  ;;  %s6407_s15 = smov 64  }
  0x64   : > { %s270_s12 = sld [smem:[%s5498_s6]]   ;;  %s265_s18 = scalar_lea.hbm %s7951_s0, %s4915_s10 }
  0x65   : > { %5500 = sst [smem:[#allocation16 + $0x1]] (%p8023_p3), %s6405_s3  ;;  %s6408_s20 = smov 4  }
  0x66   : > { %5501 = sst [smem:[#allocation16 + $0x2]] (%p8023_p3), %s6406_s26  ;;  %s253_s29 = scalar_lea.sflag [#allocation5], %s252_s5 }
  0x67   : > { %5502 = sst [smem:[#allocation16 + $0x3]] (%p8023_p3), %s6407_s15  ;;  %s6409_s3 = smov [#allocation15]  }
  0x68   : > { %5503 = sst [smem:[#allocation16 + $0x4]] (%p8023_p3), %s6407_s15  ;;  %s301_s26 = sand.u32 1, %s6399_s7  }
  0x69   : > { %5504 = sst [smem:[#allocation16 + $0x5]] (%p8023_p3), %s6408_s20  ;;  %s303_s28 = sand.u32 1, %s6367_s23  }
  0x6a   : > { %s4916_s6 = sshll.u32 %s270_s12, 26  ;;  %s6667_s13 = sshll.u32 %s303_s28, 4 }
  0x6b   : > { %s4917_s21 = sadd.s32 134217728, %s4916_s6  ;;  %s5492_s10 = sshll.u32 %s6395_s30, 8 }
  0x6c   : > { %5505 = dma.general (%p8023_p3), %s265_s18, 1024, %s279_s24, %s253_s29, %s6409_s3, [#allocation16], %s4917_s21, 0  }
  0x6d   : > { %s6675_s12 = scalar_lea.hbm %s7952_s1, %s5492_s10  ;;  %s305_s29 = scalar_lea.vmem [#allocation7], %s6667_s13 }
  0x6e   : > { %s312_s14 = sshll.u32 %s305_s29, 4  ;;  %s6680_s5 = scalar_lea.sflag [#allocation8], %s301_s26  ;;  %s6678_s14 = int_to_ptr.vmem [resolvable:$true] %s312_s14 }
  0x6f   : > { %s6209_s28 = scalar_lea.hbm %s6675_s12, 256  ;;  %p8024_p7 = scmp.ne.s32.totalorder %s8006_s19, 0 }
  0x70   : > { %p6210_p6 = scmp.ne.s32.totalorder %s6675_s12, %s6209_s28  ;;  %s6213_s20 = scalar_lea.hbm %s7952_s1, 512 }
  0x71   : > { %p6214_p11 = scmp.lt.u32.totalorder %s6675_s12, %s7952_s1  ;;  %p6215_p1 = scmp.lt.u32.totalorder %s6213_s20, %s6209_s28 }
  0x72   : > { %p6211_p12 = pnand %p6210_p6, %p8024_p7  ;;  %p6217_p9 = scmp.lt.u32.totalorder %s6209_s28, %s6675_s12 }
  0x73   : > { %p6216_p10 = por %p6215_p1, %p6214_p11 }
  0x74   : > { %p6212_p2 = pneg %p6211_p12 }
  0x75   : > { %p6218_p13 = por %p6217_p9, %p6216_p10 }
  0x77   : > { %p6219_p4 = pnand %p6218_p13, %p6212_p2 }
  0x79   : > { %6222 = shalt.err (!%p6219_p4)
}
  0x7a   : > { %s6223_s3 = scalar_lea.vmem %s6678_s14, 256  ;;  %s6410_s26 = smov [#allocation7]  }
  0x7b   : > { %p6224_p8 = scmp.ne.s32.totalorder %s6678_s14, %s6223_s3  ;;  %s6227_s15 = sshll.u32 %s6410_s26, 4  ;;  %s6228_s15 = int_to_ptr.vmem [resolvable:$false] %s6227_s15 }
  0x7c   : > { %s6229_s17 = scalar_lea.vmem %s6228_s15, 512  ;;  %p6230_p3 = scmp.lt.s32.totalorder %s6678_s14, %s6228_s15 }
  0x7d   : > { %p6225_p0 = pnand %p6224_p8, %p8024_p7  ;;  %p6231_p6 = scmp.lt.s32.totalorder %s6229_s17, %s6223_s3 }
  0x7f   : > { %p6226_p5 = pneg %p6225_p0  ;;  %p6232_p12 = por %p6231_p6, %p6230_p3 }
  0x81   : > { %p6233_p11 = pnand %p6232_p12, %p6226_p5 }
  0x83   : > { %6236 = shalt.err (!%p6233_p11)
}
  0x84   : > { %s6411_s29 = smov 128   ;;  %s6412_s28 = smov 8  }
  0x85   : > { %5506 = dma.hbm_to_vmem [thread:$0]  (%p8024_p7), %s6675_s12, 256, %s6678_s14, %s6680_s5, %s6411_s29, %s6411_s29, %s6412_s28  }
  0x86   : > { %s6712_s20 = scalar_lea.hbm %s7953_s2, %s5492_s10  ;;  %s326_s6 = scalar_lea.vmem [#allocation9], %s6667_s13 }
  0x87   : > { %s333_s21 = sshll.u32 %s326_s6, 4  ;;  %s6237_s3 = scalar_lea.hbm %s6712_s20, 256  ;;  %s6715_s21 = int_to_ptr.vmem [resolvable:$true] %s333_s21 }
  0x88   : > { %p6238_p2 = scmp.ne.s32.totalorder %s6712_s20, %s6237_s3  ;;  %s6241_s26 = scalar_lea.hbm %s7953_s2, 512 }
  0x89   : > { %p6242_p9 = scmp.lt.u32.totalorder %s6712_s20, %s7953_s2  ;;  %p6243_p13 = scmp.lt.u32.totalorder %s6241_s26, %s6237_s3 }
  0x8a   : > { %p6239_p1 = pnand %p6238_p2, %p8024_p7  ;;  %p6245_p8 = scmp.lt.u32.totalorder %s6237_s3, %s6712_s20 }
  0x8b   : > { %p6244_p4 = por %p6243_p13, %p6242_p9 }
  0x8c   : > { %p6240_p10 = pneg %p6239_p1 }
  0x8d   : > { %p6246_p0 = por %p6245_p8, %p6244_p4 }
  0x8f   : > { %p6247_p5 = pnand %p6246_p0, %p6240_p10 }
  0x91   : > { %6250 = shalt.err (!%p6247_p5)
}
  0x92   : > { %s6251_s13 = scalar_lea.vmem %s6715_s21, 256  ;;  %s6413_s17 = smov [#allocation9]  }
  0x93   : > { %p6252_p3 = scmp.ne.s32.totalorder %s6715_s21, %s6251_s13  ;;  %s6255_s24 = sshll.u32 %s6413_s17, 4  ;;  %s6256_s24 = int_to_ptr.vmem [resolvable:$false] %s6255_s24 }
  0x94   : > { %s6257_s18 = scalar_lea.vmem %s6256_s24, 512  ;;  %p6258_p11 = scmp.lt.s32.totalorder %s6715_s21, %s6256_s24 }
  0x95   : > { %p6253_p6 = pnand %p6252_p3, %p8024_p7  ;;  %p6259_p2 = scmp.lt.s32.totalorder %s6257_s18, %s6251_s13 }
  0x97   : > { %p6254_p12 = pneg %p6253_p6  ;;  %p6260_p1 = por %p6259_p2, %p6258_p11 }
  0x99   : > { %p6261_p9 = pnand %p6260_p1, %p6254_p12 }
  0x9b   : > { %6264 = shalt.err (!%p6261_p9)
}
  0x9c   : > { %5507 = dma.hbm_to_vmem [thread:$0]  (%p8024_p7), %s6712_s20, 256, %s6715_s21, %s6680_s5, %s6411_s29, %s6411_s29, %s6412_s28  }
  0x9d PF: > { %p8025_p10 = scmp.ne.s32.totalorder %s8019_s9, 0 }
  0x9f   : > { %345 = sbr.rel (%p8025_p10) target bundleno = 2253 (0x8cd), region = 40 }
  0xa6   : > { %s6745_s6 = sand.u32 1, %s6375_s25   ;;  %p8026_p13 = scmp.ne.s32.totalorder %s8005_s16, 0 }
  0xa7   : > { %s4925_s3 = sshll.u32 %s6745_s6, 6  ;;  %s348_s12 = scalar_lea.sflag [#allocation5], %s6745_s6 }
  0xa8   : > { %s6749_s19 = scalar_lea.vmem [#allocation4], %s4925_s3 }
  0xa9   : > { %6338 = dma.done.wait (%p8026_p13), %s348_s12, 1024  }
  0xaa   : > { %6340 = vsyncadd (%p8026_p13), %s348_s12, 4294966272  ;;  %s356_s9 = sand.u32 1, %s6515_s8   ;;  %s358_s5 = sand.u32 1, %s6363_s22  }
  0xab   : > { %s4926_s29 = sshll.u32 %s358_s5, 4  ;;  %s357_s28 = scalar_lea.sflag [#allocation8], %s356_s9 }
  0xac   : > { %s360_s20 = scalar_lea.vmem [#allocation7], %s4926_s29  ;;  %p8027_p7 = scmp.ne.s32.totalorder %s8009_s11, 0 }
  0xae   : > { %6342 = dma.done.wait (%p8027_p7), %s357_s28, 512  }
  0xaf   : > { %6344 = vsyncadd (%p8027_p7), %s357_s28, 4294966784  ;;  %s369_s21 = scalar_lea.vmem [#allocation9], %s4926_s29  ;;  %p8028_p4 = scmp.eq.s32.totalorder %s6515_s8, 0 }
  0xb1   : > { %6346 = dma.done.wait (%p8028_p4), [#allocation11], 8192   ;;  %p8029_p8 = pmov %p8028_p4 }
  0xb2   : > { %s4929_s16 = sshll.u32 %s6745_s6, 7  ;;  %s6770_s26 = scalar_lea.vmem [#allocation13], %s4926_s29 }
  0xb3   : > { %6348 = vsyncadd (%p8029_p8), [#allocation11], 4294959104  ;;  %s6768_s14 = scalar_lea.vmem [#allocation12], %s4929_s16  ;;  %p4931_p0 = scmp.ne.s32.totalorder %s6383_s27, 0 }
  0xb4   : > { %v428_v0 = vld [vmem:[%s360_s20] sm:$0xff] (!%p4931_p0)  ;;  %v429_v1 = vld [vmem:[%s360_s20 + $0x8] sm:$0xff] (!%p4931_p0) }
  0xb5   : > { %427 = sbr.rel (%p4931_p0) target bundleno = 188 (0xbc), region = 60  ;;  %v432_v2 = vld [vmem:[%s369_s21] sm:$0xff] (!%p4931_p0)  ;;  %430 = vst [vmem:[#allocation2] sm:$0xff] (!%p4931_p0), %v428_v0  ;;  %431 = vst [vmem:[#allocation2 + $0x8] sm:$0xff] (!%p4931_p0), %v429_v1  ;;  %v433_v3 = vld [vmem:[%s369_s21 + $0x8] sm:$0xff] (!%p4931_p0) }
  0xb6   : > { %v434_v4 = vpack.c.bf16 (!%p4931_p0), %v433_v3, %v432_v2 }
  0xb8   : > { %435 = vst [vmem:[#allocation3 + $0x8] sm:$0xff] (!%p4931_p0), %v434_v4 }
  0xbc PF: > { %v6773_v5 = vld [vmem:[#allocation10 + $0x4] ss:$16 sps:$4 sm:$0xff]   ;;  %v6775_v6 = vld [vmem:[#allocation10 + $0xc] ss:$16 sps:$4 sm:$0xff]   ;;  %v6778_v7 = vld [vmem:[#allocation10] ss:$16 sps:$4 sm:$0xff]  }
  0xbd   : > { %853 = vmatprep.subr.bf16.mxu0 %v6773_v5  ;;  %v6780_v8 = vld [vmem:[#allocation10 + $0x8] ss:$16 sps:$4 sm:$0xff]   ;;  %896 = vmatprep.subr.bf16.mxu1 %v6775_v6  ;;  %v6783_v9 = vld [vmem:[#allocation10 + $0x24] ss:$16 sps:$4 sm:$0xff]   ;;  %v6787_v10 = vld [vmem:[#allocation10 + $0x2c] ss:$16 sps:$4 sm:$0xff]  }
  0xbe   : > { %854 = vmatpush1.bf16.msra.mxu0 %v6778_v7  ;;  %897 = vmatpush1.bf16.msra.mxu1 %v6780_v8  ;;  %v6789_v11 = vld [vmem:[#allocation10 + $0x20] ss:$16 sps:$4 sm:$0xff]   ;;  %v6792_v12 = vld [vmem:[#allocation10 + $0x28] ss:$16 sps:$4 sm:$0xff]   ;;  %v6795_v13 = vld [vmem:[#allocation10 + $0x44] ss:$16 sps:$4 sm:$0xff]  }
  0xbf   : > { %855 = vmatprep.subr.bf16.mxu0 %v6783_v9  ;;  %898 = vmatprep.subr.bf16.mxu1 %v6787_v10  ;;  %v6797_v14 = vld [vmem:[#allocation10 + $0x4c] ss:$16 sps:$4 sm:$0xff]   ;;  %v6799_v15 = vld [vmem:[#allocation10 + $0x40] ss:$16 sps:$4 sm:$0xff]   ;;  %v6801_v16 = vld [vmem:[#allocation10 + $0x48] ss:$16 sps:$4 sm:$0xff]  }
  0xc0   : > { %v6805_v17 = vld [vmem:[#allocation10 + $0x64] ss:$16 sps:$4 sm:$0xff]   ;;  %v6809_v18 = vld [vmem:[#allocation10 + $0x6c] ss:$16 sps:$4 sm:$0xff]   ;;  %v6811_v19 = vld [vmem:[#allocation10 + $0x60] ss:$16 sps:$4 sm:$0xff]  }
  0xc1   : > { %v6815_v20 = vld [vmem:[#allocation10 + $0x68] ss:$16 sps:$4 sm:$0xff]   ;;  %v6817_v21 = vld [vmem:[#allocation10 + $0x84] ss:$16 sps:$4 sm:$0xff]   ;;  %v6821_v22 = vld [vmem:[#allocation10 + $0x8c] ss:$16 sps:$4 sm:$0xff]  }
  0xc2   : > { %856 = vmatpush1.bf16.msra.mxu0 %v6789_v11  ;;  %899 = vmatpush1.bf16.msra.mxu1 %v6792_v12  ;;  %v6823_v23 = vld [vmem:[#allocation10 + $0x80] ss:$16 sps:$4 sm:$0xff]   ;;  %v6825_v24 = vld [vmem:[#allocation10 + $0x88] ss:$16 sps:$4 sm:$0xff]   ;;  %v6829_v25 = vld [vmem:[#allocation10 + $0xa4] ss:$16 sps:$4 sm:$0xff]  }
  0xc3   : > { %857 = vmatprep.subr.bf16.mxu0 %v6795_v13  ;;  %900 = vmatprep.subr.bf16.mxu1 %v6797_v14  ;;  %v6833_v26 = vld [vmem:[#allocation10 + $0xac] ss:$16 sps:$4 sm:$0xff]   ;;  %v6835_v27 = vld [vmem:[#allocation10 + $0xa0] ss:$16 sps:$4 sm:$0xff]   ;;  %v6839_v28 = vld [vmem:[#allocation10 + $0xa8] ss:$16 sps:$4 sm:$0xff]  }
  0xc4   : > { %v6841_v29 = vld [vmem:[#allocation10 + $0xc4] ss:$16 sps:$4 sm:$0xff]   ;;  %v6845_v30 = vld [vmem:[#allocation10 + $0xcc] ss:$16 sps:$4 sm:$0xff]   ;;  %v6847_v31 = vld [vmem:[#allocation10 + $0xc0] ss:$16 sps:$4 sm:$0xff]  }
  0xc5   : > { %v6849_v32 = vld [vmem:[#allocation10 + $0xc8] ss:$16 sps:$4 sm:$0xff]   ;;  %v6853_v33 = vld [vmem:[#allocation10 + $0xe4] ss:$16 sps:$4 sm:$0xff]   ;;  %v6857_v34 = vld [vmem:[#allocation10 + $0xec] ss:$16 sps:$4 sm:$0xff]  }
  0xc6   : > { %858 = vmatpush1.bf16.msra.mxu0 %v6799_v15  ;;  %901 = vmatpush1.bf16.msra.mxu1 %v6801_v16  ;;  %v6859_v35 = vld [vmem:[#allocation10 + $0xe0] ss:$16 sps:$4 sm:$0xff]   ;;  %v6863_v36 = vld [vmem:[#allocation10 + $0xe8] ss:$16 sps:$4 sm:$0xff]   ;;  %v6865_v37 = vld [vmem:[#allocation10 + $0x104] ss:$16 sps:$4 sm:$0xff]  }
  0xc7   : > { %859 = vmatprep.subr.bf16.mxu0 %v6805_v17  ;;  %902 = vmatprep.subr.bf16.mxu1 %v6809_v18  ;;  %v6869_v38 = vld [vmem:[#allocation10 + $0x10c] ss:$16 sps:$4 sm:$0xff]   ;;  %v6871_v39 = vld [vmem:[#allocation10 + $0x100] ss:$16 sps:$4 sm:$0xff]   ;;  %v6873_v40 = vld [vmem:[#allocation10 + $0x108] ss:$16 sps:$4 sm:$0xff]  }
  0xc8   : > { %v6877_v41 = vld [vmem:[#allocation10 + $0x124] ss:$16 sps:$4 sm:$0xff]   ;;  %v6881_v42 = vld [vmem:[#allocation10 + $0x12c] ss:$16 sps:$4 sm:$0xff]   ;;  %v6883_v43 = vld [vmem:[#allocation10 + $0x120] ss:$16 sps:$4 sm:$0xff]  }
  0xc9   : > { %v6887_v44 = vld [vmem:[#allocation10 + $0x128] ss:$16 sps:$4 sm:$0xff]   ;;  %v6889_v45 = vld [vmem:[#allocation10 + $0x144] ss:$16 sps:$4 sm:$0xff]   ;;  %v6893_v46 = vld [vmem:[#allocation10 + $0x14c] ss:$16 sps:$4 sm:$0xff]  }
  0xca   : > { %860 = vmatpush1.bf16.msra.mxu0 %v6811_v19  ;;  %903 = vmatpush1.bf16.msra.mxu1 %v6815_v20  ;;  %v6895_v47 = vld [vmem:[#allocation10 + $0x140] ss:$16 sps:$4 sm:$0xff]   ;;  %v6897_v48 = vld [vmem:[#allocation10 + $0x148] ss:$16 sps:$4 sm:$0xff]   ;;  %v6901_v49 = vld [vmem:[#allocation10 + $0x164] ss:$16 sps:$4 sm:$0xff]  }
  0xcb   : > { %861 = vmatprep.subr.bf16.mxu0 %v6817_v21  ;;  %904 = vmatprep.subr.bf16.mxu1 %v6821_v22  ;;  %v6905_v50 = vld [vmem:[#allocation10 + $0x16c] ss:$16 sps:$4 sm:$0xff]   ;;  %v6907_v51 = vld [vmem:[#allocation10 + $0x160] ss:$16 sps:$4 sm:$0xff]   ;;  %v6909_v53 = vld [vmem:[#allocation10 + $0x168] ss:$16 sps:$4 sm:$0xff]  }
  0xcc   : > { %v447_v52 = vld [vmem:[#allocation3 + $0x8] sm:$0xff]  ;;  %v6913_v54 = vld [vmem:[#allocation10 + $0x184] ss:$16 sps:$4 sm:$0xff]   ;;  %v6919_v56 = vld [vmem:[#allocation10 + $0x180] ss:$16 sps:$4 sm:$0xff]   ;;  %p5480_p5 = scmp.ne.s32.totalorder %s6383_s27, 1 }
  0xcd   : > { %885 = vmatprep.mubr.bf16.mxu0 %v447_v52  ;;  %928 = vmatprep.mubr.bf16.mxu1 %v447_v52  ;;  %v6917_v55 = vld [vmem:[#allocation10 + $0x18c] ss:$16 sps:$4 sm:$0xff]   ;;  %v6921_v57 = vld [vmem:[#allocation10 + $0x188] ss:$16 sps:$4 sm:$0xff]   ;;  %v6923_v58 = vld [vmem:[#allocation10 + $0x1a4] ss:$16 sps:$4 sm:$0xff]  }
  0xce   : > { %862 = vmatpush1.bf16.msra.mxu0 %v6823_v23  ;;  %905 = vmatpush1.bf16.msra.mxu1 %v6825_v24  ;;  %v6925_v59 = vld [vmem:[#allocation10 + $0x1ac] ss:$16 sps:$4 sm:$0xff]   ;;  %v6931_v60 = vld [vmem:[#allocation10 + $0x1a0] ss:$16 sps:$4 sm:$0xff]   ;;  %v6933_v61 = vld [vmem:[#allocation10 + $0x1a8] ss:$16 sps:$4 sm:$0xff]  }
  0xcf   : > { %863 = vmatprep.subr.bf16.mxu0 %v6829_v25  ;;  %906 = vmatprep.subr.bf16.mxu1 %v6833_v26  ;;  %8030 = vst [vmem:[#allocation38_spill] sm:$0xff] %v6925_v59  ;;  %v6935_v62 = vld [vmem:[#allocation10 + $0x1c4] ss:$16 sps:$4 sm:$0xff]   ;;  %v6937_v63 = vld [vmem:[#allocation10 + $0x1cc] ss:$16 sps:$4 sm:$0xff]  }
  0xd0   : > { %v6943_v0 = vld [vmem:[#allocation10 + $0x1c0] ss:$16 sps:$4 sm:$0xff]   ;;  %v6945_v1 = vld [vmem:[#allocation10 + $0x1c8] ss:$16 sps:$4 sm:$0xff]   ;;  %v6947_v2 = vld [vmem:[#allocation10 + $0x1e4] ss:$16 sps:$4 sm:$0xff]  }
  0xd1   : > { %v6949_v3 = vld [vmem:[#allocation10 + $0x1ec] ss:$16 sps:$4 sm:$0xff]   ;;  %v6955_v4 = vld [vmem:[#allocation10 + $0x1e0] ss:$16 sps:$4 sm:$0xff]   ;;  %v6957_v52 = vld [vmem:[#allocation10 + $0x1e8] ss:$16 sps:$4 sm:$0xff]  }
  0xd2   : > { %864 = vmatpush1.bf16.msra.mxu0 %v6835_v27  ;;  %907 = vmatpush1.bf16.msra.mxu1 %v6839_v28 }
  0xd3   : > { %865 = vmatprep.subr.bf16.mxu0 %v6841_v29  ;;  %908 = vmatprep.subr.bf16.mxu1 %v6845_v30 }
  0xd6   : > { %866 = vmatpush1.bf16.msra.mxu0 %v6847_v31  ;;  %909 = vmatpush1.bf16.msra.mxu1 %v6849_v32 }
  0xd7   : > { %867 = vmatprep.subr.bf16.mxu0 %v6853_v33  ;;  %910 = vmatprep.subr.bf16.mxu1 %v6857_v34 }
  0xda   : > { %868 = vmatpush1.bf16.msra.mxu0 %v6859_v35  ;;  %911 = vmatpush1.bf16.msra.mxu1 %v6863_v36 }
  0xdb   : > { %869 = vmatprep.subr.bf16.mxu0 %v6865_v37  ;;  %912 = vmatprep.subr.bf16.mxu1 %v6869_v38 }
  0xde   : > { %870 = vmatpush1.bf16.msra.mxu0 %v6871_v39  ;;  %913 = vmatpush1.bf16.msra.mxu1 %v6873_v40 }
  0xdf   : > { %871 = vmatprep.subr.bf16.mxu0 %v6877_v41  ;;  %914 = vmatprep.subr.bf16.mxu1 %v6881_v42 }
  0xe2   : > { %872 = vmatpush1.bf16.msra.mxu0 %v6883_v43  ;;  %915 = vmatpush1.bf16.msra.mxu1 %v6887_v44 }
  0xe3   : > { %873 = vmatprep.subr.bf16.mxu0 %v6889_v45  ;;  %916 = vmatprep.subr.bf16.mxu1 %v6893_v46 }
  0xe6   : > { %874 = vmatpush1.bf16.msra.mxu0 %v6895_v47  ;;  %917 = vmatpush1.bf16.msra.mxu1 %v6897_v48 }
  0xe7   : > { %875 = vmatprep.subr.bf16.mxu0 %v6901_v49  ;;  %918 = vmatprep.subr.bf16.mxu1 %v6905_v50 }
  0xea   : > { %876 = vmatpush1.bf16.msra.mxu0 %v6907_v51  ;;  %919 = vmatpush1.bf16.msra.mxu1 %v6909_v53 }
  0xeb   : > { %877 = vmatprep.subr.bf16.mxu0 %v6913_v54  ;;  %920 = vmatprep.subr.bf16.mxu1 %v6917_v55 }
  0xee   : > { %878 = vmatpush1.bf16.msra.mxu0 %v6919_v56  ;;  %921 = vmatpush1.bf16.msra.mxu1 %v6921_v57 }
  0xef   : > { %879 = vmatprep.subr.bf16.mxu0 %v6923_v58  ;;  %922 = vmatprep.subr.bf16.mxu1 %v6925_v59  ;;  %v5741_v59 = vld [vmem:[%s6749_s19] sm:$0xff]  }
  0xf2   : > { %880 = vmatpush1.bf16.msra.mxu0 %v6931_v60  ;;  %923 = vmatpush1.bf16.msra.mxu1 %v6933_v61 }
  0xf3   : > { %881 = vmatprep.subr.bf16.mxu0 %v6935_v62  ;;  %924 = vmatprep.subr.bf16.mxu1 %v6937_v63 }
  0xf6   : > { %882 = vmatpush1.bf16.msra.mxu0 %v6943_v0  ;;  %925 = vmatpush1.bf16.msra.mxu1 %v6945_v1 }
  0xf7   : > { %883 = vmatprep.subr.bf16.mxu0 %v6947_v2  ;;  %926 = vmatprep.subr.bf16.mxu1 %v6949_v3 }
  0xfa   : > { %884 = vmatpush1.bf16.msra.mxu0 %v6955_v4  ;;  %927 = vmatpush1.bf16.msra.mxu1 %v6957_v52 }
  0xfb   : > { %1377 = vmatprep.subr.bf16.mxu0 %v6773_v5  ;;  %1420 = vmatprep.subr.bf16.mxu1 %v6775_v6 }
  0xfd   : > { %886 = vmatmul.mubr.bf16.vlgmr.msra.gmra.mrb[0].mxu0 %v5741_v59  ;;  %929 = vmatmul.mubr.bf16.vlgmr.msra.gmra.mrb[0].mxu1 %v5741_v59 }
  0xfe   : > { %1378 = vmatpush1.bf16.msra.mxu0 %v6778_v7  ;;  %1421 = vmatpush1.bf16.msra.mxu1 %v6780_v8  ;;  %v8031_v7 = vld [vmem:[#allocation38_spill] sm:$0xff]  ;;  %v513_v8 = vlaneseq }
  0xff   : > { %1379 = vmatprep.subr.bf16.mxu0 %v6783_v9  ;;  %1422 = vmatprep.subr.bf16.mxu1 %v6787_v10 }
 0x100   : > { %v514_v9 = vshrl.u32 %v513_v8, 7 }
 0x102   : > { %1380 = vmatpush1.bf16.msra.mxu0 %v6789_v11  ;;  %1423 = vmatpush1.bf16.msra.mxu1 %v6792_v12  ;;  %v515_v10 = vsub.s32 0, %v514_v9  ;;  %v523_v11 = vsub.s32 2, %v514_v9  ;;  %v436_v12 = vld [vmem:[%s7955_s4] sm:$0xf] }
 0x103   : > { %1381 = vmatprep.subr.bf16.mxu0 %v6795_v13  ;;  %1424 = vmatprep.subr.bf16.mxu1 %v6797_v14  ;;  %v519_v13 = vsub.s32 1, %v514_v9  ;;  %v527_v14 = vsub.s32 3, %v514_v9 }
 0x106   : > { %1382 = vmatpush1.bf16.msra.mxu0 %v6799_v15  ;;  %1425 = vmatpush1.bf16.msra.mxu1 %v6801_v16  ;;  %v7035_v15 = vrot.slane %v436_v12, %v515_v10  ;;  %v7037_v16 = vrot.slane %v436_v12, %v523_v11 }
 0x107   : > { %1383 = vmatprep.subr.bf16.mxu0 %v6805_v17  ;;  %1426 = vmatprep.subr.bf16.mxu1 %v6809_v18  ;;  %v7039_v17 = vrot.slane %v436_v12, %v519_v13  ;;  %v7041_v18 = vrot.slane %v436_v12, %v527_v14 }
 0x10a   : > { %1384 = vmatpush1.bf16.msra.mxu0 %v6811_v19  ;;  %1427 = vmatpush1.bf16.msra.mxu1 %v6815_v20 }
 0x10b   : > { %1385 = vmatprep.subr.bf16.mxu0 %v6817_v21  ;;  %1428 = vmatprep.subr.bf16.mxu1 %v6821_v22 }
 0x10e   : > { %1386 = vmatpush1.bf16.msra.mxu0 %v6823_v23  ;;  %1429 = vmatpush1.bf16.msra.mxu1 %v6825_v24 }
 0x10f   : > { %1387 = vmatprep.subr.bf16.mxu0 %v6829_v25  ;;  %1430 = vmatprep.subr.bf16.mxu1 %v6833_v26 }
 0x112   : > { %1388 = vmatpush1.bf16.msra.mxu0 %v6835_v27  ;;  %1431 = vmatpush1.bf16.msra.mxu1 %v6839_v28 }
 0x113   : > { %1389 = vmatprep.subr.bf16.mxu0 %v6841_v29  ;;  %1432 = vmatprep.subr.bf16.mxu1 %v6845_v30 }
 0x116   : > { %1390 = vmatpush1.bf16.msra.mxu0 %v6847_v31  ;;  %1433 = vmatpush1.bf16.msra.mxu1 %v6849_v32 }
 0x117   : > { %1391 = vmatprep.subr.bf16.mxu0 %v6853_v33  ;;  %1434 = vmatprep.subr.bf16.mxu1 %v6857_v34 }
 0x11a   : > { %1392 = vmatpush1.bf16.msra.mxu0 %v6859_v35  ;;  %1435 = vmatpush1.bf16.msra.mxu1 %v6863_v36 }
 0x11b   : > { %1393 = vmatprep.subr.bf16.mxu0 %v6865_v37  ;;  %1436 = vmatprep.subr.bf16.mxu1 %v6869_v38 }
 0x11e   : > { %1394 = vmatpush1.bf16.msra.mxu0 %v6871_v39  ;;  %1437 = vmatpush1.bf16.msra.mxu1 %v6873_v40 }
 0x11f   : > { %1395 = vmatprep.subr.bf16.mxu0 %v6877_v41  ;;  %1438 = vmatprep.subr.bf16.mxu1 %v6881_v42 }
 0x122   : > { %1396 = vmatpush1.bf16.msra.mxu0 %v6883_v43  ;;  %1439 = vmatpush1.bf16.msra.mxu1 %v6887_v44 }
 0x123   : > { %1397 = vmatprep.subr.bf16.mxu0 %v6889_v45  ;;  %1440 = vmatprep.subr.bf16.mxu1 %v6893_v46 }
 0x126   : > { %1398 = vmatpush1.bf16.msra.mxu0 %v6895_v47  ;;  %1441 = vmatpush1.bf16.msra.mxu1 %v6897_v48 }
 0x127   : > { %1399 = vmatprep.subr.bf16.mxu0 %v6901_v49  ;;  %1442 = vmatprep.subr.bf16.mxu1 %v6905_v50 }
 0x12a   : > { %1400 = vmatpush1.bf16.msra.mxu0 %v6907_v51  ;;  %1443 = vmatpush1.bf16.msra.mxu1 %v6909_v53 }
 0x12b   : > { %1401 = vmatprep.subr.bf16.mxu0 %v6913_v54  ;;  %1444 = vmatprep.subr.bf16.mxu1 %v6917_v55 }
 0x12e   : > { %1402 = vmatpush1.bf16.msra.mxu0 %v6919_v56  ;;  %1445 = vmatpush1.bf16.msra.mxu1 %v6921_v57 }
 0x12f   : > { %1403 = vmatprep.subr.bf16.mxu0 %v6923_v58  ;;  %1446 = vmatprep.subr.bf16.mxu1 %v8031_v7  ;;  %v947_v58 = vld [vmem:[#allocation2] sm:$0xff] }
 0x132   : > { %1404 = vmatpush1.bf16.msra.mxu0 %v6931_v60  ;;  %1447 = vmatpush1.bf16.msra.mxu1 %v6933_v61 }
 0x133   : > { %1405 = vmatprep.subr.bf16.mxu0 %v6935_v62  ;;  %1448 = vmatprep.subr.bf16.mxu1 %v6937_v63 }
 0x136   : > { %1406 = vmatpush1.bf16.msra.mxu0 %v6943_v0  ;;  %1449 = vmatpush1.bf16.msra.mxu1 %v6945_v1 }
 0x137   : > { %1407 = vmatprep.subr.bf16.mxu0 %v6947_v2  ;;  %1450 = vmatprep.subr.bf16.mxu1 %v6949_v3 }
 0x13a   : > { %1408 = vmatpush1.bf16.msra.mxu0 %v6955_v4  ;;  %1451 = vmatpush1.bf16.msra.mxu1 %v6957_v52  ;;  %v948_v4 = vld [vmem:[#allocation2 + $0x8] sm:$0xff] }
 0x13b   : > { %1902 = vmatprep.subr.bf16.mxu0 %v6773_v5  ;;  %1945 = vmatprep.subr.bf16.mxu1 %v6775_v6 }
 0x1d0   : > { %v887_v5 = vpop.f32.mrb[0].mxu0  ;;  %v930_v6 = vpop.f32.mrb[0].mxu1 }
 0x1d1   : > { %v888_v19 = vadd.f32 %v887_v5, %v7035_v15  ;;  %v931_v20 = vadd.f32 %v930_v6, %v7037_v16  ;;  %v889_v21 = vpop.f32.mrb[1].mxu0  ;;  %v932_v22 = vpop.f32.mrb[1].mxu1 }
 0x1d2   : > { %v890_v33 = vadd.f32 %v889_v21, %v7039_v17  ;;  %v933_v34 = vadd.f32 %v932_v22, %v7041_v18  ;;  %v891_v35 = vpop.f32.mrb[2].mxu0  ;;  %v934_v36 = vpop.f32.mrb[2].mxu1  ;;  %v6165_v21 = vld [vmem:[#allocation10] ss:$16 sps:$4 sm:$0xff]   ;;  %v6166_v22 = vld [vmem:[#allocation10 + $0x8] ss:$16 sps:$4 sm:$0xff]  }
 0x1d3   : > { %v951_v37 = vmul.f32 0.5, %v888_v19  ;;  %v939_v38 = vmul.f32 0.5, %v931_v20  ;;  %v892_v39 = vadd.f32 %v891_v35, %v7035_v15  ;;  %v935_v40 = vadd.f32 %v934_v36, %v7037_v16  ;;  %v893_v41 = vpop.f32.mrb[3].mxu0  ;;  %v936_v42 = vpop.f32.mrb[3].mxu1  ;;  %v5742_v19 = vld [vmem:[%s6749_s19 + $0x8] sm:$0xff]  }
 0x1d4   : > { %6037 = vtanh.f32 %v890_v33  ;;  %v965_v43 = vmul.f32 0.5, %v933_v34  ;;  %v937_v44 = vadd.f32 %v936_v42, %v7041_v18  ;;  %v894_v48 = vadd.f32 %v893_v41, %v7039_v17  ;;  %v6167_v33 = vld [vmem:[#allocation10 + $0x24] ss:$16 sps:$4 sm:$0xff]   ;;  %v6168_v34 = vld [vmem:[#allocation10 + $0x2c] ss:$16 sps:$4 sm:$0xff]  }
 0x1d5   : > { %6039 = vtanh.f32 %v951_v37  ;;  %v952_v45 = vmul.f32 0.5, %v892_v39  ;;  %v940_v46 = vmul.f32 0.5, %v935_v40  ;;  %v6169_v35 = vld [vmem:[#allocation10 + $0x20] ss:$16 sps:$4 sm:$0xff]   ;;  %v6170_v36 = vld [vmem:[#allocation10 + $0x28] ss:$16 sps:$4 sm:$0xff]  }
 0x1d6   : > { %6041 = vtanh.f32 %v939_v38  ;;  %v966_v47 = vmul.f32 0.5, %v937_v44  ;;  %v6171_v37 = vld [vmem:[#allocation10 + $0x44] ss:$16 sps:$4 sm:$0xff]   ;;  %v6172_v38 = vld [vmem:[#allocation10 + $0x4c] ss:$16 sps:$4 sm:$0xff]  }
 0x1d7   : > { %6043 = vtanh.f32 %v965_v43  ;;  %v6173_v39 = vld [vmem:[#allocation10 + $0x40] ss:$16 sps:$4 sm:$0xff]   ;;  %v6174_v40 = vld [vmem:[#allocation10 + $0x48] ss:$16 sps:$4 sm:$0xff]   ;;  %v6175_v41 = vld [vmem:[#allocation10 + $0x64] ss:$16 sps:$4 sm:$0xff]  }
 0x1d8   : > { %6045 = vtanh.f32 %v952_v45  ;;  %v6176_v42 = vld [vmem:[#allocation10 + $0x6c] ss:$16 sps:$4 sm:$0xff]   ;;  %v6177_v43 = vld [vmem:[#allocation10 + $0x60] ss:$16 sps:$4 sm:$0xff]   ;;  %v6178_v44 = vld [vmem:[#allocation10 + $0x68] ss:$16 sps:$4 sm:$0xff]  }
 0x1d9   : > { %6047 = vtanh.f32 %v940_v46  ;;  %v6179_v45 = vld [vmem:[#allocation10 + $0x84] ss:$16 sps:$4 sm:$0xff]   ;;  %v6180_v46 = vld [vmem:[#allocation10 + $0x8c] ss:$16 sps:$4 sm:$0xff]  }
 0x1da   : > { %6049 = vtanh.f32 %v966_v47  ;;  %v7070_v47 = vld [vmem:[#allocation10 + $0xe4] ss:$16 sps:$4 sm:$0xff]  }
 0x1db   : > { %6051 = vtanh.f32 %v894_v48  ;;  %v7100_v48 = vld [vmem:[#allocation10 + $0x128] ss:$16 sps:$4 sm:$0xff]  }
 0x1de   : > { %v6038_v49 = vpop.eup %6037 }
 0x1df   : > { %v6040_v50 = vpop.eup %6039 }
 0x1e0   : > { %v6042_v51 = vpop.eup %6041  ;;  %v955_v53 = vmul.f32 0.5, %v6040_v50  ;;  %v7108_v50 = vld [vmem:[#allocation10 + $0x14c] ss:$16 sps:$4 sm:$0xff]  }
 0x1e1   : > { %v6044_v54 = vpop.eup %6043  ;;  %v943_v55 = vmul.f32 0.5, %v6042_v51  ;;  %v7110_v51 = vld [vmem:[#allocation10 + $0x140] ss:$16 sps:$4 sm:$0xff]  }
 0x1e2   : > { %v6046_v56 = vpop.eup %6045  ;;  %v957_v57 = vadd.f32 0.5, %v955_v53  ;;  %v969_v61 = vmul.f32 0.5, %v6044_v54  ;;  %v7112_v53 = vld [vmem:[#allocation10 + $0x148] ss:$16 sps:$4 sm:$0xff]   ;;  %v7118_v54 = vld [vmem:[#allocation10 + $0x164] ss:$16 sps:$4 sm:$0xff]  }
 0x1e3   : > { %v6048_v59 = vpop.eup %6047  ;;  %v945_v60 = vadd.f32 0.5, %v943_v55  ;;  %v956_v62 = vmul.f32 0.5, %v6046_v56  ;;  %v7120_v55 = vld [vmem:[#allocation10 + $0x16c] ss:$16 sps:$4 sm:$0xff]   ;;  %v7122_v56 = vld [vmem:[#allocation10 + $0x160] ss:$16 sps:$4 sm:$0xff]  }
 0x1e4   : > { %v961_v63 = vmul.f32 %v6038_v49, %v957_v57  ;;  %v944_v0 = vmul.f32 0.5, %v6048_v59  ;;  %v6050_v1 = vpop.eup %6049  ;;  %v971_v10 = vadd.f32 0.5, %v969_v61  ;;  %v7106_v49 = vld [vmem:[#allocation10 + $0x144] ss:$16 sps:$4 sm:$0xff]   ;;  %v7124_v57 = vld [vmem:[#allocation10 + $0x168] ss:$16 sps:$4 sm:$0xff]  }
 0x1e5   : > { %v949_v2 = vmul.f32 %v947_v58, %v945_v60  ;;  %v958_v3 = vadd.f32 0.5, %v956_v62  ;;  %v6052_v52 = vpop.eup %6051  ;;  %v970_v8 = vmul.f32 0.5, %v6050_v1  ;;  %v7130_v58 = vld [vmem:[#allocation10 + $0x184] ss:$16 sps:$4 sm:$0xff]   ;;  %v7132_v59 = vld [vmem:[#allocation10 + $0x18c] ss:$16 sps:$4 sm:$0xff]  }
 0x1e6   : > { %v946_v7 = vadd.f32 0.5, %v944_v0  ;;  %v7134_v60 = vld [vmem:[#allocation10 + $0x180] ss:$16 sps:$4 sm:$0xff]   ;;  %v7136_v61 = vld [vmem:[#allocation10 + $0x188] ss:$16 sps:$4 sm:$0xff]  }
 0x1e7   : > { %v7051_v9 = vadd.f32 %v961_v63, %v949_v2  ;;  %v962_v11 = vmul.f32 %v6052_v52, %v958_v3  ;;  %v972_v5 = vadd.f32 0.5, %v970_v8  ;;  %v7142_v62 = vld [vmem:[#allocation10 + $0x1a4] ss:$16 sps:$4 sm:$0xff]   ;;  %v7144_v63 = vld [vmem:[#allocation10 + $0x1ac] ss:$16 sps:$4 sm:$0xff]  }
 0x1e8   : > { %v950_v12 = vmul.f32 %v948_v4, %v946_v7  ;;  %v7146_v0 = vld [vmem:[#allocation10 + $0x1a0] ss:$16 sps:$4 sm:$0xff]   ;;  %v7148_v1 = vld [vmem:[#allocation10 + $0x1a8] ss:$16 sps:$4 sm:$0xff]   ;;  %v7154_v2 = vld [vmem:[#allocation10 + $0x1c4] ss:$16 sps:$4 sm:$0xff]  }
 0x1e9   : > { %v973_v13 = vmul.f32 %v971_v10, %v7051_v9  ;;  %v7156_v3 = vld [vmem:[#allocation10 + $0x1cc] ss:$16 sps:$4 sm:$0xff]   ;;  %v7158_v4 = vld [vmem:[#allocation10 + $0x1c0] ss:$16 sps:$4 sm:$0xff]   ;;  %v7160_v52 = vld [vmem:[#allocation10 + $0x1c8] ss:$16 sps:$4 sm:$0xff]  }
 0x1ea   : > { %v7054_v14 = vadd.f32 %v962_v11, %v950_v12  ;;  %v7166_v7 = vld [vmem:[#allocation10 + $0x1e4] ss:$16 sps:$4 sm:$0xff]   ;;  %v7168_v8 = vld [vmem:[#allocation10 + $0x1ec] ss:$16 sps:$4 sm:$0xff]   ;;  %v7170_v10 = vld [vmem:[#allocation10 + $0x1e0] ss:$16 sps:$4 sm:$0xff]  }
 0x1eb   : > { %979 = vst [vmem:[%s6768_s14] sm:$0xff] %v973_v13  ;;  %v7172_v11 = vld [vmem:[#allocation10 + $0x1e8] ss:$16 sps:$4 sm:$0xff]   ;;  %v7178_v12 = vld [vmem:[#allocation10 + $0x4] ss:$16 sps:$4 sm:$0xff]  }
 0x1ec   : > { %v974_v6 = vmul.f32 %v972_v5, %v7054_v14 }
 0x1ee   : > { %v977_v20 = vpack.c.bf16 %v974_v6, %v973_v13  ;;  %980 = vst [vmem:[%s6768_s14 + $0x8] sm:$0xff] %v974_v6  ;;  %v7180_v13 = vld [vmem:[#allocation10 + $0xc] ss:$16 sps:$4 sm:$0xff]  }
 0x1f0   : > { %1409 = vmatprep.mubr.bf16.mxu0 %v977_v20  ;;  %1452 = vmatprep.mubr.bf16.mxu1 %v977_v20 }
 0x1f1   : > { %1410 = vmatmul.mubr.bf16.vlgmr.msra.gmra.mrb[4].mxu0 %v5742_v19  ;;  %1453 = vmatmul.mubr.bf16.vlgmr.msra.gmra.mrb[4].mxu1 %v5742_v19 }
 0x1f2   : > { %1903 = vmatpush1.bf16.msra.mxu0 %v6165_v21  ;;  %1946 = vmatpush1.bf16.msra.mxu1 %v6166_v22 }
 0x1f3   : > { %1904 = vmatprep.subr.bf16.mxu0 %v6167_v33  ;;  %1947 = vmatprep.subr.bf16.mxu1 %v6168_v34 }
 0x1f6   : > { %1905 = vmatpush1.bf16.msra.mxu0 %v6169_v35  ;;  %1948 = vmatpush1.bf16.msra.mxu1 %v6170_v36 }
 0x1f7   : > { %1906 = vmatprep.subr.bf16.mxu0 %v6171_v37  ;;  %1949 = vmatprep.subr.bf16.mxu1 %v6172_v38 }
 0x1fa   : > { %1907 = vmatpush1.bf16.msra.mxu0 %v6173_v39  ;;  %1950 = vmatpush1.bf16.msra.mxu1 %v6174_v40 }
 0x1fb   : > { %1908 = vmatprep.subr.bf16.mxu0 %v6175_v41  ;;  %1951 = vmatprep.subr.bf16.mxu1 %v6176_v42 }
 0x1fe   : > { %1909 = vmatpush1.bf16.msra.mxu0 %v6177_v43  ;;  %1952 = vmatpush1.bf16.msra.mxu1 %v6178_v44 }
 0x1ff   : > { %1910 = vmatprep.subr.bf16.mxu0 %v6179_v45  ;;  %1953 = vmatprep.subr.bf16.mxu1 %v6180_v46 }
 0x202   : > { %1911 = vmatpush1.bf16.msra.mxu0 %v6823_v23  ;;  %1954 = vmatpush1.bf16.msra.mxu1 %v6825_v24  ;;  %v7072_v23 = vld [vmem:[#allocation10 + $0xec] ss:$16 sps:$4 sm:$0xff]   ;;  %v7074_v24 = vld [vmem:[#allocation10 + $0xe0] ss:$16 sps:$4 sm:$0xff]  }
 0x203   : > { %1912 = vmatprep.subr.bf16.mxu0 %v6829_v25  ;;  %1955 = vmatprep.subr.bf16.mxu1 %v6833_v26  ;;  %v7076_v25 = vld [vmem:[#allocation10 + $0xe8] ss:$16 sps:$4 sm:$0xff]   ;;  %v7082_v26 = vld [vmem:[#allocation10 + $0x104] ss:$16 sps:$4 sm:$0xff]  }
 0x206   : > { %1913 = vmatpush1.bf16.msra.mxu0 %v6835_v27  ;;  %1956 = vmatpush1.bf16.msra.mxu1 %v6839_v28  ;;  %v7084_v27 = vld [vmem:[#allocation10 + $0x10c] ss:$16 sps:$4 sm:$0xff]   ;;  %v7086_v28 = vld [vmem:[#allocation10 + $0x100] ss:$16 sps:$4 sm:$0xff]  }
 0x207   : > { %1914 = vmatprep.subr.bf16.mxu0 %v6841_v29  ;;  %1957 = vmatprep.subr.bf16.mxu1 %v6845_v30  ;;  %v7088_v29 = vld [vmem:[#allocation10 + $0x108] ss:$16 sps:$4 sm:$0xff]   ;;  %v7094_v30 = vld [vmem:[#allocation10 + $0x124] ss:$16 sps:$4 sm:$0xff]  }
 0x20a   : > { %1915 = vmatpush1.bf16.msra.mxu0 %v6847_v31  ;;  %1958 = vmatpush1.bf16.msra.mxu1 %v6849_v32  ;;  %v7096_v31 = vld [vmem:[#allocation10 + $0x12c] ss:$16 sps:$4 sm:$0xff]   ;;  %v7098_v32 = vld [vmem:[#allocation10 + $0x120] ss:$16 sps:$4 sm:$0xff]  }
 0x20b   : > { %1916 = vmatprep.subr.bf16.mxu0 %v7070_v47  ;;  %1959 = vmatprep.subr.bf16.mxu1 %v7072_v23 }
 0x20e   : > { %1917 = vmatpush1.bf16.msra.mxu0 %v7074_v24  ;;  %1960 = vmatpush1.bf16.msra.mxu1 %v7076_v25 }
 0x20f   : > { %1918 = vmatprep.subr.bf16.mxu0 %v7082_v26  ;;  %1961 = vmatprep.subr.bf16.mxu1 %v7084_v27 }
 0x212   : > { %1919 = vmatpush1.bf16.msra.mxu0 %v7086_v28  ;;  %1962 = vmatpush1.bf16.msra.mxu1 %v7088_v29 }
 0x213   : > { %1920 = vmatprep.subr.bf16.mxu0 %v7094_v30  ;;  %1963 = vmatprep.subr.bf16.mxu1 %v7096_v31 }
 0x216   : > { %1921 = vmatpush1.bf16.msra.mxu0 %v7098_v32  ;;  %1964 = vmatpush1.bf16.msra.mxu1 %v7100_v48 }
 0x217   : > { %1922 = vmatprep.subr.bf16.mxu0 %v7106_v49  ;;  %1965 = vmatprep.subr.bf16.mxu1 %v7108_v50 }
 0x21a   : > { %1923 = vmatpush1.bf16.msra.mxu0 %v7110_v51  ;;  %1966 = vmatpush1.bf16.msra.mxu1 %v7112_v53 }
 0x21b   : > { %1924 = vmatprep.subr.bf16.mxu0 %v7118_v54  ;;  %1967 = vmatprep.subr.bf16.mxu1 %v7120_v55 }
 0x21e   : > { %1925 = vmatpush1.bf16.msra.mxu0 %v7122_v56  ;;  %1968 = vmatpush1.bf16.msra.mxu1 %v7124_v57 }
 0x21f   : > { %1926 = vmatprep.subr.bf16.mxu0 %v7130_v58  ;;  %1969 = vmatprep.subr.bf16.mxu1 %v7132_v59 }
 0x222   : > { %1927 = vmatpush1.bf16.msra.mxu0 %v7134_v60  ;;  %1970 = vmatpush1.bf16.msra.mxu1 %v7136_v61 }
 0x223   : > { %1928 = vmatprep.subr.bf16.mxu0 %v7142_v62  ;;  %1971 = vmatprep.subr.bf16.mxu1 %v7144_v63 }
 0x226   : > { %1929 = vmatpush1.bf16.msra.mxu0 %v7146_v0  ;;  %1972 = vmatpush1.bf16.msra.mxu1 %v7148_v1 }
 0x227   : > { %1930 = vmatprep.subr.bf16.mxu0 %v7154_v2  ;;  %1973 = vmatprep.subr.bf16.mxu1 %v7156_v3 }
 0x22a   : > { %1931 = vmatpush1.bf16.msra.mxu0 %v7158_v4  ;;  %1974 = vmatpush1.bf16.msra.mxu1 %v7160_v52 }
 0x22b   : > { %1932 = vmatprep.subr.bf16.mxu0 %v7166_v7  ;;  %1975 = vmatprep.subr.bf16.mxu1 %v7168_v8 }
 0x22e   : > { %1933 = vmatpush1.bf16.msra.mxu0 %v7170_v10  ;;  %1976 = vmatpush1.bf16.msra.mxu1 %v7172_v11 }
 0x22f   : > { %2427 = vmatprep.subr.bf16.mxu0 %v7178_v12  ;;  %2470 = vmatprep.subr.bf16.mxu1 %v7180_v13 }
 0x2c4   : > { %v1411_v5 = vpop.f32.mrb[4].mxu0  ;;  %v1454_v6 = vpop.f32.mrb[4].mxu1 }
 0x2c5   : > { %v1412_v19 = vadd.f32 %v1411_v5, %v7035_v15  ;;  %v1455_v20 = vadd.f32 %v1454_v6, %v7037_v16  ;;  %v1413_v21 = vpop.f32.mrb[5].mxu0  ;;  %v1456_v22 = vpop.f32.mrb[5].mxu1 }
 0x2c6   : > { %v1414_v33 = vadd.f32 %v1413_v21, %v7039_v17  ;;  %v1457_v34 = vadd.f32 %v1456_v22, %v7041_v18  ;;  %v1415_v35 = vpop.f32.mrb[6].mxu0  ;;  %v1458_v36 = vpop.f32.mrb[6].mxu1 }
 0x2c7   : > { %v1475_v37 = vmul.f32 0.5, %v1412_v19  ;;  %v1463_v38 = vmul.f32 0.5, %v1455_v20  ;;  %v1416_v39 = vadd.f32 %v1415_v35, %v7035_v15  ;;  %v1459_v40 = vadd.f32 %v1458_v36, %v7037_v16  ;;  %v1417_v41 = vpop.f32.mrb[7].mxu0  ;;  %v1460_v42 = vpop.f32.mrb[7].mxu1 }
 0x2c8   : > { %6053 = vtanh.f32 %v1414_v33  ;;  %v1489_v43 = vmul.f32 0.5, %v1457_v34  ;;  %v1461_v44 = vadd.f32 %v1460_v42, %v7041_v18  ;;  %v1418_v6 = vadd.f32 %v1417_v41, %v7039_v17 }
 0x2c9   : > { %6055 = vtanh.f32 %v1475_v37  ;;  %v1476_v45 = vmul.f32 0.5, %v1416_v39  ;;  %v1464_v46 = vmul.f32 0.5, %v1459_v40 }
 0x2ca   : > { %6057 = vtanh.f32 %v1463_v38  ;;  %v1490_v5 = vmul.f32 0.5, %v1461_v44 }
 0x2cb   : > { %6059 = vtanh.f32 %v1489_v43 }
 0x2cc   : > { %6061 = vtanh.f32 %v1476_v45 }
 0x2cd   : > { %6063 = vtanh.f32 %v1464_v46 }
 0x2ce   : > { %6065 = vtanh.f32 %v1490_v5 }
 0x2cf   : > { %6067 = vtanh.f32 %v1418_v6 }
 0x2d2   : > { %v6054_v19 = vpop.eup %6053 }
 0x2d3   : > { %v6056_v20 = vpop.eup %6055 }
 0x2d4   : > { %v6058_v21 = vpop.eup %6057  ;;  %v1479_v22 = vmul.f32 0.5, %v6056_v20 }
 0x2d5   : > { %v6060_v33 = vpop.eup %6059  ;;  %v1467_v34 = vmul.f32 0.5, %v6058_v21 }
 0x2d6   : > { %v6062_v35 = vpop.eup %6061  ;;  %v1481_v36 = vadd.f32 0.5, %v1479_v22  ;;  %v1493_v40 = vmul.f32 0.5, %v6060_v33 }
 0x2d7   : > { %v6064_v37 = vpop.eup %6063  ;;  %v1469_v39 = vadd.f32 0.5, %v1467_v34  ;;  %v1480_v38 = vmul.f32 0.5, %v6062_v35 }
 0x2d8   : > { %v1485_v42 = vmul.f32 %v6054_v19, %v1481_v36  ;;  %v1468_v43 = vmul.f32 0.5, %v6064_v37  ;;  %v6066_v41 = vpop.eup %6065  ;;  %v1495_v21 = vadd.f32 0.5, %v1493_v40  ;;  %v7209_v40 = vld [vmem:[#allocation10 + $0x2c] ss:$16 sps:$4 sm:$0xff]  }
 0x2d9   : > { %v1473_v44 = vmul.f32 %v1469_v39, %v7051_v9  ;;  %v1482_v45 = vadd.f32 0.5, %v1480_v38  ;;  %v6068_v46 = vpop.eup %6067  ;;  %v1494_v6 = vmul.f32 0.5, %v6066_v41  ;;  %v5743_v9 = vld [vmem:[%s6749_s19 + $0x10] sm:$0xff]   ;;  %v7205_v38 = vld [vmem:[#allocation10 + $0x8] ss:$16 sps:$4 sm:$0xff]  }
 0x2da   : > { %v1470_v5 = vadd.f32 0.5, %v1468_v43  ;;  %v7203_v39 = vld [vmem:[#allocation10] ss:$16 sps:$4 sm:$0xff]   ;;  %v7215_v43 = vld [vmem:[#allocation10 + $0x28] ss:$16 sps:$4 sm:$0xff]  }
 0x2db   : > { %v7193_v20 = vadd.f32 %v1485_v42, %v1473_v44  ;;  %v1486_v22 = vmul.f32 %v6068_v46, %v1482_v45  ;;  %v1496_v19 = vadd.f32 0.5, %v1494_v6  ;;  %v7207_v42 = vld [vmem:[#allocation10 + $0x24] ss:$16 sps:$4 sm:$0xff]   ;;  %v7221_v44 = vld [vmem:[#allocation10 + $0x4c] ss:$16 sps:$4 sm:$0xff]  }
 0x2dc   : > { %v1474_v34 = vmul.f32 %v1470_v5, %v7054_v14  ;;  %v7213_v14 = vld [vmem:[#allocation10 + $0x20] ss:$16 sps:$4 sm:$0xff]   ;;  %v7219_v41 = vld [vmem:[#allocation10 + $0x44] ss:$16 sps:$4 sm:$0xff]   ;;  %v7227_v46 = vld [vmem:[#allocation10 + $0x48] ss:$16 sps:$4 sm:$0xff]  }
 0x2dd   : > { %v1497_v33 = vmul.f32 %v1495_v21, %v7193_v20  ;;  %v7225_v45 = vld [vmem:[#allocation10 + $0x40] ss:$16 sps:$4 sm:$0xff]   ;;  %v7231_v5 = vld [vmem:[#allocation10 + $0x64] ss:$16 sps:$4 sm:$0xff]   ;;  %v7233_v6 = vld [vmem:[#allocation10 + $0x6c] ss:$16 sps:$4 sm:$0xff]  }
 0x2de   : > { %v7197_v35 = vadd.f32 %v1486_v22, %v1474_v34  ;;  %8032 = vst [vmem:[#allocation38_spill] sm:$0xff] %v7233_v6  ;;  %v7237_v21 = vld [vmem:[#allocation10 + $0x60] ss:$16 sps:$4 sm:$0xff]   ;;  %v7239_v22 = vld [vmem:[#allocation10 + $0x68] ss:$16 sps:$4 sm:$0xff]  }
 0x2df   : > { %5064 = vst [vmem:[%s6768_s14 + $0x10] sm:$0xff] %v1497_v33  ;;  %8033 = vst [vmem:[#allocation39_spill] sm:$0xff] %v7237_v21  ;;  %v7243_v34 = vld [vmem:[#allocation10 + $0x84] ss:$16 sps:$4 sm:$0xff]  }
 0x2e0   : > { %v1498_v36 = vmul.f32 %v1496_v19, %v7197_v35  ;;  %8034 = vst [vmem:[#allocation40_spill] sm:$0xff] %v7239_v22  ;;  %8035 = vst [vmem:[#allocation41_spill] sm:$0xff] %v7243_v34  ;;  %v7249_v19 = vld [vmem:[#allocation10 + $0x80] ss:$16 sps:$4 sm:$0xff]  }
 0x2e1   : > { %8037 = vst [vmem:[#allocation43_spill] sm:$0xff] %v7249_v19 }
 0x2e2   : > { %v1501_v37 = vpack.c.bf16 %v1498_v36, %v1497_v33  ;;  %5065 = vst [vmem:[%s6768_s14 + $0x18] sm:$0xff] %v1498_v36  ;;  %v7245_v33 = vld [vmem:[#allocation10 + $0x8c] ss:$16 sps:$4 sm:$0xff]   ;;  %v7251_v36 = vld [vmem:[#allocation10 + $0x88] ss:$16 sps:$4 sm:$0xff]  }
 0x2e3   : > { %8036 = vst [vmem:[#allocation42_spill] sm:$0xff] %v7245_v33 }
 0x2e4   : > { %1934 = vmatprep.mubr.bf16.mxu0 %v1501_v37  ;;  %1977 = vmatprep.mubr.bf16.mxu1 %v1501_v37  ;;  %v7257_v37 = vld [vmem:[#allocation10 + $0xac] ss:$16 sps:$4 sm:$0xff]  }
 0x2e5   : > { %1935 = vmatmul.mubr.bf16.vlgmr.msra.gmra.mrb[8].mxu0 %v5743_v9  ;;  %1978 = vmatmul.mubr.bf16.vlgmr.msra.gmra.mrb[8].mxu1 %v5743_v9  ;;  %v7255_v9 = vld [vmem:[#allocation10 + $0xa4] ss:$16 sps:$4 sm:$0xff]  }
 0x2e6   : > { %2428 = vmatpush1.bf16.msra.mxu0 %v7203_v39  ;;  %2471 = vmatpush1.bf16.msra.mxu1 %v7205_v38 }
 0x2e7   : > { %2429 = vmatprep.subr.bf16.mxu0 %v7207_v42  ;;  %2472 = vmatprep.subr.bf16.mxu1 %v7209_v40 }
 0x2ea   : > { %2430 = vmatpush1.bf16.msra.mxu0 %v7213_v14  ;;  %2473 = vmatpush1.bf16.msra.mxu1 %v7215_v43 }
 0x2eb   : > { %2431 = vmatprep.subr.bf16.mxu0 %v7219_v41  ;;  %2474 = vmatprep.subr.bf16.mxu1 %v7221_v44 }
 0x2ee   : > { %2432 = vmatpush1.bf16.msra.mxu0 %v7225_v45  ;;  %2475 = vmatpush1.bf16.msra.mxu1 %v7227_v46 }
 0x2ef   : > { %2433 = vmatprep.subr.bf16.mxu0 %v7231_v5  ;;  %2476 = vmatprep.subr.bf16.mxu1 %v7233_v6  ;;  %v7261_v6 = vld [vmem:[#allocation10 + $0xa0] ss:$16 sps:$4 sm:$0xff]  }
 0x2f2   : > { %2434 = vmatpush1.bf16.msra.mxu0 %v7237_v21  ;;  %2477 = vmatpush1.bf16.msra.mxu1 %v7239_v22  ;;  %v7263_v21 = vld [vmem:[#allocation10 + $0xa8] ss:$16 sps:$4 sm:$0xff]   ;;  %v7267_v22 = vld [vmem:[#allocation10 + $0xc4] ss:$16 sps:$4 sm:$0xff]  }
 0x2f3   : > { %2435 = vmatprep.subr.bf16.mxu0 %v7243_v34  ;;  %2478 = vmatprep.subr.bf16.mxu1 %v7245_v33  ;;  %v7269_v34 = vld [vmem:[#allocation10 + $0xcc] ss:$16 sps:$4 sm:$0xff]   ;;  %v7273_v33 = vld [vmem:[#allocation10 + $0xc0] ss:$16 sps:$4 sm:$0xff]  }
 0x2f6   : > { %2436 = vmatpush1.bf16.msra.mxu0 %v7249_v19  ;;  %2479 = vmatpush1.bf16.msra.mxu1 %v7251_v36  ;;  %v7275_v19 = vld [vmem:[#allocation10 + $0xc8] ss:$16 sps:$4 sm:$0xff]  }
 0x2f7   : > { %2437 = vmatprep.subr.bf16.mxu0 %v7255_v9  ;;  %2480 = vmatprep.subr.bf16.mxu1 %v7257_v37 }
 0x2fa   : > { %2438 = vmatpush1.bf16.msra.mxu0 %v7261_v6  ;;  %2481 = vmatpush1.bf16.msra.mxu1 %v7263_v21 }
 0x2fb   : > { %2439 = vmatprep.subr.bf16.mxu0 %v7267_v22  ;;  %2482 = vmatprep.subr.bf16.mxu1 %v7269_v34 }
 0x2fe   : > { %2440 = vmatpush1.bf16.msra.mxu0 %v7273_v33  ;;  %2483 = vmatpush1.bf16.msra.mxu1 %v7275_v19 }
 0x2ff   : > { %2441 = vmatprep.subr.bf16.mxu0 %v7070_v47  ;;  %2484 = vmatprep.subr.bf16.mxu1 %v7072_v23 }
 0x302   : > { %2442 = vmatpush1.bf16.msra.mxu0 %v7074_v24  ;;  %2485 = vmatpush1.bf16.msra.mxu1 %v7076_v25 }
 0x303   : > { %2443 = vmatprep.subr.bf16.mxu0 %v7082_v26  ;;  %2486 = vmatprep.subr.bf16.mxu1 %v7084_v27 }
 0x306   : > { %2444 = vmatpush1.bf16.msra.mxu0 %v7086_v28  ;;  %2487 = vmatpush1.bf16.msra.mxu1 %v7088_v29 }
 0x307   : > { %2445 = vmatprep.subr.bf16.mxu0 %v7094_v30  ;;  %2488 = vmatprep.subr.bf16.mxu1 %v7096_v31 }
 0x30a   : > { %2446 = vmatpush1.bf16.msra.mxu0 %v7098_v32  ;;  %2489 = vmatpush1.bf16.msra.mxu1 %v7100_v48 }
 0x30b   : > { %2447 = vmatprep.subr.bf16.mxu0 %v7106_v49  ;;  %2490 = vmatprep.subr.bf16.mxu1 %v7108_v50 }
 0x30e   : > { %2448 = vmatpush1.bf16.msra.mxu0 %v7110_v51  ;;  %2491 = vmatpush1.bf16.msra.mxu1 %v7112_v53 }
 0x30f   : > { %2449 = vmatprep.subr.bf16.mxu0 %v7118_v54  ;;  %2492 = vmatprep.subr.bf16.mxu1 %v7120_v55 }
 0x312   : > { %2450 = vmatpush1.bf16.msra.mxu0 %v7122_v56  ;;  %2493 = vmatpush1.bf16.msra.mxu1 %v7124_v57 }
 0x313   : > { %2451 = vmatprep.subr.bf16.mxu0 %v7130_v58  ;;  %2494 = vmatprep.subr.bf16.mxu1 %v7132_v59 }
 0x316   : > { %2452 = vmatpush1.bf16.msra.mxu0 %v7134_v60  ;;  %2495 = vmatpush1.bf16.msra.mxu1 %v7136_v61 }
 0x317   : > { %2453 = vmatprep.subr.bf16.mxu0 %v7142_v62  ;;  %2496 = vmatprep.subr.bf16.mxu1 %v7144_v63 }
 0x31a   : > { %2454 = vmatpush1.bf16.msra.mxu0 %v7146_v0  ;;  %2497 = vmatpush1.bf16.msra.mxu1 %v7148_v1 }
 0x31b   : > { %2455 = vmatprep.subr.bf16.mxu0 %v7154_v2  ;;  %2498 = vmatprep.subr.bf16.mxu1 %v7156_v3 }
 0x31e   : > { %2456 = vmatpush1.bf16.msra.mxu0 %v7158_v4  ;;  %2499 = vmatpush1.bf16.msra.mxu1 %v7160_v52 }
 0x31f   : > { %2457 = vmatprep.subr.bf16.mxu0 %v7166_v7  ;;  %2500 = vmatprep.subr.bf16.mxu1 %v7168_v8 }
 0x322   : > { %2458 = vmatpush1.bf16.msra.mxu0 %v7170_v10  ;;  %2501 = vmatpush1.bf16.msra.mxu1 %v7172_v11 }
 0x323   : > { %2952 = vmatprep.subr.bf16.mxu0 %v7178_v12  ;;  %2995 = vmatprep.subr.bf16.mxu1 %v7180_v13 }
 0x3b8   : > { %v1936_v47 = vpop.f32.mrb[8].mxu0  ;;  %v1979_v23 = vpop.f32.mrb[8].mxu1 }
 0x3b9   : > { %v1937_v24 = vadd.f32 %v1936_v47, %v7035_v15  ;;  %v1980_v25 = vadd.f32 %v1979_v23, %v7037_v16  ;;  %v1938_v26 = vpop.f32.mrb[9].mxu0  ;;  %v1981_v27 = vpop.f32.mrb[9].mxu1 }
 0x3ba   : > { %v1939_v28 = vadd.f32 %v1938_v26, %v7039_v17  ;;  %v1982_v29 = vadd.f32 %v1981_v27, %v7041_v18  ;;  %v1940_v30 = vpop.f32.mrb[10].mxu0  ;;  %v1983_v31 = vpop.f32.mrb[10].mxu1 }
 0x3bb   : > { %v2000_v32 = vmul.f32 0.5, %v1937_v24  ;;  %v1988_v48 = vmul.f32 0.5, %v1980_v25  ;;  %v1941_v49 = vadd.f32 %v1940_v30, %v7035_v15  ;;  %v1984_v50 = vadd.f32 %v1983_v31, %v7037_v16  ;;  %v1942_v51 = vpop.f32.mrb[11].mxu0  ;;  %v1985_v53 = vpop.f32.mrb[11].mxu1 }
 0x3bc   : > { %6069 = vtanh.f32 %v1939_v28  ;;  %v2014_v54 = vmul.f32 0.5, %v1982_v29  ;;  %v1986_v55 = vadd.f32 %v1985_v53, %v7041_v18  ;;  %v1943_v59 = vadd.f32 %v1942_v51, %v7039_v17  ;;  %v7412_v51 = vld [vmem:[#allocation10 + $0x164] ss:$16 sps:$4 sm:$0xff]   ;;  %v7414_v53 = vld [vmem:[#allocation10 + $0x16c] ss:$16 sps:$4 sm:$0xff]  }
 0x3bd   : > { %6071 = vtanh.f32 %v2000_v32  ;;  %v2001_v56 = vmul.f32 0.5, %v1941_v49  ;;  %v1989_v57 = vmul.f32 0.5, %v1984_v50  ;;  %v7406_v50 = vld [vmem:[#allocation10 + $0x148] ss:$16 sps:$4 sm:$0xff]  }
 0x3be   : > { %6073 = vtanh.f32 %v1988_v48  ;;  %v2015_v58 = vmul.f32 0.5, %v1986_v55  ;;  %v7418_v55 = vld [vmem:[#allocation10 + $0x168] ss:$16 sps:$4 sm:$0xff]  }
 0x3bf   : > { %6075 = vtanh.f32 %v2014_v54  ;;  %v7416_v54 = vld [vmem:[#allocation10 + $0x160] ss:$16 sps:$4 sm:$0xff]  }
 0x3c0   : > { %6077 = vtanh.f32 %v2001_v56  ;;  %v7424_v56 = vld [vmem:[#allocation10 + $0x184] ss:$16 sps:$4 sm:$0xff]  }
 0x3c1   : > { %6079 = vtanh.f32 %v1989_v57  ;;  %v7426_v57 = vld [vmem:[#allocation10 + $0x18c] ss:$16 sps:$4 sm:$0xff]  }
 0x3c2   : > { %6081 = vtanh.f32 %v2015_v58  ;;  %v7428_v58 = vld [vmem:[#allocation10 + $0x180] ss:$16 sps:$4 sm:$0xff]  }
 0x3c3   : > { %6083 = vtanh.f32 %v1943_v59  ;;  %v7430_v59 = vld [vmem:[#allocation10 + $0x188] ss:$16 sps:$4 sm:$0xff]  }
 0x3c6   : > { %v6070_v60 = vpop.eup %6069 }
 0x3c7   : > { %v6072_v61 = vpop.eup %6071 }
 0x3c8   : > { %v6074_v62 = vpop.eup %6073  ;;  %v2004_v63 = vmul.f32 0.5, %v6072_v61  ;;  %v7438_v61 = vld [vmem:[#allocation10 + $0x1ac] ss:$16 sps:$4 sm:$0xff]  }
 0x3c9   : > { %v6076_v0 = vpop.eup %6075  ;;  %v1992_v1 = vmul.f32 0.5, %v6074_v62  ;;  %v7440_v62 = vld [vmem:[#allocation10 + $0x1a0] ss:$16 sps:$4 sm:$0xff]  }
 0x3ca   : > { %v6078_v2 = vpop.eup %6077  ;;  %v2006_v3 = vadd.f32 0.5, %v2004_v63  ;;  %v2018_v7 = vmul.f32 0.5, %v6076_v0  ;;  %v7442_v63 = vld [vmem:[#allocation10 + $0x1a8] ss:$16 sps:$4 sm:$0xff]   ;;  %v7448_v0 = vld [vmem:[#allocation10 + $0x1c4] ss:$16 sps:$4 sm:$0xff]  }
 0x3cb   : > { %v6080_v4 = vpop.eup %6079  ;;  %v1994_v52 = vadd.f32 0.5, %v1992_v1  ;;  %v2005_v8 = vmul.f32 0.5, %v6078_v2  ;;  %v7450_v1 = vld [vmem:[#allocation10 + $0x1cc] ss:$16 sps:$4 sm:$0xff]   ;;  %v7452_v2 = vld [vmem:[#allocation10 + $0x1c0] ss:$16 sps:$4 sm:$0xff]  }
 0x3cc   : > { %v2010_v10 = vmul.f32 %v6070_v60, %v2006_v3  ;;  %v1993_v11 = vmul.f32 0.5, %v6080_v4  ;;  %v6082_v12 = vpop.eup %6081  ;;  %v2020_v27 = vadd.f32 0.5, %v2018_v7  ;;  %v7436_v60 = vld [vmem:[#allocation10 + $0x1a4] ss:$16 sps:$4 sm:$0xff]   ;;  %v7454_v3 = vld [vmem:[#allocation10 + $0x1c8] ss:$16 sps:$4 sm:$0xff]  }
 0x3cd   : > { %v1998_v13 = vmul.f32 %v1994_v52, %v7193_v20  ;;  %v2007_v47 = vadd.f32 0.5, %v2005_v8  ;;  %v6084_v23 = vpop.eup %6083  ;;  %v2019_v25 = vmul.f32 0.5, %v6082_v12  ;;  %v5798_v20 = vld [vmem:[%s6749_s19 + $0x18] sm:$0xff]   ;;  %v7460_v4 = vld [vmem:[#allocation10 + $0x1e4] ss:$16 sps:$4 sm:$0xff]  }
 0x3ce   : > { %v1995_v24 = vadd.f32 0.5, %v1993_v11  ;;  %v7462_v52 = vld [vmem:[#allocation10 + $0x1ec] ss:$16 sps:$4 sm:$0xff]   ;;  %v7464_v7 = vld [vmem:[#allocation10 + $0x1e0] ss:$16 sps:$4 sm:$0xff]  }
 0x3cf   : > { %v7328_v26 = vadd.f32 %v2010_v10, %v1998_v13  ;;  %v2011_v28 = vmul.f32 %v6084_v23, %v2007_v47  ;;  %v2021_v32 = vadd.f32 0.5, %v2019_v25  ;;  %v7466_v8 = vld [vmem:[#allocation10 + $0x1e8] ss:$16 sps:$4 sm:$0xff]   ;;  %v7472_v10 = vld [vmem:[#allocation10 + $0x4] ss:$16 sps:$4 sm:$0xff]  }
 0x3d0   : > { %v1999_v29 = vmul.f32 %v1995_v24, %v7197_v35  ;;  %v8038_v35 = vld [vmem:[#allocation38_spill] sm:$0xff]  ;;  %v7474_v11 = vld [vmem:[#allocation10 + $0xc] ss:$16 sps:$4 sm:$0xff]  }
 0x3d1   : > { %v2022_v30 = vmul.f32 %v2020_v27, %v7328_v26 }
 0x3d2   : > { %v7332_v31 = vadd.f32 %v2011_v28, %v1999_v29 }
 0x3d3   : > { %5133 = vst [vmem:[%s6768_s14 + $0x20] sm:$0xff] %v2022_v30 }
 0x3d4   : > { %v2023_v48 = vmul.f32 %v2021_v32, %v7332_v31 }
 0x3d6   : > { %v2026_v49 = vpack.c.bf16 %v2023_v48, %v2022_v30  ;;  %5134 = vst [vmem:[%s6768_s14 + $0x28] sm:$0xff] %v2023_v48 }
 0x3d8   : > { %2459 = vmatprep.mubr.bf16.mxu0 %v2026_v49  ;;  %2502 = vmatprep.mubr.bf16.mxu1 %v2026_v49 }
 0x3d9   : > { %2460 = vmatmul.mubr.bf16.vlgmr.msra.gmra.mrb[12].mxu0 %v5798_v20  ;;  %2503 = vmatmul.mubr.bf16.vlgmr.msra.gmra.mrb[12].mxu1 %v5798_v20 }
 0x3da   : > { %2953 = vmatpush1.bf16.msra.mxu0 %v7203_v39  ;;  %2996 = vmatpush1.bf16.msra.mxu1 %v7205_v38  ;;  %v8039_v39 = vld [vmem:[#allocation39_spill] sm:$0xff]  ;;  %v8040_v38 = vld [vmem:[#allocation40_spill] sm:$0xff] }
 0x3db   : > { %2954 = vmatprep.subr.bf16.mxu0 %v7207_v42  ;;  %2997 = vmatprep.subr.bf16.mxu1 %v7209_v40  ;;  %v8041_v42 = vld [vmem:[#allocation41_spill] sm:$0xff]  ;;  %v8042_v40 = vld [vmem:[#allocation42_spill] sm:$0xff] }
 0x3de   : > { %2955 = vmatpush1.bf16.msra.mxu0 %v7213_v14  ;;  %2998 = vmatpush1.bf16.msra.mxu1 %v7215_v43  ;;  %v8043_v14 = vld [vmem:[#allocation43_spill] sm:$0xff]  ;;  %v7364_v43 = vld [vmem:[#allocation10 + $0xe4] ss:$16 sps:$4 sm:$0xff]  }
 0x3df   : > { %2956 = vmatprep.subr.bf16.mxu0 %v7219_v41  ;;  %2999 = vmatprep.subr.bf16.mxu1 %v7221_v44  ;;  %v7366_v41 = vld [vmem:[#allocation10 + $0xec] ss:$16 sps:$4 sm:$0xff]   ;;  %v7368_v44 = vld [vmem:[#allocation10 + $0xe0] ss:$16 sps:$4 sm:$0xff]  }
 0x3e2   : > { %2957 = vmatpush1.bf16.msra.mxu0 %v7225_v45  ;;  %3000 = vmatpush1.bf16.msra.mxu1 %v7227_v46  ;;  %v7370_v45 = vld [vmem:[#allocation10 + $0xe8] ss:$16 sps:$4 sm:$0xff]   ;;  %v7376_v46 = vld [vmem:[#allocation10 + $0x104] ss:$16 sps:$4 sm:$0xff]  }
 0x3e3   : > { %2958 = vmatprep.subr.bf16.mxu0 %v7231_v5  ;;  %3001 = vmatprep.subr.bf16.mxu1 %v8038_v35  ;;  %v7378_v5 = vld [vmem:[#allocation10 + $0x10c] ss:$16 sps:$4 sm:$0xff]  }
 0x3e6   : > { %2959 = vmatpush1.bf16.msra.mxu0 %v8039_v39  ;;  %3002 = vmatpush1.bf16.msra.mxu1 %v8040_v38 }
 0x3e7   : > { %2960 = vmatprep.subr.bf16.mxu0 %v8041_v42  ;;  %3003 = vmatprep.subr.bf16.mxu1 %v8042_v40 }
 0x3ea   : > { %2961 = vmatpush1.bf16.msra.mxu0 %v8043_v14  ;;  %3004 = vmatpush1.bf16.msra.mxu1 %v7251_v36  ;;  %v7400_v36 = vld [vmem:[#allocation10 + $0x144] ss:$16 sps:$4 sm:$0xff]  }
 0x3eb   : > { %2962 = vmatprep.subr.bf16.mxu0 %v7255_v9  ;;  %3005 = vmatprep.subr.bf16.mxu1 %v7257_v37  ;;  %v7402_v9 = vld [vmem:[#allocation10 + $0x14c] ss:$16 sps:$4 sm:$0xff]   ;;  %v7404_v37 = vld [vmem:[#allocation10 + $0x140] ss:$16 sps:$4 sm:$0xff]  }
 0x3ee   : > { %2963 = vmatpush1.bf16.msra.mxu0 %v7261_v6  ;;  %3006 = vmatpush1.bf16.msra.mxu1 %v7263_v21  ;;  %v7380_v6 = vld [vmem:[#allocation10 + $0x100] ss:$16 sps:$4 sm:$0xff]   ;;  %v7382_v21 = vld [vmem:[#allocation10 + $0x108] ss:$16 sps:$4 sm:$0xff]  }
 0x3ef   : > { %2964 = vmatprep.subr.bf16.mxu0 %v7267_v22  ;;  %3007 = vmatprep.subr.bf16.mxu1 %v7269_v34  ;;  %v7388_v22 = vld [vmem:[#allocation10 + $0x124] ss:$16 sps:$4 sm:$0xff]   ;;  %v7390_v34 = vld [vmem:[#allocation10 + $0x12c] ss:$16 sps:$4 sm:$0xff]  }
 0x3f2   : > { %2965 = vmatpush1.bf16.msra.mxu0 %v7273_v33  ;;  %3008 = vmatpush1.bf16.msra.mxu1 %v7275_v19  ;;  %v7392_v33 = vld [vmem:[#allocation10 + $0x120] ss:$16 sps:$4 sm:$0xff]   ;;  %v7394_v19 = vld [vmem:[#allocation10 + $0x128] ss:$16 sps:$4 sm:$0xff]  }
 0x3f3   : > { %2966 = vmatprep.subr.bf16.mxu0 %v7364_v43  ;;  %3009 = vmatprep.subr.bf16.mxu1 %v7366_v41 }
 0x3f6   : > { %2967 = vmatpush1.bf16.msra.mxu0 %v7368_v44  ;;  %3010 = vmatpush1.bf16.msra.mxu1 %v7370_v45 }
 0x3f7   : > { %2968 = vmatprep.subr.bf16.mxu0 %v7376_v46  ;;  %3011 = vmatprep.subr.bf16.mxu1 %v7378_v5 }
 0x3fa   : > { %2969 = vmatpush1.bf16.msra.mxu0 %v7380_v6  ;;  %3012 = vmatpush1.bf16.msra.mxu1 %v7382_v21 }
 0x3fb   : > { %2970 = vmatprep.subr.bf16.mxu0 %v7388_v22  ;;  %3013 = vmatprep.subr.bf16.mxu1 %v7390_v34 }
 0x3fe   : > { %2971 = vmatpush1.bf16.msra.mxu0 %v7392_v33  ;;  %3014 = vmatpush1.bf16.msra.mxu1 %v7394_v19 }
 0x3ff   : > { %2972 = vmatprep.subr.bf16.mxu0 %v7400_v36  ;;  %3015 = vmatprep.subr.bf16.mxu1 %v7402_v9 }
 0x402   : > { %2973 = vmatpush1.bf16.msra.mxu0 %v7404_v37  ;;  %3016 = vmatpush1.bf16.msra.mxu1 %v7406_v50 }
 0x403   : > { %2974 = vmatprep.subr.bf16.mxu0 %v7412_v51  ;;  %3017 = vmatprep.subr.bf16.mxu1 %v7414_v53 }
 0x406   : > { %2975 = vmatpush1.bf16.msra.mxu0 %v7416_v54  ;;  %3018 = vmatpush1.bf16.msra.mxu1 %v7418_v55 }
 0x407   : > { %2976 = vmatprep.subr.bf16.mxu0 %v7424_v56  ;;  %3019 = vmatprep.subr.bf16.mxu1 %v7426_v57 }
 0x40a   : > { %2977 = vmatpush1.bf16.msra.mxu0 %v7428_v58  ;;  %3020 = vmatpush1.bf16.msra.mxu1 %v7430_v59 }
 0x40b   : > { %2978 = vmatprep.subr.bf16.mxu0 %v7436_v60  ;;  %3021 = vmatprep.subr.bf16.mxu1 %v7438_v61 }
 0x40e   : > { %2979 = vmatpush1.bf16.msra.mxu0 %v7440_v62  ;;  %3022 = vmatpush1.bf16.msra.mxu1 %v7442_v63 }
 0x40f   : > { %2980 = vmatprep.subr.bf16.mxu0 %v7448_v0  ;;  %3023 = vmatprep.subr.bf16.mxu1 %v7450_v1 }
 0x412   : > { %2981 = vmatpush1.bf16.msra.mxu0 %v7452_v2  ;;  %3024 = vmatpush1.bf16.msra.mxu1 %v7454_v3 }
 0x413   : > { %2982 = vmatprep.subr.bf16.mxu0 %v7460_v4  ;;  %3025 = vmatprep.subr.bf16.mxu1 %v7462_v52 }
 0x416   : > { %2983 = vmatpush1.bf16.msra.mxu0 %v7464_v7  ;;  %3026 = vmatpush1.bf16.msra.mxu1 %v7466_v8 }
 0x417   : > { %3477 = vmatprep.subr.bf16.mxu0 %v7472_v10  ;;  %3520 = vmatprep.subr.bf16.mxu1 %v7474_v11 }
 0x4ac   : > { %v2461_v12 = vpop.f32.mrb[12].mxu0  ;;  %v2504_v13 = vpop.f32.mrb[12].mxu1 }
 0x4ad   : > { %v2462_v47 = vadd.f32 %v2461_v12, %v7035_v15  ;;  %v2505_v23 = vadd.f32 %v2504_v13, %v7037_v16  ;;  %v2463_v24 = vpop.f32.mrb[13].mxu0  ;;  %v2506_v25 = vpop.f32.mrb[13].mxu1 }
 0x4ae   : > { %v2464_v27 = vadd.f32 %v2463_v24, %v7039_v17  ;;  %v2507_v28 = vadd.f32 %v2506_v25, %v7041_v18  ;;  %v2465_v29 = vpop.f32.mrb[14].mxu0  ;;  %v2508_v30 = vpop.f32.mrb[14].mxu1 }
 0x4af   : > { %v2525_v32 = vmul.f32 0.5, %v2462_v47  ;;  %v2513_v48 = vmul.f32 0.5, %v2505_v23  ;;  %v2466_v20 = vadd.f32 %v2465_v29, %v7035_v15  ;;  %v2509_v49 = vadd.f32 %v2508_v30, %v7037_v16  ;;  %v2467_v35 = vpop.f32.mrb[15].mxu0  ;;  %v2510_v39 = vpop.f32.mrb[15].mxu1 }
 0x4b0   : > { %6085 = vtanh.f32 %v2464_v27  ;;  %v2539_v38 = vmul.f32 0.5, %v2507_v28  ;;  %v2511_v42 = vadd.f32 %v2510_v39, %v7041_v18  ;;  %v2468_v13 = vadd.f32 %v2467_v35, %v7039_v17 }
 0x4b1   : > { %6087 = vtanh.f32 %v2525_v32  ;;  %v2526_v40 = vmul.f32 0.5, %v2466_v20  ;;  %v2514_v14 = vmul.f32 0.5, %v2509_v49 }
 0x4b2   : > { %6089 = vtanh.f32 %v2513_v48  ;;  %v2540_v12 = vmul.f32 0.5, %v2511_v42 }
 0x4b3   : > { %6091 = vtanh.f32 %v2539_v38 }
 0x4b4   : > { %6093 = vtanh.f32 %v2526_v40 }
 0x4b5   : > { %6095 = vtanh.f32 %v2514_v14 }
 0x4b6   : > { %6097 = vtanh.f32 %v2540_v12 }
 0x4b7   : > { %6099 = vtanh.f32 %v2468_v13 }
 0x4ba   : > { %v6086_v47 = vpop.eup %6085 }
 0x4bb   : > { %v6088_v23 = vpop.eup %6087 }
 0x4bc   : > { %v6090_v24 = vpop.eup %6089  ;;  %v2529_v25 = vmul.f32 0.5, %v6088_v23 }
 0x4bd   : > { %v6092_v27 = vpop.eup %6091  ;;  %v2517_v28 = vmul.f32 0.5, %v6090_v24 }
 0x4be   : > { %v6094_v29 = vpop.eup %6093  ;;  %v2531_v30 = vadd.f32 0.5, %v2529_v25  ;;  %v2543_v49 = vmul.f32 0.5, %v6092_v27 }
 0x4bf   : > { %v6096_v32 = vpop.eup %6095  ;;  %v2519_v20 = vadd.f32 0.5, %v2517_v28  ;;  %v2530_v48 = vmul.f32 0.5, %v6094_v29 }
 0x4c0   : > { %v2535_v39 = vmul.f32 %v6086_v47, %v2531_v30  ;;  %v2518_v38 = vmul.f32 0.5, %v6096_v32  ;;  %v6098_v35 = vpop.eup %6097  ;;  %v2545_v24 = vadd.f32 0.5, %v2543_v49  ;;  %v7503_v49 = vld [vmem:[#allocation10 + $0x2c] ss:$16 sps:$4 sm:$0xff]  }
 0x4c1   : > { %v2523_v42 = vmul.f32 %v2519_v20, %v7328_v26  ;;  %v2532_v40 = vadd.f32 0.5, %v2530_v48  ;;  %v6100_v14 = vpop.eup %6099  ;;  %v2544_v13 = vmul.f32 0.5, %v6098_v35  ;;  %v5841_v26 = vld [vmem:[%s6749_s19 + $0x20] sm:$0xff]   ;;  %v7499_v48 = vld [vmem:[#allocation10 + $0x8] ss:$16 sps:$4 sm:$0xff]  }
 0x4c2   : > { %v2520_v12 = vadd.f32 0.5, %v2518_v38  ;;  %v7497_v20 = vld [vmem:[#allocation10] ss:$16 sps:$4 sm:$0xff]   ;;  %v7509_v38 = vld [vmem:[#allocation10 + $0x28] ss:$16 sps:$4 sm:$0xff]  }
 0x4c3   : > { %v7487_v23 = vadd.f32 %v2535_v39, %v2523_v42  ;;  %v2536_v25 = vmul.f32 %v6100_v14, %v2532_v40  ;;  %v2546_v47 = vadd.f32 0.5, %v2544_v13  ;;  %v7501_v39 = vld [vmem:[#allocation10 + $0x24] ss:$16 sps:$4 sm:$0xff]   ;;  %v7515_v42 = vld [vmem:[#allocation10 + $0x4c] ss:$16 sps:$4 sm:$0xff]  }
 0x4c4   : > { %v2524_v28 = vmul.f32 %v2520_v12, %v7332_v31  ;;  %v7507_v31 = vld [vmem:[#allocation10 + $0x20] ss:$16 sps:$4 sm:$0xff]   ;;  %v7513_v35 = vld [vmem:[#allocation10 + $0x44] ss:$16 sps:$4 sm:$0xff]   ;;  %v7521_v14 = vld [vmem:[#allocation10 + $0x48] ss:$16 sps:$4 sm:$0xff]  }
 0x4c5   : > { %v2547_v27 = vmul.f32 %v2545_v24, %v7487_v23  ;;  %v7519_v40 = vld [vmem:[#allocation10 + $0x40] ss:$16 sps:$4 sm:$0xff]   ;;  %v7525_v12 = vld [vmem:[#allocation10 + $0x64] ss:$16 sps:$4 sm:$0xff]   ;;  %v7527_v13 = vld [vmem:[#allocation10 + $0x6c] ss:$16 sps:$4 sm:$0xff]  }
 0x4c6   : > { %v7491_v29 = vadd.f32 %v2536_v25, %v2524_v28  ;;  %8044 = vst [vmem:[#allocation38_spill] sm:$0xff] %v7527_v13  ;;  %v7531_v24 = vld [vmem:[#allocation10 + $0x60] ss:$16 sps:$4 sm:$0xff]   ;;  %v7533_v25 = vld [vmem:[#allocation10 + $0x68] ss:$16 sps:$4 sm:$0xff]  }
 0x4c7   : > { %5202 = vst [vmem:[%s6768_s14 + $0x30] sm:$0xff] %v2547_v27  ;;  %8045 = vst [vmem:[#allocation39_spill] sm:$0xff] %v7531_v24  ;;  %v7537_v28 = vld [vmem:[#allocation10 + $0x84] ss:$16 sps:$4 sm:$0xff]  }
 0x4c8   : > { %v2548_v30 = vmul.f32 %v2546_v47, %v7491_v29  ;;  %8046 = vst [vmem:[#allocation40_spill] sm:$0xff] %v7533_v25  ;;  %8047 = vst [vmem:[#allocation41_spill] sm:$0xff] %v7537_v28  ;;  %v7543_v47 = vld [vmem:[#allocation10 + $0x80] ss:$16 sps:$4 sm:$0xff]  }
 0x4c9   : > { %8049 = vst [vmem:[#allocation43_spill] sm:$0xff] %v7543_v47 }
 0x4ca   : > { %v2551_v32 = vpack.c.bf16 %v2548_v30, %v2547_v27  ;;  %5203 = vst [vmem:[%s6768_s14 + $0x38] sm:$0xff] %v2548_v30  ;;  %v7539_v27 = vld [vmem:[#allocation10 + $0x8c] ss:$16 sps:$4 sm:$0xff]   ;;  %v7545_v30 = vld [vmem:[#allocation10 + $0x88] ss:$16 sps:$4 sm:$0xff]  }
 0x4cb   : > { %8048 = vst [vmem:[#allocation42_spill] sm:$0xff] %v7539_v27 }
 0x4cc   : > { %2984 = vmatprep.mubr.bf16.mxu0 %v2551_v32  ;;  %3027 = vmatprep.mubr.bf16.mxu1 %v2551_v32  ;;  %v7551_v32 = vld [vmem:[#allocation10 + $0xac] ss:$16 sps:$4 sm:$0xff]  }
 0x4cd   : > { %2985 = vmatmul.mubr.bf16.vlgmr.msra.gmra.mrb[16].mxu0 %v5841_v26  ;;  %3028 = vmatmul.mubr.bf16.vlgmr.msra.gmra.mrb[16].mxu1 %v5841_v26  ;;  %v7549_v26 = vld [vmem:[#allocation10 + $0xa4] ss:$16 sps:$4 sm:$0xff]  }
 0x4ce   : > { %3478 = vmatpush1.bf16.msra.mxu0 %v7497_v20  ;;  %3521 = vmatpush1.bf16.msra.mxu1 %v7499_v48 }
 0x4cf   : > { %3479 = vmatprep.subr.bf16.mxu0 %v7501_v39  ;;  %3522 = vmatprep.subr.bf16.mxu1 %v7503_v49 }
 0x4d2   : > { %3480 = vmatpush1.bf16.msra.mxu0 %v7507_v31  ;;  %3523 = vmatpush1.bf16.msra.mxu1 %v7509_v38 }
 0x4d3   : > { %3481 = vmatprep.subr.bf16.mxu0 %v7513_v35  ;;  %3524 = vmatprep.subr.bf16.mxu1 %v7515_v42 }
 0x4d6   : > { %3482 = vmatpush1.bf16.msra.mxu0 %v7519_v40  ;;  %3525 = vmatpush1.bf16.msra.mxu1 %v7521_v14 }
 0x4d7   : > { %3483 = vmatprep.subr.bf16.mxu0 %v7525_v12  ;;  %3526 = vmatprep.subr.bf16.mxu1 %v7527_v13  ;;  %v7555_v13 = vld [vmem:[#allocation10 + $0xa0] ss:$16 sps:$4 sm:$0xff]  }
 0x4da   : > { %3484 = vmatpush1.bf16.msra.mxu0 %v7531_v24  ;;  %3527 = vmatpush1.bf16.msra.mxu1 %v7533_v25  ;;  %v7557_v24 = vld [vmem:[#allocation10 + $0xa8] ss:$16 sps:$4 sm:$0xff]   ;;  %v7561_v25 = vld [vmem:[#allocation10 + $0xc4] ss:$16 sps:$4 sm:$0xff]  }
 0x4db   : > { %3485 = vmatprep.subr.bf16.mxu0 %v7537_v28  ;;  %3528 = vmatprep.subr.bf16.mxu1 %v7539_v27  ;;  %v7563_v28 = vld [vmem:[#allocation10 + $0xcc] ss:$16 sps:$4 sm:$0xff]   ;;  %v7567_v27 = vld [vmem:[#allocation10 + $0xc0] ss:$16 sps:$4 sm:$0xff]  }
 0x4de   : > { %3486 = vmatpush1.bf16.msra.mxu0 %v7543_v47  ;;  %3529 = vmatpush1.bf16.msra.mxu1 %v7545_v30  ;;  %v7569_v47 = vld [vmem:[#allocation10 + $0xc8] ss:$16 sps:$4 sm:$0xff]  }
 0x4df   : > { %3487 = vmatprep.subr.bf16.mxu0 %v7549_v26  ;;  %3530 = vmatprep.subr.bf16.mxu1 %v7551_v32 }
 0x4e2   : > { %3488 = vmatpush1.bf16.msra.mxu0 %v7555_v13  ;;  %3531 = vmatpush1.bf16.msra.mxu1 %v7557_v24 }
 0x4e3   : > { %3489 = vmatprep.subr.bf16.mxu0 %v7561_v25  ;;  %3532 = vmatprep.subr.bf16.mxu1 %v7563_v28 }
 0x4e6   : > { %3490 = vmatpush1.bf16.msra.mxu0 %v7567_v27  ;;  %3533 = vmatpush1.bf16.msra.mxu1 %v7569_v47 }
 0x4e7   : > { %3491 = vmatprep.subr.bf16.mxu0 %v7364_v43  ;;  %3534 = vmatprep.subr.bf16.mxu1 %v7366_v41 }
 0x4ea   : > { %3492 = vmatpush1.bf16.msra.mxu0 %v7368_v44  ;;  %3535 = vmatpush1.bf16.msra.mxu1 %v7370_v45 }
 0x4eb   : > { %3493 = vmatprep.subr.bf16.mxu0 %v7376_v46  ;;  %3536 = vmatprep.subr.bf16.mxu1 %v7378_v5 }
 0x4ee   : > { %3494 = vmatpush1.bf16.msra.mxu0 %v7380_v6  ;;  %3537 = vmatpush1.bf16.msra.mxu1 %v7382_v21 }
 0x4ef   : > { %3495 = vmatprep.subr.bf16.mxu0 %v7388_v22  ;;  %3538 = vmatprep.subr.bf16.mxu1 %v7390_v34 }
 0x4f2   : > { %3496 = vmatpush1.bf16.msra.mxu0 %v7392_v33  ;;  %3539 = vmatpush1.bf16.msra.mxu1 %v7394_v19 }
 0x4f3   : > { %3497 = vmatprep.subr.bf16.mxu0 %v7400_v36  ;;  %3540 = vmatprep.subr.bf16.mxu1 %v7402_v9 }
 0x4f6   : > { %3498 = vmatpush1.bf16.msra.mxu0 %v7404_v37  ;;  %3541 = vmatpush1.bf16.msra.mxu1 %v7406_v50 }
 0x4f7   : > { %3499 = vmatprep.subr.bf16.mxu0 %v7412_v51  ;;  %3542 = vmatprep.subr.bf16.mxu1 %v7414_v53 }
 0x4fa   : > { %3500 = vmatpush1.bf16.msra.mxu0 %v7416_v54  ;;  %3543 = vmatpush1.bf16.msra.mxu1 %v7418_v55 }
 0x4fb   : > { %3501 = vmatprep.subr.bf16.mxu0 %v7424_v56  ;;  %3544 = vmatprep.subr.bf16.mxu1 %v7426_v57 }
 0x4fe   : > { %3502 = vmatpush1.bf16.msra.mxu0 %v7428_v58  ;;  %3545 = vmatpush1.bf16.msra.mxu1 %v7430_v59 }
 0x4ff   : > { %3503 = vmatprep.subr.bf16.mxu0 %v7436_v60  ;;  %3546 = vmatprep.subr.bf16.mxu1 %v7438_v61 }
 0x502   : > { %3504 = vmatpush1.bf16.msra.mxu0 %v7440_v62  ;;  %3547 = vmatpush1.bf16.msra.mxu1 %v7442_v63 }
 0x503   : > { %3505 = vmatprep.subr.bf16.mxu0 %v7448_v0  ;;  %3548 = vmatprep.subr.bf16.mxu1 %v7450_v1 }
 0x506   : > { %3506 = vmatpush1.bf16.msra.mxu0 %v7452_v2  ;;  %3549 = vmatpush1.bf16.msra.mxu1 %v7454_v3 }
 0x507   : > { %3507 = vmatprep.subr.bf16.mxu0 %v7460_v4  ;;  %3550 = vmatprep.subr.bf16.mxu1 %v7462_v52 }
 0x50a   : > { %3508 = vmatpush1.bf16.msra.mxu0 %v7464_v7  ;;  %3551 = vmatpush1.bf16.msra.mxu1 %v7466_v8 }
 0x50b   : > { %4002 = vmatprep.subr.bf16.mxu0 %v7472_v10  ;;  %4045 = vmatprep.subr.bf16.mxu1 %v7474_v11 }
 0x5a0   : > { %v2986_v43 = vpop.f32.mrb[16].mxu0  ;;  %v3029_v41 = vpop.f32.mrb[16].mxu1 }
 0x5a1   : > { %v2987_v44 = vadd.f32 %v2986_v43, %v7035_v15  ;;  %v3030_v45 = vadd.f32 %v3029_v41, %v7037_v16  ;;  %v2988_v46 = vpop.f32.mrb[17].mxu0  ;;  %v3031_v5 = vpop.f32.mrb[17].mxu1 }
 0x5a2   : > { %v2989_v6 = vadd.f32 %v2988_v46, %v7039_v17  ;;  %v3032_v21 = vadd.f32 %v3031_v5, %v7041_v18  ;;  %v2990_v22 = vpop.f32.mrb[18].mxu0  ;;  %v3033_v34 = vpop.f32.mrb[18].mxu1 }
 0x5a3   : > { %v3050_v33 = vmul.f32 0.5, %v2987_v44  ;;  %v3038_v19 = vmul.f32 0.5, %v3030_v45  ;;  %v2991_v36 = vadd.f32 %v2990_v22, %v7035_v15  ;;  %v3034_v9 = vadd.f32 %v3033_v34, %v7037_v16  ;;  %v2992_v37 = vpop.f32.mrb[19].mxu0  ;;  %v3035_v50 = vpop.f32.mrb[19].mxu1 }
 0x5a4   : > { %6101 = vtanh.f32 %v2989_v6  ;;  %v3064_v51 = vmul.f32 0.5, %v3032_v21  ;;  %v3036_v53 = vadd.f32 %v3035_v50, %v7041_v18  ;;  %v2993_v57 = vadd.f32 %v2992_v37, %v7039_v17  ;;  %v7706_v37 = vld [vmem:[#allocation10 + $0x164] ss:$16 sps:$4 sm:$0xff]   ;;  %v7708_v50 = vld [vmem:[#allocation10 + $0x16c] ss:$16 sps:$4 sm:$0xff]  }
 0x5a5   : > { %6103 = vtanh.f32 %v3050_v33  ;;  %v3051_v54 = vmul.f32 0.5, %v2991_v36  ;;  %v3039_v55 = vmul.f32 0.5, %v3034_v9  ;;  %v7700_v9 = vld [vmem:[#allocation10 + $0x148] ss:$16 sps:$4 sm:$0xff]  }
 0x5a6   : > { %6105 = vtanh.f32 %v3038_v19  ;;  %v3065_v56 = vmul.f32 0.5, %v3036_v53  ;;  %v7712_v53 = vld [vmem:[#allocation10 + $0x168] ss:$16 sps:$4 sm:$0xff]  }
 0x5a7   : > { %6107 = vtanh.f32 %v3064_v51  ;;  %v7710_v51 = vld [vmem:[#allocation10 + $0x160] ss:$16 sps:$4 sm:$0xff]  }
 0x5a8   : > { %6109 = vtanh.f32 %v3051_v54  ;;  %v7718_v54 = vld [vmem:[#allocation10 + $0x184] ss:$16 sps:$4 sm:$0xff]  }
 0x5a9   : > { %6111 = vtanh.f32 %v3039_v55  ;;  %v7720_v55 = vld [vmem:[#allocation10 + $0x18c] ss:$16 sps:$4 sm:$0xff]  }
 0x5aa   : > { %6113 = vtanh.f32 %v3065_v56  ;;  %v7722_v56 = vld [vmem:[#allocation10 + $0x180] ss:$16 sps:$4 sm:$0xff]  }
 0x5ab   : > { %6115 = vtanh.f32 %v2993_v57  ;;  %v7724_v57 = vld [vmem:[#allocation10 + $0x188] ss:$16 sps:$4 sm:$0xff]  }
 0x5ae   : > { %v6102_v58 = vpop.eup %6101 }
 0x5af   : > { %v6104_v59 = vpop.eup %6103 }
 0x5b0   : > { %v6106_v60 = vpop.eup %6105  ;;  %v3054_v61 = vmul.f32 0.5, %v6104_v59  ;;  %v7732_v59 = vld [vmem:[#allocation10 + $0x1ac] ss:$16 sps:$4 sm:$0xff]  }
 0x5b1   : > { %v6108_v62 = vpop.eup %6107  ;;  %v3042_v63 = vmul.f32 0.5, %v6106_v60  ;;  %v7734_v60 = vld [vmem:[#allocation10 + $0x1a0] ss:$16 sps:$4 sm:$0xff]  }
 0x5b2   : > { %v6110_v0 = vpop.eup %6109  ;;  %v3056_v1 = vadd.f32 0.5, %v3054_v61  ;;  %v3068_v4 = vmul.f32 0.5, %v6108_v62  ;;  %v7736_v61 = vld [vmem:[#allocation10 + $0x1a8] ss:$16 sps:$4 sm:$0xff]   ;;  %v7742_v62 = vld [vmem:[#allocation10 + $0x1c4] ss:$16 sps:$4 sm:$0xff]  }
 0x5b3   : > { %v6112_v2 = vpop.eup %6111  ;;  %v3044_v3 = vadd.f32 0.5, %v3042_v63  ;;  %v3055_v52 = vmul.f32 0.5, %v6110_v0  ;;  %v7744_v63 = vld [vmem:[#allocation10 + $0x1cc] ss:$16 sps:$4 sm:$0xff]   ;;  %v7746_v0 = vld [vmem:[#allocation10 + $0x1c0] ss:$16 sps:$4 sm:$0xff]  }
 0x5b4   : > { %v3060_v7 = vmul.f32 %v6102_v58, %v3056_v1  ;;  %v3043_v8 = vmul.f32 0.5, %v6112_v2  ;;  %v6114_v10 = vpop.eup %6113  ;;  %v3070_v5 = vadd.f32 0.5, %v3068_v4  ;;  %v7730_v58 = vld [vmem:[#allocation10 + $0x1a4] ss:$16 sps:$4 sm:$0xff]   ;;  %v7748_v1 = vld [vmem:[#allocation10 + $0x1c8] ss:$16 sps:$4 sm:$0xff]  }
 0x5b5   : > { %v3048_v11 = vmul.f32 %v3044_v3, %v7487_v23  ;;  %v3057_v43 = vadd.f32 0.5, %v3055_v52  ;;  %v6116_v41 = vpop.eup %6115  ;;  %v3069_v45 = vmul.f32 0.5, %v6114_v10  ;;  %v5896_v23 = vld [vmem:[%s6749_s19 + $0x28] sm:$0xff]   ;;  %v7754_v2 = vld [vmem:[#allocation10 + $0x1e4] ss:$16 sps:$4 sm:$0xff]  }
 0x5b6   : > { %v3045_v44 = vadd.f32 0.5, %v3043_v8  ;;  %v7756_v3 = vld [vmem:[#allocation10 + $0x1ec] ss:$16 sps:$4 sm:$0xff]   ;;  %v7758_v4 = vld [vmem:[#allocation10 + $0x1e0] ss:$16 sps:$4 sm:$0xff]  }
 0x5b7   : > { %v7622_v46 = vadd.f32 %v3060_v7, %v3048_v11  ;;  %v3061_v6 = vmul.f32 %v6116_v41, %v3057_v43  ;;  %v3071_v33 = vadd.f32 0.5, %v3069_v45  ;;  %v7760_v52 = vld [vmem:[#allocation10 + $0x1e8] ss:$16 sps:$4 sm:$0xff]   ;;  %v5997_v8 = vld [vmem:[#allocation10 + $0x4] ss:$16 sps:$4 sm:$0xff]  }
 0x5b8   : > { %v3049_v21 = vmul.f32 %v3045_v44, %v7491_v29  ;;  %v8050_v29 = vld [vmem:[#allocation38_spill] sm:$0xff]  ;;  %v7767_v7 = vld [vmem:[%s6749_s19 + $0x38] sm:$0xff]  }
 0x5b9   : > { %v3072_v22 = vmul.f32 %v3070_v5, %v7622_v46  ;;  %v6000_v10 = vld [vmem:[#allocation10 + $0xc] ss:$16 sps:$4 sm:$0xff]  }
 0x5ba   : > { %v7626_v34 = vadd.f32 %v3061_v6, %v3049_v21 }
 0x5bb   : > { %5271 = vst [vmem:[%s6768_s14 + $0x40] sm:$0xff] %v3072_v22 }
 0x5bc   : > { %v3073_v19 = vmul.f32 %v3071_v33, %v7626_v34 }
 0x5be   : > { %v3076_v36 = vpack.c.bf16 %v3073_v19, %v3072_v22  ;;  %5272 = vst [vmem:[%s6768_s14 + $0x48] sm:$0xff] %v3073_v19 }
 0x5c0   : > { %3509 = vmatprep.mubr.bf16.mxu0 %v3076_v36  ;;  %3552 = vmatprep.mubr.bf16.mxu1 %v3076_v36 }
 0x5c1   : > { %3510 = vmatmul.mubr.bf16.vlgmr.msra.gmra.mrb[20].mxu0 %v5896_v23  ;;  %3553 = vmatmul.mubr.bf16.vlgmr.msra.gmra.mrb[20].mxu1 %v5896_v23 }
 0x5c2   : > { %4003 = vmatpush1.bf16.msra.mxu0 %v7497_v20  ;;  %4046 = vmatpush1.bf16.msra.mxu1 %v7499_v48  ;;  %v8051_v20 = vld [vmem:[#allocation39_spill] sm:$0xff]  ;;  %v8052_v48 = vld [vmem:[#allocation40_spill] sm:$0xff] }
 0x5c3   : > { %4004 = vmatprep.subr.bf16.mxu0 %v7501_v39  ;;  %4047 = vmatprep.subr.bf16.mxu1 %v7503_v49  ;;  %v8053_v39 = vld [vmem:[#allocation41_spill] sm:$0xff]  ;;  %v8054_v49 = vld [vmem:[#allocation42_spill] sm:$0xff] }
 0x5c6   : > { %4005 = vmatpush1.bf16.msra.mxu0 %v7507_v31  ;;  %4048 = vmatpush1.bf16.msra.mxu1 %v7509_v38  ;;  %v8055_v31 = vld [vmem:[#allocation43_spill] sm:$0xff]  ;;  %v7658_v38 = vld [vmem:[#allocation10 + $0xe4] ss:$16 sps:$4 sm:$0xff]  }
 0x5c7   : > { %4006 = vmatprep.subr.bf16.mxu0 %v7513_v35  ;;  %4049 = vmatprep.subr.bf16.mxu1 %v7515_v42  ;;  %v7660_v35 = vld [vmem:[#allocation10 + $0xec] ss:$16 sps:$4 sm:$0xff]   ;;  %v7662_v42 = vld [vmem:[#allocation10 + $0xe0] ss:$16 sps:$4 sm:$0xff]  }
 0x5ca   : > { %4007 = vmatpush1.bf16.msra.mxu0 %v7519_v40  ;;  %4050 = vmatpush1.bf16.msra.mxu1 %v7521_v14  ;;  %v7664_v40 = vld [vmem:[#allocation10 + $0xe8] ss:$16 sps:$4 sm:$0xff]   ;;  %v7670_v14 = vld [vmem:[#allocation10 + $0x104] ss:$16 sps:$4 sm:$0xff]  }
 0x5cb   : > { %4008 = vmatprep.subr.bf16.mxu0 %v7525_v12  ;;  %4051 = vmatprep.subr.bf16.mxu1 %v8050_v29  ;;  %v7672_v12 = vld [vmem:[#allocation10 + $0x10c] ss:$16 sps:$4 sm:$0xff]  }
 0x5ce   : > { %4009 = vmatpush1.bf16.msra.mxu0 %v8051_v20  ;;  %4052 = vmatpush1.bf16.msra.mxu1 %v8052_v48 }
 0x5cf   : > { %4010 = vmatprep.subr.bf16.mxu0 %v8053_v39  ;;  %4053 = vmatprep.subr.bf16.mxu1 %v8054_v49 }
 0x5d2   : > { %4011 = vmatpush1.bf16.msra.mxu0 %v8055_v31  ;;  %4054 = vmatpush1.bf16.msra.mxu1 %v7545_v30  ;;  %v7694_v30 = vld [vmem:[#allocation10 + $0x144] ss:$16 sps:$4 sm:$0xff]  }
 0x5d3   : > { %4012 = vmatprep.subr.bf16.mxu0 %v7549_v26  ;;  %4055 = vmatprep.subr.bf16.mxu1 %v7551_v32  ;;  %v7696_v26 = vld [vmem:[#allocation10 + $0x14c] ss:$16 sps:$4 sm:$0xff]   ;;  %v7698_v32 = vld [vmem:[#allocation10 + $0x140] ss:$16 sps:$4 sm:$0xff]  }
 0x5d6   : > { %4013 = vmatpush1.bf16.msra.mxu0 %v7555_v13  ;;  %4056 = vmatpush1.bf16.msra.mxu1 %v7557_v24  ;;  %v7674_v13 = vld [vmem:[#allocation10 + $0x100] ss:$16 sps:$4 sm:$0xff]   ;;  %v7676_v24 = vld [vmem:[#allocation10 + $0x108] ss:$16 sps:$4 sm:$0xff]  }
 0x5d7   : > { %4014 = vmatprep.subr.bf16.mxu0 %v7561_v25  ;;  %4057 = vmatprep.subr.bf16.mxu1 %v7563_v28  ;;  %v7682_v25 = vld [vmem:[#allocation10 + $0x124] ss:$16 sps:$4 sm:$0xff]   ;;  %v7684_v28 = vld [vmem:[#allocation10 + $0x12c] ss:$16 sps:$4 sm:$0xff]  }
 0x5da   : > { %4015 = vmatpush1.bf16.msra.mxu0 %v7567_v27  ;;  %4058 = vmatpush1.bf16.msra.mxu1 %v7569_v47  ;;  %v7686_v27 = vld [vmem:[#allocation10 + $0x120] ss:$16 sps:$4 sm:$0xff]   ;;  %v7688_v47 = vld [vmem:[#allocation10 + $0x128] ss:$16 sps:$4 sm:$0xff]  }
 0x5db   : > { %4016 = vmatprep.subr.bf16.mxu0 %v7658_v38  ;;  %4059 = vmatprep.subr.bf16.mxu1 %v7660_v35 }
 0x5de   : > { %4017 = vmatpush1.bf16.msra.mxu0 %v7662_v42  ;;  %4060 = vmatpush1.bf16.msra.mxu1 %v7664_v40 }
 0x5df   : > { %4018 = vmatprep.subr.bf16.mxu0 %v7670_v14  ;;  %4061 = vmatprep.subr.bf16.mxu1 %v7672_v12 }
 0x5e2   : > { %4019 = vmatpush1.bf16.msra.mxu0 %v7674_v13  ;;  %4062 = vmatpush1.bf16.msra.mxu1 %v7676_v24 }
 0x5e3   : > { %4020 = vmatprep.subr.bf16.mxu0 %v7682_v25  ;;  %4063 = vmatprep.subr.bf16.mxu1 %v7684_v28 }
 0x5e6   : > { %4021 = vmatpush1.bf16.msra.mxu0 %v7686_v27  ;;  %4064 = vmatpush1.bf16.msra.mxu1 %v7688_v47 }
 0x5e7   : > { %4022 = vmatprep.subr.bf16.mxu0 %v7694_v30  ;;  %4065 = vmatprep.subr.bf16.mxu1 %v7696_v26 }
 0x5ea   : > { %4023 = vmatpush1.bf16.msra.mxu0 %v7698_v32  ;;  %4066 = vmatpush1.bf16.msra.mxu1 %v7700_v9 }
 0x5eb   : > { %4024 = vmatprep.subr.bf16.mxu0 %v7706_v37  ;;  %4067 = vmatprep.subr.bf16.mxu1 %v7708_v50 }
 0x5ee   : > { %4025 = vmatpush1.bf16.msra.mxu0 %v7710_v51  ;;  %4068 = vmatpush1.bf16.msra.mxu1 %v7712_v53 }
 0x5ef   : > { %4026 = vmatprep.subr.bf16.mxu0 %v7718_v54  ;;  %4069 = vmatprep.subr.bf16.mxu1 %v7720_v55 }
 0x5f2   : > { %4027 = vmatpush1.bf16.msra.mxu0 %v7722_v56  ;;  %4070 = vmatpush1.bf16.msra.mxu1 %v7724_v57 }
 0x5f3   : > { %4028 = vmatprep.subr.bf16.mxu0 %v7730_v58  ;;  %4071 = vmatprep.subr.bf16.mxu1 %v7732_v59 }
 0x5f6   : > { %4029 = vmatpush1.bf16.msra.mxu0 %v7734_v60  ;;  %4072 = vmatpush1.bf16.msra.mxu1 %v7736_v61 }
 0x5f7   : > { %4030 = vmatprep.subr.bf16.mxu0 %v7742_v62  ;;  %4073 = vmatprep.subr.bf16.mxu1 %v7744_v63 }
 0x5fa   : > { %4031 = vmatpush1.bf16.msra.mxu0 %v7746_v0  ;;  %4074 = vmatpush1.bf16.msra.mxu1 %v7748_v1 }
 0x5fb   : > { %4032 = vmatprep.subr.bf16.mxu0 %v7754_v2  ;;  %4075 = vmatprep.subr.bf16.mxu1 %v7756_v3 }
 0x5fe   : > { %4033 = vmatpush1.bf16.msra.mxu0 %v7758_v4  ;;  %4076 = vmatpush1.bf16.msra.mxu1 %v7760_v52 }
 0x5ff   : > { %4527 = vmatprep.subr.bf16.mxu0 %v5997_v8  ;;  %4570 = vmatprep.subr.bf16.mxu1 %v6000_v10 }
 0x694   : > { %v3511_v11 = vpop.f32.mrb[20].mxu0  ;;  %v3554_v43 = vpop.f32.mrb[20].mxu1 }
 0x695   : > { %v3512_v41 = vadd.f32 %v3511_v11, %v7035_v15  ;;  %v3555_v44 = vadd.f32 %v3554_v43, %v7037_v16  ;;  %v3513_v45 = vpop.f32.mrb[21].mxu0  ;;  %v3556_v5 = vpop.f32.mrb[21].mxu1 }
 0x696   : > { %v3514_v6 = vadd.f32 %v3513_v45, %v7039_v17  ;;  %v3557_v21 = vadd.f32 %v3556_v5, %v7041_v18  ;;  %v3515_v22 = vpop.f32.mrb[22].mxu0  ;;  %v3558_v33 = vpop.f32.mrb[22].mxu1 }
 0x697   : > { %v3575_v19 = vmul.f32 0.5, %v3512_v41  ;;  %v3563_v23 = vmul.f32 0.5, %v3555_v44  ;;  %v3516_v36 = vadd.f32 %v3515_v22, %v7035_v15  ;;  %v3559_v29 = vadd.f32 %v3558_v33, %v7037_v16  ;;  %v3517_v20 = vpop.f32.mrb[23].mxu0  ;;  %v3560_v48 = vpop.f32.mrb[23].mxu1 }
 0x698   : > { %6117 = vtanh.f32 %v3514_v6  ;;  %v3589_v39 = vmul.f32 0.5, %v3557_v21  ;;  %v3561_v49 = vadd.f32 %v3560_v48, %v7041_v18  ;;  %v3518_v11 = vadd.f32 %v3517_v20, %v7039_v17 }
 0x699   : > { %6119 = vtanh.f32 %v3575_v19  ;;  %v3576_v31 = vmul.f32 0.5, %v3516_v36  ;;  %v3564_v8 = vmul.f32 0.5, %v3559_v29 }
 0x69a   : > { %6121 = vtanh.f32 %v3563_v23  ;;  %v3590_v10 = vmul.f32 0.5, %v3561_v49 }
 0x69b   : > { %6123 = vtanh.f32 %v3589_v39 }
 0x69c   : > { %6125 = vtanh.f32 %v3576_v31 }
 0x69d   : > { %6127 = vtanh.f32 %v3564_v8 }
 0x69e   : > { %6129 = vtanh.f32 %v3590_v10 }
 0x69f   : > { %6131 = vtanh.f32 %v3518_v11 }
 0x6a2   : > { %v6118_v43 = vpop.eup %6117 }
 0x6a3   : > { %v6120_v41 = vpop.eup %6119 }
 0x6a4   : > { %v6122_v44 = vpop.eup %6121  ;;  %v3579_v45 = vmul.f32 0.5, %v6120_v41 }
 0x6a5   : > { %v6124_v5 = vpop.eup %6123  ;;  %v3567_v6 = vmul.f32 0.5, %v6122_v44 }
 0x6a6   : > { %v6126_v21 = vpop.eup %6125  ;;  %v3581_v22 = vadd.f32 0.5, %v3579_v45  ;;  %v3593_v36 = vmul.f32 0.5, %v6124_v5 }
 0x6a7   : > { %v6128_v33 = vpop.eup %6127  ;;  %v3569_v19 = vadd.f32 0.5, %v3567_v6  ;;  %v3580_v23 = vmul.f32 0.5, %v6126_v21 }
 0x6a8   : > { %v3585_v29 = vmul.f32 %v6118_v43, %v3581_v22  ;;  %v3568_v48 = vmul.f32 0.5, %v6128_v33  ;;  %v6130_v20 = vpop.eup %6129  ;;  %v3595_v41 = vadd.f32 0.5, %v3593_v36  ;;  %v5995_v33 = vld [vmem:[#allocation10] ss:$16 sps:$4 sm:$0xff]   ;;  %v6004_v36 = vld [vmem:[#allocation10 + $0x28] ss:$16 sps:$4 sm:$0xff]  }
 0x6a9   : > { %v3573_v39 = vmul.f32 %v3569_v19, %v7622_v46  ;;  %v3582_v49 = vadd.f32 0.5, %v3580_v23  ;;  %v6132_v31 = vpop.eup %6131  ;;  %v3594_v10 = vmul.f32 0.5, %v6130_v20  ;;  %v5939_v46 = vld [vmem:[%s6749_s19 + $0x30] sm:$0xff]   ;;  %v5998_v19 = vld [vmem:[#allocation10 + $0x8] ss:$16 sps:$4 sm:$0xff]  }
 0x6aa   : > { %v3570_v8 = vadd.f32 0.5, %v3568_v48  ;;  %v6003_v23 = vld [vmem:[#allocation10 + $0x24] ss:$16 sps:$4 sm:$0xff]   ;;  %v6012_v20 = vld [vmem:[#allocation10 + $0x4c] ss:$16 sps:$4 sm:$0xff]  }
 0x6ab   : > { %v7778_v11 = vadd.f32 %v3585_v29, %v3573_v39  ;;  %v3586_v44 = vmul.f32 %v6132_v31, %v3582_v49  ;;  %v3596_v43 = vadd.f32 0.5, %v3594_v10  ;;  %v6006_v29 = vld [vmem:[#allocation10 + $0x2c] ss:$16 sps:$4 sm:$0xff]   ;;  %v6009_v48 = vld [vmem:[#allocation10 + $0x44] ss:$16 sps:$4 sm:$0xff]  }
 0x6ac   : > { %v3574_v45 = vmul.f32 %v3570_v8, %v7626_v34  ;;  %v6001_v34 = vld [vmem:[#allocation10 + $0x20] ss:$16 sps:$4 sm:$0xff]   ;;  %v6010_v49 = vld [vmem:[#allocation10 + $0x48] ss:$16 sps:$4 sm:$0xff]   ;;  %v6015_v31 = vld [vmem:[#allocation10 + $0x64] ss:$16 sps:$4 sm:$0xff]  }
 0x6ad   : > { %v3597_v5 = vmul.f32 %v3595_v41, %v7778_v11  ;;  %v6007_v39 = vld [vmem:[#allocation10 + $0x40] ss:$16 sps:$4 sm:$0xff]   ;;  %v6018_v8 = vld [vmem:[#allocation10 + $0x6c] ss:$16 sps:$4 sm:$0xff]   ;;  %v6016_v41 = vld [vmem:[#allocation10 + $0x68] ss:$16 sps:$4 sm:$0xff]  }
 0x6ae   : > { %v7782_v6 = vadd.f32 %v3586_v44, %v3574_v45  ;;  %v6013_v10 = vld [vmem:[#allocation10 + $0x60] ss:$16 sps:$4 sm:$0xff]   ;;  %v6021_v44 = vld [vmem:[#allocation10 + $0x84] ss:$16 sps:$4 sm:$0xff]   ;;  %v6024_v45 = vld [vmem:[#allocation10 + $0x8c] ss:$16 sps:$4 sm:$0xff]  }
 0x6af   : > { %5340 = vst [vmem:[%s6768_s14 + $0x50] sm:$0xff] %v3597_v5 }
 0x6b0   : > { %v3598_v21 = vmul.f32 %v3596_v43, %v7782_v6  ;;  %v6022_v43 = vld [vmem:[#allocation10 + $0x88] ss:$16 sps:$4 sm:$0xff]  }
 0x6b2   : > { %v3601_v22 = vpack.c.bf16 %v3598_v21, %v3597_v5  ;;  %5341 = vst [vmem:[%s6768_s14 + $0x58] sm:$0xff] %v3598_v21  ;;  %v6019_v5 = vld [vmem:[#allocation10 + $0x80] ss:$16 sps:$4 sm:$0xff]   ;;  %v6027_v21 = vld [vmem:[#allocation10 + $0xa4] ss:$16 sps:$4 sm:$0xff]  }
 0x6b4   : > { %4034 = vmatprep.mubr.bf16.mxu0 %v3601_v22  ;;  %4077 = vmatprep.mubr.bf16.mxu1 %v3601_v22  ;;  %v6025_v22 = vld [vmem:[#allocation10 + $0xa0] ss:$16 sps:$4 sm:$0xff]  }
 0x6b5   : > { %4035 = vmatmul.mubr.bf16.vlgmr.msra.gmra.mrb[24].mxu0 %v5939_v46  ;;  %4078 = vmatmul.mubr.bf16.vlgmr.msra.gmra.mrb[24].mxu1 %v5939_v46  ;;  %v6030_v46 = vld [vmem:[#allocation10 + $0xac] ss:$16 sps:$4 sm:$0xff]  }
 0x6b6   : > { %4528 = vmatpush1.bf16.msra.mxu0 %v5995_v33  ;;  %4571 = vmatpush1.bf16.msra.mxu1 %v5998_v19  ;;  %v6028_v33 = vld [vmem:[#allocation10 + $0xa8] ss:$16 sps:$4 sm:$0xff]   ;;  %v6033_v19 = vld [vmem:[#allocation10 + $0xc4] ss:$16 sps:$4 sm:$0xff]  }
 0x6b7   : > { %4529 = vmatprep.subr.bf16.mxu0 %v6003_v23  ;;  %4572 = vmatprep.subr.bf16.mxu1 %v6006_v29  ;;  %v6036_v23 = vld [vmem:[#allocation10 + $0xcc] ss:$16 sps:$4 sm:$0xff]   ;;  %v6031_v29 = vld [vmem:[#allocation10 + $0xc0] ss:$16 sps:$4 sm:$0xff]  }
 0x6ba   : > { %4530 = vmatpush1.bf16.msra.mxu0 %v6001_v34  ;;  %4573 = vmatpush1.bf16.msra.mxu1 %v6004_v36  ;;  %v6034_v34 = vld [vmem:[#allocation10 + $0xc8] ss:$16 sps:$4 sm:$0xff]  }
 0x6bb   : > { %4531 = vmatprep.subr.bf16.mxu0 %v6009_v48  ;;  %4574 = vmatprep.subr.bf16.mxu1 %v6012_v20 }
 0x6be   : > { %4532 = vmatpush1.bf16.msra.mxu0 %v6007_v39  ;;  %4575 = vmatpush1.bf16.msra.mxu1 %v6010_v49 }
 0x6bf   : > { %4533 = vmatprep.subr.bf16.mxu0 %v6015_v31  ;;  %4576 = vmatprep.subr.bf16.mxu1 %v6018_v8 }
 0x6c2   : > { %4534 = vmatpush1.bf16.msra.mxu0 %v6013_v10  ;;  %4577 = vmatpush1.bf16.msra.mxu1 %v6016_v41 }
 0x6c3   : > { %4535 = vmatprep.subr.bf16.mxu0 %v6021_v44  ;;  %4578 = vmatprep.subr.bf16.mxu1 %v6024_v45 }
 0x6c6   : > { %4536 = vmatpush1.bf16.msra.mxu0 %v6019_v5  ;;  %4579 = vmatpush1.bf16.msra.mxu1 %v6022_v43 }
 0x6c7   : > { %4537 = vmatprep.subr.bf16.mxu0 %v6027_v21  ;;  %4580 = vmatprep.subr.bf16.mxu1 %v6030_v46 }
 0x6ca   : > { %4538 = vmatpush1.bf16.msra.mxu0 %v6025_v22  ;;  %4581 = vmatpush1.bf16.msra.mxu1 %v6028_v33 }
 0x6cb   : > { %4539 = vmatprep.subr.bf16.mxu0 %v6033_v19  ;;  %4582 = vmatprep.subr.bf16.mxu1 %v6036_v23 }
 0x6ce   : > { %4540 = vmatpush1.bf16.msra.mxu0 %v6031_v29  ;;  %4583 = vmatpush1.bf16.msra.mxu1 %v6034_v34 }
 0x6cf   : > { %4541 = vmatprep.subr.bf16.mxu0 %v7658_v38  ;;  %4584 = vmatprep.subr.bf16.mxu1 %v7660_v35 }
 0x6d2   : > { %4542 = vmatpush1.bf16.msra.mxu0 %v7662_v42  ;;  %4585 = vmatpush1.bf16.msra.mxu1 %v7664_v40 }
 0x6d3   : > { %4543 = vmatprep.subr.bf16.mxu0 %v7670_v14  ;;  %4586 = vmatprep.subr.bf16.mxu1 %v7672_v12 }
 0x6d6   : > { %4544 = vmatpush1.bf16.msra.mxu0 %v7674_v13  ;;  %4587 = vmatpush1.bf16.msra.mxu1 %v7676_v24 }
 0x6d7   : > { %4545 = vmatprep.subr.bf16.mxu0 %v7682_v25  ;;  %4588 = vmatprep.subr.bf16.mxu1 %v7684_v28 }
 0x6da   : > { %4546 = vmatpush1.bf16.msra.mxu0 %v7686_v27  ;;  %4589 = vmatpush1.bf16.msra.mxu1 %v7688_v47 }
 0x6db   : > { %4547 = vmatprep.subr.bf16.mxu0 %v7694_v30  ;;  %4590 = vmatprep.subr.bf16.mxu1 %v7696_v26 }
 0x6de   : > { %4548 = vmatpush1.bf16.msra.mxu0 %v7698_v32  ;;  %4591 = vmatpush1.bf16.msra.mxu1 %v7700_v9 }
 0x6df   : > { %4549 = vmatprep.subr.bf16.mxu0 %v7706_v37  ;;  %4592 = vmatprep.subr.bf16.mxu1 %v7708_v50 }
 0x6e2   : > { %4550 = vmatpush1.bf16.msra.mxu0 %v7710_v51  ;;  %4593 = vmatpush1.bf16.msra.mxu1 %v7712_v53 }
 0x6e3   : > { %4551 = vmatprep.subr.bf16.mxu0 %v7718_v54  ;;  %4594 = vmatprep.subr.bf16.mxu1 %v7720_v55 }
 0x6e6   : > { %4552 = vmatpush1.bf16.msra.mxu0 %v7722_v56  ;;  %4595 = vmatpush1.bf16.msra.mxu1 %v7724_v57 }
 0x6e7   : > { %4553 = vmatprep.subr.bf16.mxu0 %v7730_v58  ;;  %4596 = vmatprep.subr.bf16.mxu1 %v7732_v59 }
 0x6ea   : > { %4554 = vmatpush1.bf16.msra.mxu0 %v7734_v60  ;;  %4597 = vmatpush1.bf16.msra.mxu1 %v7736_v61 }
 0x6eb   : > { %4555 = vmatprep.subr.bf16.mxu0 %v7742_v62  ;;  %4598 = vmatprep.subr.bf16.mxu1 %v7744_v63 }
 0x6ee   : > { %4556 = vmatpush1.bf16.msra.mxu0 %v7746_v0  ;;  %4599 = vmatpush1.bf16.msra.mxu1 %v7748_v1 }
 0x6ef   : > { %4557 = vmatprep.subr.bf16.mxu0 %v7754_v2  ;;  %4600 = vmatprep.subr.bf16.mxu1 %v7756_v3 }
 0x6f2   : > { %4558 = vmatpush1.bf16.msra.mxu0 %v7758_v4  ;;  %4601 = vmatpush1.bf16.msra.mxu1 %v7760_v52 }
 0x788   : > { %v4036_v38 = vpop.f32.mrb[24].mxu0  ;;  %v4079_v35 = vpop.f32.mrb[24].mxu1 }
 0x789   : > { %v4037_v42 = vadd.f32 %v4036_v38, %v7035_v15  ;;  %v4080_v40 = vadd.f32 %v4079_v35, %v7037_v16  ;;  %v4038_v14 = vpop.f32.mrb[25].mxu0  ;;  %v4081_v12 = vpop.f32.mrb[25].mxu1 }
 0x78a   : > { %v4039_v13 = vadd.f32 %v4038_v14, %v7039_v17  ;;  %v4082_v24 = vadd.f32 %v4081_v12, %v7041_v18  ;;  %v4040_v25 = vpop.f32.mrb[26].mxu0  ;;  %v4083_v28 = vpop.f32.mrb[26].mxu1 }
 0x78b   : > { %v4100_v27 = vmul.f32 0.5, %v4037_v42  ;;  %v4088_v47 = vmul.f32 0.5, %v4080_v40  ;;  %v4041_v30 = vadd.f32 %v4040_v25, %v7035_v15  ;;  %v4084_v26 = vadd.f32 %v4083_v28, %v7037_v16  ;;  %v4042_v32 = vpop.f32.mrb[27].mxu0  ;;  %v4085_v9 = vpop.f32.mrb[27].mxu1 }
 0x78c   : > { %6133 = vtanh.f32 %v4039_v13  ;;  %v4114_v37 = vmul.f32 0.5, %v4082_v24  ;;  %v4086_v50 = vadd.f32 %v4085_v9, %v7041_v18  ;;  %v4043_v55 = vadd.f32 %v4042_v32, %v7039_v17 }
 0x78d   : > { %6135 = vtanh.f32 %v4100_v27  ;;  %v4101_v51 = vmul.f32 0.5, %v4041_v30  ;;  %v4089_v53 = vmul.f32 0.5, %v4084_v26 }
 0x78e   : > { %6137 = vtanh.f32 %v4088_v47  ;;  %v4115_v54 = vmul.f32 0.5, %v4086_v50 }
 0x78f   : > { %6139 = vtanh.f32 %v4114_v37 }
 0x790   : > { %6141 = vtanh.f32 %v4101_v51 }
 0x791   : > { %6143 = vtanh.f32 %v4089_v53 }
 0x792   : > { %6145 = vtanh.f32 %v4115_v54 }
 0x793   : > { %6147 = vtanh.f32 %v4043_v55 }
 0x796   : > { %v6134_v56 = vpop.eup %6133 }
 0x797   : > { %v6136_v57 = vpop.eup %6135 }
 0x798   : > { %v6138_v58 = vpop.eup %6137  ;;  %v4104_v59 = vmul.f32 0.5, %v6136_v57 }
 0x799   : > { %v6140_v60 = vpop.eup %6139  ;;  %v4092_v61 = vmul.f32 0.5, %v6138_v58 }
 0x79a   : > { %v6142_v62 = vpop.eup %6141  ;;  %v4106_v63 = vadd.f32 0.5, %v4104_v59  ;;  %v4118_v2 = vmul.f32 0.5, %v6140_v60 }
 0x79b   : > { %v6144_v0 = vpop.eup %6143  ;;  %v4094_v1 = vadd.f32 0.5, %v4092_v61  ;;  %v4105_v3 = vmul.f32 0.5, %v6142_v62 }
 0x79c   : > { %v4110_v4 = vmul.f32 %v6134_v56, %v4106_v63  ;;  %v4093_v52 = vmul.f32 0.5, %v6144_v0  ;;  %v6146_v36 = vpop.eup %6145  ;;  %v4120_v10 = vadd.f32 0.5, %v4118_v2 }
 0x79d   : > { %v4098_v48 = vmul.f32 %v4094_v1, %v7778_v11  ;;  %v4107_v20 = vadd.f32 0.5, %v4105_v3  ;;  %v6148_v39 = vpop.eup %6147  ;;  %v4119_v31 = vmul.f32 0.5, %v6146_v36 }
 0x79e   : > { %v4095_v49 = vadd.f32 0.5, %v4093_v52 }
 0x79f   : > { %v4112_v8 = vadd.f32 %v4110_v4, %v4098_v48  ;;  %v4111_v41 = vmul.f32 %v6148_v39, %v4107_v20  ;;  %v4121_v43 = vadd.f32 0.5, %v4119_v31 }
 0x7a0   : > { %v4099_v44 = vmul.f32 %v4095_v49, %v7782_v6 }
 0x7a1   : > { %v4122_v45 = vmul.f32 %v4120_v10, %v4112_v8 }
 0x7a2   : > { %v7834_v5 = vadd.f32 %v4111_v41, %v4099_v44 }
 0x7a3   : > { %5409 = vst [vmem:[%s6768_s14 + $0x60] sm:$0xff] %v4122_v45 }
 0x7a4   : > { %v4123_v21 = vmul.f32 %v4121_v43, %v7834_v5 }
 0x7a6   : > { %v4126_v46 = vpack.c.bf16 %v4123_v21, %v4122_v45  ;;  %5410 = vst [vmem:[%s6768_s14 + $0x68] sm:$0xff] %v4123_v21 }
 0x7a8   : > { %4559 = vmatprep.mubr.bf16.mxu0 %v4126_v46  ;;  %4602 = vmatprep.mubr.bf16.mxu1 %v4126_v46 }
 0x7a9   : > { %4560 = vmatmul.mubr.bf16.vlgmr.msra.gmra.mrb[28].mxu0 %v7767_v7  ;;  %4603 = vmatmul.mubr.bf16.vlgmr.msra.gmra.mrb[28].mxu1 %v7767_v7 }
 0x87c   : > { %v4561_v11 = vpop.f32.mrb[28].mxu0  ;;  %v4604_v22 = vpop.f32.mrb[28].mxu1 }
 0x87d   : > { %v4562_v33 = vadd.f32 %v4561_v11, %v7035_v15  ;;  %v4605_v6 = vadd.f32 %v4604_v22, %v7037_v16  ;;  %v4563_v19 = vpop.f32.mrb[29].mxu0  ;;  %v4606_v23 = vpop.f32.mrb[29].mxu1 }
 0x87e   : > { %v4564_v29 = vadd.f32 %v4563_v19, %v7039_v17  ;;  %v4607_v34 = vadd.f32 %v4606_v23, %v7041_v18  ;;  %v4565_v38 = vpop.f32.mrb[30].mxu0  ;;  %v4608_v35 = vpop.f32.mrb[30].mxu1 }
 0x87f   : > { %v4625_v42 = vmul.f32 0.5, %v4562_v33  ;;  %v4613_v40 = vmul.f32 0.5, %v4605_v6  ;;  %v4566_v14 = vadd.f32 %v4565_v38, %v7035_v15  ;;  %v4609_v7 = vadd.f32 %v4608_v35, %v7037_v16  ;;  %v4567_v12 = vpop.f32.mrb[31].mxu0  ;;  %v4610_v13 = vpop.f32.mrb[31].mxu1 }
 0x880   : > { %6149 = vtanh.f32 %v4564_v29  ;;  %v4639_v24 = vmul.f32 0.5, %v4607_v34  ;;  %v4611_v25 = vadd.f32 %v4610_v13, %v7041_v18  ;;  %v4568_v30 = vadd.f32 %v4567_v12, %v7039_v17 }
 0x881   : > { %6151 = vtanh.f32 %v4625_v42  ;;  %v4626_v28 = vmul.f32 0.5, %v4566_v14  ;;  %v4614_v27 = vmul.f32 0.5, %v4609_v7 }
 0x882   : > { %6153 = vtanh.f32 %v4613_v40  ;;  %v4640_v47 = vmul.f32 0.5, %v4611_v25 }
 0x883   : > { %6155 = vtanh.f32 %v4639_v24 }
 0x884   : > { %6157 = vtanh.f32 %v4626_v28 }
 0x885   : > { %6159 = vtanh.f32 %v4614_v27 }
 0x886   : > { %6161 = vtanh.f32 %v4640_v47 }
 0x887   : > { %6163 = vtanh.f32 %v4568_v30 }
 0x88a   : > { %v6150_v15 = vpop.eup %6149 }
 0x88b   : > { %v6152_v16 = vpop.eup %6151 }
 0x88c   : > { %v6154_v26 = vpop.eup %6153  ;;  %v4629_v32 = vmul.f32 0.5, %v6152_v16 }
 0x88d   : > { %v6156_v9 = vpop.eup %6155  ;;  %v4617_v37 = vmul.f32 0.5, %v6154_v26 }
 0x88e   : > { %v6158_v50 = vpop.eup %6157  ;;  %v4631_v18 = vadd.f32 0.5, %v4629_v32  ;;  %v4643_v54 = vmul.f32 0.5, %v6156_v9 }
 0x88f   : > { %v6160_v51 = vpop.eup %6159  ;;  %v4619_v53 = vadd.f32 0.5, %v4617_v37  ;;  %v4630_v55 = vmul.f32 0.5, %v6158_v50 }
 0x890   : > { %v4635_v56 = vmul.f32 %v6150_v15, %v4631_v18  ;;  %v4618_v57 = vmul.f32 0.5, %v6160_v51  ;;  %v6162_v58 = vpop.eup %6161  ;;  %v4645_v0 = vadd.f32 0.5, %v4643_v54 }
 0x891   : > { %v4623_v17 = vmul.f32 %v4619_v53, %v4112_v8  ;;  %v4632_v59 = vadd.f32 0.5, %v4630_v55  ;;  %v6164_v60 = vpop.eup %6163  ;;  %v4644_v62 = vmul.f32 0.5, %v6162_v58 }
 0x892   : > { %v4620_v61 = vadd.f32 0.5, %v4618_v57 }
 0x893   : > { %v4637_v63 = vadd.f32 %v4635_v56, %v4623_v17  ;;  %v4636_v1 = vmul.f32 %v6164_v60, %v4632_v59  ;;  %v4646_v52 = vadd.f32 0.5, %v4644_v62 }
 0x894   : > { %v4624_v2 = vmul.f32 %v4620_v61, %v7834_v5 }
 0x895   : > { %v4647_v3 = vmul.f32 %v4645_v0, %v4637_v63  ;;  %4649 = vst [vmem:[#allocation2] sm:$0xff] %v4637_v63 }
 0x896   : > { %v4638_v4 = vadd.f32 %v4636_v1, %v4624_v2  ;;  %4659 = sbr.rel (%p5480_p5) target bundleno = 2209 (0x8a1), region = 64 }
 0x897   : > { %5478 = vst [vmem:[%s6768_s14 + $0x70] sm:$0xff] %v4647_v3 }
 0x898   : > { %v4648_v36 = vmul.f32 %v4646_v52, %v4638_v4  ;;  %4650 = vst [vmem:[#allocation2 + $0x8] sm:$0xff] %v4638_v4 }
 0x89a   : > { %v4651_v48 = vpack.c.bf16 %v4648_v36, %v4647_v3  ;;  %5479 = vst [vmem:[%s6768_s14 + $0x78] sm:$0xff] %v4648_v36 }
 0x89c   : > { %4652 = vst [vmem:[#allocation3 + $0x8] sm:$0xff] %v4651_v48  ;;  %v4660_v20 = vld [vmem:[#allocation2] sm:$0xff] (!%p5480_p5) }
 0x89d   : > { %4662 = vst [vmem:[%s6770_s26] sm:$0xff] %v4660_v20 }
 0x89f   : > { %v4661_v39 = vld [vmem:[#allocation2 + $0x8] sm:$0xff] }
 0x8a0   : > { %4663 = vst [vmem:[%s6770_s26 + $0x8] sm:$0xff] %v4661_v39 }
 0x8a1 PF: > { %s4665_s15 = scalar_lea.sflag [#allocation6], %s6745_s6  ;;  %s7858_s10 = scalar_lea.sflag [#allocation14], %s358_s5 }
 0x8a2   : > { %s8056_s13 = sld [smem:[#allocation28_spill]]  ;;  %s8057_s17 = sld [smem:[#allocation34_spill]] }
 0x8a3   : > { %s5494_s18 = sshll.u32 %s6383_s27, 5  ;;  %s4702_s12 = sshll.u32 %s6768_s14, 4  ;;  %s4703_s12 = int_to_ptr.vmem [resolvable:$true] %s4702_s12 }
 0x8a4   : > { %s8058_s5 = sld [smem:[#allocation45_spill]]  ;;  %s6414_s28 = smov 256  }
 0x8a5   : > { %s6415_s20 = smov 512   ;;  %s6416_s21 = smov 2  }
 0x8a6   : > { %s6417_s27 = smov 128   ;;  %s6418_s16 = smov 8  }
 0x8a7   : > { %s6419_s14 = smov [#allocation17]   ;;  %s6420_s8 = smov 0  }
 0x8a8   : > { %s5484_s24 = sshll.u32 %s8056_s13, 1  ;;  %p8059_p3 = scmp.ne.s32.totalorder %s8057_s17, 0 }
 0x8a9   : > { %s4683_s3 = sadd.s32 %s5494_s18, %s5484_s24  ;;  %s5495_s24 = sshll.u32 %s8056_s13, 8 }
 0x8aa   : > { %s5486_s19 = sshll.u32 %s4683_s3, 7  ;;  %5513 = sst [smem:[#allocation18]] (%p8059_p3), %s6414_s28 }
 0x8ab   : > { %s4685_s29 = scalar_lea.hbm %s8058_s5, %s5486_s19  ;;  %5514 = sst [smem:[#allocation18 + $0x1]] (%p8059_p3), %s6415_s20 }
 0x8ac   : > { %5515 = sst [smem:[#allocation18 + $0x2]] (%p8059_p3), %s6416_s21  ;;  %s4731_s18 = sshll.u32 %s6770_s26, 4  ;;  %s7887_s18 = int_to_ptr.vmem [resolvable:$true] %s4731_s18 }
 0x8ad   : > { %5516 = sst [smem:[#allocation18 + $0x3]] (%p8059_p3), %s6417_s27  ;;  %s6265_s5 = scalar_lea.vmem %s7887_s18, 256 }
 0x8ae   : > { %5517 = sst [smem:[#allocation18 + $0x4]] (%p8059_p3), %s6417_s27  ;;  %p6266_p6 = scmp.ne.s32.totalorder %s7887_s18, %s6265_s5 }
 0x8af   : > { %5518 = sst [smem:[#allocation18 + $0x5]] (%p8059_p3), %s6418_s16 }
 0x8b0   : > { %5519 = dma.general (%p8059_p3), %s4703_s12, 2048, %s4685_s29, %s4665_s15, %s6419_s14, [#allocation18], %s6420_s8, 0  }
 0x8b1   : > { %s8060_s11 = sld [smem:[#allocation35_spill]]  ;;  %s8061_s6 = sld [smem:[#allocation46_spill]] }
 0x8b2   : > { %s6421_s15 = smov [#allocation13]  }
 0x8b3   : > { %s6269_s17 = sshll.u32 %s6421_s15, 4  ;;  %s6270_s17 = int_to_ptr.vmem [resolvable:$false] %s6269_s17 }
 0x8b4   : > { %s6271_s13 = scalar_lea.vmem %s6270_s17, 512  ;;  %p6272_p1 = scmp.lt.s32.totalorder %s7887_s18, %s6270_s17 }
 0x8b5   : > { %p6273_p9 = scmp.lt.s32.totalorder %s6271_s13, %s6265_s5 }
 0x8b7   : > { %s7885_s9 = scalar_lea.hbm %s8061_s6, %s5495_s24  ;;  %p8062_p12 = scmp.ne.s32.totalorder %s8060_s11, 0 }
 0x8b8   : > { %p6274_p10 = por %p6273_p9, %p6272_p1 }
 0x8b9   : > { %p6267_p11 = pnand %p6266_p6, %p8062_p12 }
 0x8bb   : > { %p6268_p2 = pneg %p6267_p11 }
 0x8bd   : > { %p6275_p13 = pnand %p6274_p10, %p6268_p2 }
 0x8bf   : > { %6278 = shalt.err (!%p6275_p13)
}
 0x8c0   : > { %s6279_s26 = scalar_lea.hbm %s7885_s9, 256  ;;  %s6283_s28 = scalar_lea.hbm %s8061_s6, 512 }
 0x8c1   : > { %p6280_p7 = scmp.ne.s32.totalorder %s7885_s9, %s6279_s26  ;;  %p6284_p0 = scmp.lt.u32.totalorder %s7885_s9, %s8061_s6 }
 0x8c2   : > { %p6285_p5 = scmp.lt.u32.totalorder %s6283_s28, %s6279_s26  ;;  %p6287_p6 = scmp.lt.u32.totalorder %s6279_s26, %s7885_s9 }
 0x8c3   : > { %p6281_p4 = pnand %p6280_p7, %p8062_p12 }
 0x8c4   : > { %p6286_p3 = por %p6285_p5, %p6284_p0 }
 0x8c5   : > { %p6282_p8 = pneg %p6281_p4 }
 0x8c6   : > { %p6288_p11 = por %p6287_p6, %p6286_p3 }
 0x8c8   : > { %p6289_p2 = pnand %p6288_p11, %p6282_p8 }
 0x8ca   : > { %6292 = shalt.err (!%p6289_p2)
}
 0x8cb   : > { %s6422_s27 = smov 128   ;;  %s6423_s16 = smov 8  }
 0x8cc   : > { %5520 = dma.vmem_to_hbm [thread:$0]  (%p8062_p12), %s7887_s18, 256, %s7885_s9, %s7858_s10, %s6422_s27, %s6422_s27, %s6423_s16  }
 0x8cd PF: > { %s8063_s14 = sld [smem:[#allocation26_spill]]  ;;  %s8064_s8 = sld [smem:[#allocation36_spill]] }
 0x8ce   : > { %p5536_p1 = scmp.ge.s32.totalorder %s6399_s7, 2 }
 0x8d3   : > { %s4746_s24 = sand.u32 1, %s8063_s14   ;;  %p8065_p9 = scmp.ne.s32.totalorder %s8064_s8, 0 }
 0x8d4   : > { %s4747_s3 = scalar_lea.sflag [#allocation6], %s4746_s24 }
 0x8d5   : > { %p5528_p10 = pnand %p5536_p1, %p8065_p9 }
 0x8d7   : > { %6350 = dma.done.wait (!%p5528_p10), %s4747_s3, 2048  }
 0x8d8   : > { %6352 = vsyncadd (!%p5528_p10), %s4747_s3, 4294965248  ;;  %s8066_s19 = sld [smem:[#allocation25_spill]]  ;;  %s8067_s5 = sld [smem:[#allocation37_spill]] }
 0x8de   : > { %s4755_s15 = sand.u32 1, %s8066_s19   ;;  %p8068_p13 = scmp.ne.s32.totalorder %s8067_s5, 0 }
 0x8df   : > { %s4756_s17 = scalar_lea.sflag [#allocation14], %s4755_s15 }
 0x8e0   : > { %p5531_p7 = pnand %p5536_p1, %p8068_p13 }
 0x8e2   : > { %6354 = dma.done.wait (!%p5531_p7), %s4756_s17, 256  }
 0x8e3   : > { %6356 = vsyncadd (!%p5531_p7), %s4756_s17, 4294967040  ;;  %s30_s7 = sadd.s32 1, %s6399_s7   ;;  %s8069_s10 = sld [smem:[#allocation32_spill]] }
 0x8e4   : > { %p27_p12 = scmp.ge.s32.totalorder %s30_s7, 6   ;;  %s8070_s11 = sld [smem:[#allocation27_spill]] }
 0x8e5   : > { %s8071_s26 = sld [smem:[#allocation33_spill]]  ;;  %s8072_s27 = sld [smem:[#allocation29_spill]] }
 0x8e6   : > { %s8073_s29 = sld [smem:[#allocation30_spill]]  ;;  %s8074_s18 = sld [smem:[#allocation31_spill]] }
 0x8e7   : > { %s8075_s21 = smov %s6363_s22  ;;  %s8076_s22 = smov %s6367_s23 }
 0x8e8   : > { %s8078_s24 = smov %s6375_s25  ;;  %s8080_s28 = smov %s6395_s30 }
 0x8e9   : > { %s8077_s23 = smov %s8069_s10  ;;  %29 = sbr.rel (!%p27_p12) target bundleno = 18 (0x12), region = 162 }
 0x8ea   : > { %s8079_s25 = smov %s8070_s11 }
 0x8ec   : > { %s8081_s30 = smov %s8074_s18 }
 0x8f0   :  { %4761 = vsyncpa [#allocation5], 1 }
 0x8f1   :  { %4763 = vsyncpa [#allocation5 + $0x1], 1 }
 0x8f2   :  { %4764 = vsyncpa [#allocation8], 1 }
 0x8f3   :  { %4766 = vsyncpa [#allocation8 + $0x1], 1 }
 0x8f4   :  { %4767 = vsyncpa [#allocation11], 1 }
 0x8f5   :  { %4768 = vsyncpa [#allocation6], 1 }
 0x8f6   :  { %4770 = vsyncpa [#allocation6 + $0x1], 1 }
 0x8f7   :  { %4771 = vsyncpa [#allocation14], 1 }
 0x8f8   :  { %4773 = vsyncpa [#allocation14 + $0x1], 1 }

</bundles_post_ra>
